<compile_context>
chip_gen: v6e
topology: v6e:2x2x1
jax: 0.10.0
libtpu: 0.0.40
codegen_flags: <defaults>
</compile_context>

<pallas_src>
import jax
import jax.numpy as jnp
from jax import lax
from jax.experimental import pallas as pl
from jax.experimental.pallas import tpu as pltpu

# ----- hyper-parameters (small but consistent with the module) -----
INPUT_SIZE = 8
SEQ_LEN = 16          # must be even (MaxPool1d(2))
PRED_LEN = 4
CONV_CH = 64
HIDDEN = 128
FC_HID = 256
BATCH = 4
EPS = 1e-5


# ---------------------------------------------------------------------------
# Fused kernel:
#   Conv1d(k=3,p=1)+BN(folded)+ReLU+MaxPool1d(2) -> interleaved 2-layer LSTM
#   -> flatten -> FC head.  All rows are TIME-MAJOR (row = t*B + b).
# ---------------------------------------------------------------------------
def fused_kernel(xp_ref, cw_ref, cb_ref, wih0_ref, b0_ref, wbig_ref, b1_ref,
                 fc1w_ref, fc1b_ref, fc2w_ref, fc2b_ref,
                 o_ref, g0_scr, flat_scr):
    f32, bf16 = jnp.float32, jnp.bfloat16
    B = o_ref.shape[0]
    H = HIDDEN
    N = xp_ref.shape[0] - 2 * B            # L*B conv-output rows (time-major)
    Tp = g0_scr.shape[0] // B              # pooled sequence length

    # ---- Conv1d(k=3,pad=1) + folded BN + ReLU: 3 shifted matmuls, in-kernel im2col.
    # xp rows are (t_pad)*B + b with one zero time-row of padding on each side, so the
    # three tap slabs are contiguous sublane slices at offsets 0 / B / 2B.
    xp = xp_ref[...]                                                     # ((L+2)*B, C)
    y = (jnp.dot(xp[0:N].astype(bf16), cw_ref[0], preferred_element_type=f32)
         + jnp.dot(xp[B:B + N].astype(bf16), cw_ref[1], preferred_element_type=f32)
         + jnp.dot(xp[2 * B:2 * B + N].astype(bf16), cw_ref[2], preferred_element_type=f32)
         + cb_ref[...])                                                  # (L*B, 64)
    y = jnp.maximum(y, 0.0)                                              # ReLU

    # ---- MaxPool1d(2): pooling partners are consecutive B-row blocks; lane layout
    # (64 lanes) is untouched, only sublanes are regrouped.
    yp = y.reshape(Tp, 2 * B, CONV_CH)
    pooled = jnp.maximum(yp[:, :B, :], yp[:, B:, :]).reshape(Tp * B, CONV_CH)
    # TODO(synk): Dropout(0.2) after the pool is identity at inference.

    # ---- hoisted layer-0 input projection, time-major, bias folded in; parked in
    # VMEM scratch so the unrolled recurrence only does cheap 4-row slices of it.
    g0_scr[...] = jnp.dot(pooled.astype(bf16), wih0_ref[...],
                          preferred_element_type=f32) + b0_ref[...]      # (Tp*B, 4H)

    w_big = wbig_ref[...]        # (H, 12H) bf16 = [Whh0 | Wih1 | Whh1], read once
    b1 = b1_ref[...]             # (1, 4H), b_ih1 + b_hh1 (gate-permuted)

    def gates(pre, c_prev):      # gate order [i|f|o|g]: one sigmoid slab + one tanh
        ifo = jax.nn.sigmoid(pre[:, :3 * H])
        g = jnp.tanh(pre[:, 3 * H:])
        c = ifo[:, H:2 * H] * c_prev + ifo[:, :H] * g
        h = ifo[:, 2 * H:] * jnp.tanh(c)
        return h, c

    h0 = jnp.zeros((B, H), f32); c0 = jnp.zeros((B, H), f32)
    h1 = jnp.zeros((B, H), f32); c1 = jnp.zeros((B, H), f32)

    # ---- interleaved 2-layer LSTM recurrence: combined step s runs layer-0 time s
    # and layer-1 time s-1 off ONE (2B,H)@(H,12H) matmul:
    #   rows 0:B , cols 0:4H   = h0_{s-1} @ Whh0   (layer-0 recurrent term)
    #   rows 0:B , cols 4H:8H  = h0_{s-1} @ Wih1   (layer-1 input term)
    #   rows B:2B, cols 8H:12H = h1_{s-2} @ Whh1   (layer-1 recurrent term)
    # Tp+1 = 9 serial matmuls with a full 8-row tile instead of 16 at M=4.
    # TODO(synk): on v5e/v6e pltpu.matmul_push_rhs could keep w_big staged in the MXU
    #             weight registers across steps; omitted pending per-chip validation.
    for s in range(Tp + 1):                                   # static unroll (9 steps)
        lhs = jnp.concatenate([h0, h1], axis=0).astype(bf16)  # (2B, H)
        r = jnp.dot(lhs, w_big, preferred_element_type=f32)   # (2B, 12H)
        if s >= 1:                                            # layer-1, time s-1
            pre1 = r[0:B, 4 * H:8 * H] + r[B:2 * B, 8 * H:12 * H] + b1
            h1, c1 = gates(pre1, c1)
            flat_scr[:, (s - 1) * H:s * H] = h1               # lane-dense flatten slot
        if s < Tp:                                            # layer-0, time s
            pre0 = g0_scr[s * B:(s + 1) * B, :] + r[0:B, 0:4 * H]
            h0, c0 = gates(pre0, c0)
    # TODO(synk): inter-layer LSTM dropout (0.3) is training-only; identity here.

    # ---- FC head: Linear -> (BN folded) -> ReLU -> Linear, on (B, Tp*H) flatten ----
    flat = flat_scr[...]                                      # == lstm_out.view(B, -1)
    hfc = jnp.dot(flat.astype(bf16), fc1w_ref[...],
                  preferred_element_type=f32) + fc1b_ref[...]
    hfc = jnp.maximum(hfc, 0.0)
    # TODO(synk): Dropout(0.2) in the FC head is identity at inference.
    out = jnp.dot(hfc.astype(bf16), fc2w_ref[...],
                  preferred_element_type=f32) + fc2b_ref[...]
    o_ref[...] = out.astype(o_ref.dtype)


# ---------------------------------------------------------------------------
# Wrapper: BN folding + gate permutation + time-major padding, then ONE pallas_call.
# ---------------------------------------------------------------------------
def temporal_conv_lstm_forward(x, p):
    # x: (B, seq_len, input_size) -- same as the PyTorch module input
    B, L, C = x.shape
    Tp = L // 2
    H = HIDDEN
    assert Tp * H == p["fc1_w"].shape[0], "seq_len inconsistent with fc1 weight"
    bf16 = jnp.bfloat16

    # ---- fold eval-mode BatchNorms into the adjacent linears (exact at inference) ----
    s1 = p["bn1_gamma"] * lax.rsqrt(p["bn1_var"] + EPS)                   # (1, 64)
    conv_w = (p["conv_w"] * s1).astype(bf16)                              # (3, C, 64)
    conv_b = (p["conv_b"] - p["bn1_mean"]) * s1 + p["bn1_beta"]           # (1, 64)

    s2 = p["bn2_gamma"] * lax.rsqrt(p["bn2_var"] + EPS)                   # (1, 256)
    fc1_w = (p["fc1_w"] * s2).astype(bf16)                                # (Tp*H, 256)
    fc1_b = (p["fc1_b"] - p["bn2_mean"]) * s2 + p["bn2_beta"]             # (1, 256)

    # ---- permute packed gate order [i|f|g|o] -> [i|f|o|g] (column blocks) ----
    def pg(w):
        return jnp.concatenate([w[..., :2 * H], w[..., 3 * H:], w[..., 2 * H:3 * H]],
                               axis=-1)

    wih0 = pg(p["wih0"]).astype(bf16)                                     # (64, 4H)
    b0 = pg(p["b0"])                                                      # (1, 4H)
    w_big = jnp.concatenate([pg(p["whh0"]), pg(p["wih1"]), pg(p["whh1"])],
                            axis=1).astype(bf16)                          # (H, 12H)
    b1 = pg(p["b1"])                                                      # (1, 4H)

    # ---- time-major, zero-padded conv input: row = (t+1)*B + b, one x pass only ----
    xp = jnp.pad(x, ((0, 0), (1, 1), (0, 0))).transpose(1, 0, 2).reshape((L + 2) * B, C)

    operands = (xp, conv_w, conv_b, wih0, b0, w_big, b1,
                fc1_w, fc1_b, p["fc2_w"].astype(bf16), p["fc2_b"])

    # NOTE(production batch): at large B add a batch grid (grid=(B // B_TILE,)) with
    # batch-tiled x/out BlockSpecs and constant-index weight BlockSpecs (weights stay
    # VMEM-resident), dimension_semantics=("parallel",) so v7x's two TensorCores each
    # take a batch shard and the x tile is auto double-buffered (matters most on
    # v5e's ~820 GB/s HBM).  Size B_TILE so the g0/flat scratches
    # (B_TILE*Tp*4H*4B + B_TILE*Tp*H*4B) plus ~1 MiB of weights stay well inside
    # v7x's 64 MiB physical / 32 MiB default scoped VMEM.  Unnecessary at B=4
    # (whole working set ~1 MiB), so a single invocation is used here.
    out = pl.pallas_call(
        fused_kernel,
        out_shape=jax.ShapeDtypeStruct((B, PRED_LEN), jnp.float32),
        in_specs=[pl.BlockSpec(memory_space=pltpu.MemorySpace.VMEM)
                  for _ in operands],
        out_specs=pl.BlockSpec(memory_space=pltpu.MemorySpace.VMEM),
        scratch_shapes=[pltpu.VMEM((Tp * B, 4 * H), jnp.float32),   # g0 projections
                        pltpu.VMEM((B, Tp * H), jnp.float32)],      # flattened h1
    )(*operands)
    return out


# ---------------------------------------------------------------------------
# Deterministic parameter initialization (shapes from the module __init__).
# LSTM / Linear weights are generated pre-transposed (input-major) with packed gate
# order [i|f|g|o] and combined biases (b_ih + b_hh); a real torch Conv1d checkpoint
# (64, C, 3) maps to conv_w via transpose(2, 1, 0) (tap 0 <-> x[t-1]).
# ---------------------------------------------------------------------------
def init_params(key):
    ks = jax.random.split(key, 20)
    s = 0.05
    p = {}
    p["conv_w"] = s * jax.random.normal(ks[0], (3, INPUT_SIZE, CONV_CH), jnp.float32)
    p["conv_b"] = s * jax.random.normal(ks[1], (1, CONV_CH), jnp.float32)
    # BatchNorm1d(64) -- eval-mode running stats
    p["bn1_gamma"] = 1.0 + 0.1 * jax.random.normal(ks[2], (1, CONV_CH), jnp.float32)
    p["bn1_beta"] = 0.1 * jax.random.normal(ks[3], (1, CONV_CH), jnp.float32)
    p["bn1_mean"] = 0.1 * jax.random.normal(ks[4], (1, CONV_CH), jnp.float32)
    p["bn1_var"] = 1.0 + 0.5 * jax.random.uniform(ks[5], (1, CONV_CH), jnp.float32)
    # LSTM layer 0 (64 -> 128) and layer 1 (128 -> 128)
    p["wih0"] = s * jax.random.normal(ks[6], (CONV_CH, 4 * HIDDEN), jnp.float32)
    p["whh0"] = s * jax.random.normal(ks[7], (HIDDEN, 4 * HIDDEN), jnp.float32)
    p["b0"] = s * jax.random.normal(ks[8], (1, 4 * HIDDEN), jnp.float32)
    p["wih1"] = s * jax.random.normal(ks[9], (HIDDEN, 4 * HIDDEN), jnp.float32)
    p["whh1"] = s * jax.random.normal(ks[10], (HIDDEN, 4 * HIDDEN), jnp.float32)
    p["b1"] = s * jax.random.normal(ks[11], (1, 4 * HIDDEN), jnp.float32)
    # FC head: Linear(128 * seq_len//2, 256) -> BN(256) -> ReLU -> Linear(256, pred_len)
    p["fc1_w"] = s * jax.random.normal(ks[12], (HIDDEN * (SEQ_LEN // 2), FC_HID), jnp.float32)
    p["fc1_b"] = s * jax.random.normal(ks[13], (1, FC_HID), jnp.float32)
    p["bn2_gamma"] = 1.0 + 0.1 * jax.random.normal(ks[14], (1, FC_HID), jnp.float32)
    p["bn2_beta"] = 0.1 * jax.random.normal(ks[15], (1, FC_HID), jnp.float32)
    p["bn2_mean"] = 0.1 * jax.random.normal(ks[16], (1, FC_HID), jnp.float32)
    p["bn2_var"] = 1.0 + 0.5 * jax.random.uniform(ks[17], (1, FC_HID), jnp.float32)
    p["fc2_w"] = s * jax.random.normal(ks[18], (FC_HID, PRED_LEN), jnp.float32)
    p["fc2_b"] = s * jax.random.normal(ks[19], (1, PRED_LEN), jnp.float32)
    return p


if __name__ == "__main__":
    key = jax.random.PRNGKey(0)
    pkey, xkey = jax.random.split(key)
    params = init_params(pkey)
    x = jax.random.normal(xkey, (BATCH, SEQ_LEN, INPUT_SIZE), jnp.float32)

    out = jax.jit(temporal_conv_lstm_forward)(x, params)
    jax.block_until_ready(out)
    assert out.shape == (BATCH, PRED_LEN), out.shape
    assert bool(jnp.all(jnp.isfinite(out)))
    print("KERNEL_OK")
</pallas_src>

<mosaic_0001>
module attributes {stable_mosaic.version = 11 : i64} {
  func.func @fused_kernel(%arg0: memref<72x8xf32, #tpu.memory_space<vmem>>, %arg1: memref<3x8x64xbf16, #tpu.memory_space<vmem>>, %arg2: memref<1x64xf32, #tpu.memory_space<vmem>>, %arg3: memref<64x512xbf16, #tpu.memory_space<vmem>>, %arg4: memref<1x512xf32, #tpu.memory_space<vmem>>, %arg5: memref<128x1536xbf16, #tpu.memory_space<vmem>>, %arg6: memref<1x512xf32, #tpu.memory_space<vmem>>, %arg7: memref<1024x256xbf16, #tpu.memory_space<vmem>>, %arg8: memref<1x256xf32, #tpu.memory_space<vmem>>, %arg9: memref<256x4xbf16, #tpu.memory_space<vmem>>, %arg10: memref<1x4xf32, #tpu.memory_space<vmem>>, %arg11: memref<4x4xf32, #tpu.memory_space<vmem>>, %arg12: memref<32x512xf32, #tpu.memory_space<vmem>>, %arg13: memref<4x1024xf32, #tpu.memory_space<vmem>>) attributes {dimension_semantics = [], scalar_prefetch = 0 : i64, scratch_operands = 2 : i64, tpu.core_type = #tpu.core_type<tc>} {
    %c0 = arith.constant 0 : index
    %c0_0 = arith.constant 0 : index
    %0 = vector.load %arg0[%c0, %c0_0] : memref<72x8xf32, #tpu.memory_space<vmem>>, vector<72x8xf32>
    %1 = vector.extract_strided_slice %0 {offsets = [0, 0], sizes = [64, 8], strides = [1, 1]} : vector<72x8xf32> to vector<64x8xf32>
    %2 = arith.truncf %1 : vector<64x8xf32> to vector<64x8xbf16>
    %c0_1 = arith.constant 0 : index
    %c0_2 = arith.constant 0 : index
    %c0_3 = arith.constant 0 : index
    %3 = vector.load %arg1[%c0_1, %c0_2, %c0_3] : memref<3x8x64xbf16, #tpu.memory_space<vmem>>, vector<1x8x64xbf16>
    %4 = vector.shape_cast %3 : vector<1x8x64xbf16> to vector<8x64xbf16>
    %cst = arith.constant dense<0.000000e+00> : vector<64x64xf32>
    %5 = tpu.matmul %2, %4, %cst {dimension_numbers = #tpu.dot_dimension_numbers<[1], [0], [0], [1], [0, 0, 1, 1], [], []>} : vector<64x8xbf16>, vector<8x64xbf16>, vector<64x64xf32> -> vector<64x64xf32>
    %6 = vector.extract_strided_slice %0 {offsets = [4, 0], sizes = [64, 8], strides = [1, 1]} : vector<72x8xf32> to vector<64x8xf32>
    %7 = arith.truncf %6 : vector<64x8xf32> to vector<64x8xbf16>
    %c1 = arith.constant 1 : index
    %c0_4 = arith.constant 0 : index
    %c0_5 = arith.constant 0 : index
    %8 = vector.load %arg1[%c1, %c0_4, %c0_5] : memref<3x8x64xbf16, #tpu.memory_space<vmem>>, vector<1x8x64xbf16>
    %9 = vector.shape_cast %8 : vector<1x8x64xbf16> to vector<8x64xbf16>
    %cst_6 = arith.constant dense<0.000000e+00> : vector<64x64xf32>
    %10 = tpu.matmul %7, %9, %cst_6 {dimension_numbers = #tpu.dot_dimension_numbers<[1], [0], [0], [1], [0, 0, 1, 1], [], []>} : vector<64x8xbf16>, vector<8x64xbf16>, vector<64x64xf32> -> vector<64x64xf32>
    %11 = arith.addf %5, %10 : vector<64x64xf32>
    %12 = vector.extract_strided_slice %0 {offsets = [8, 0], sizes = [64, 8], strides = [1, 1]} : vector<72x8xf32> to vector<64x8xf32>
    %13 = arith.truncf %12 : vector<64x8xf32> to vector<64x8xbf16>
    %c2 = arith.constant 2 : index
    %c0_7 = arith.constant 0 : index
    %c0_8 = arith.constant 0 : index
    %14 = vector.load %arg1[%c2, %c0_7, %c0_8] : memref<3x8x64xbf16, #tpu.memory_space<vmem>>, vector<1x8x64xbf16>
    %15 = vector.shape_cast %14 : vector<1x8x64xbf16> to vector<8x64xbf16>
    %cst_9 = arith.constant dense<0.000000e+00> : vector<64x64xf32>
    %16 = tpu.matmul %13, %15, %cst_9 {dimension_numbers = #tpu.dot_dimension_numbers<[1], [0], [0], [1], [0, 0, 1, 1], [], []>} : vector<64x8xbf16>, vector<8x64xbf16>, vector<64x64xf32> -> vector<64x64xf32>
    %17 = arith.addf %11, %16 : vector<64x64xf32>
    %c0_10 = arith.constant 0 : index
    %c0_11 = arith.constant 0 : index
    %18 = vector.load %arg2[%c0_10, %c0_11] : memref<1x64xf32, #tpu.memory_space<vmem>>, vector<1x64xf32>
    %19 = vector.broadcast %18 : vector<1x64xf32> to vector<64x64xf32>
    %20 = arith.addf %17, %19 : vector<64x64xf32>
    %cst_12 = arith.constant 0.000000e+00 : f32
    %21 = vector.broadcast %cst_12 : f32 to vector<64x64xf32>
    %22 = arith.maximumf %20, %21 : vector<64x64xf32>
    %23 = vector.shape_cast %22 : vector<64x64xf32> to vector<8x8x64xf32>
    %24 = vector.extract_strided_slice %23 {offsets = [0, 0, 0], sizes = [8, 4, 64], strides = [1, 1, 1]} : vector<8x8x64xf32> to vector<8x4x64xf32>
    %25 = vector.extract_strided_slice %23 {offsets = [0, 4, 0], sizes = [8, 4, 64], strides = [1, 1, 1]} : vector<8x8x64xf32> to vector<8x4x64xf32>
    %26 = arith.maximumf %24, %25 : vector<8x4x64xf32>
    %27 = vector.shape_cast %26 : vector<8x4x64xf32> to vector<32x64xf32>
    %28 = arith.truncf %27 : vector<32x64xf32> to vector<32x64xbf16>
    %c0_13 = arith.constant 0 : index
    %c0_14 = arith.constant 0 : index
    %29 = vector.load %arg3[%c0_13, %c0_14] : memref<64x512xbf16, #tpu.memory_space<vmem>>, vector<64x512xbf16>
    %cst_15 = arith.constant dense<0.000000e+00> : vector<32x512xf32>
    %30 = tpu.matmul %28, %29, %cst_15 {dimension_numbers = #tpu.dot_dimension_numbers<[1], [0], [0], [1], [0, 0, 1, 1], [], []>} : vector<32x64xbf16>, vector<64x512xbf16>, vector<32x512xf32> -> vector<32x512xf32>
    %c0_16 = arith.constant 0 : index
    %c0_17 = arith.constant 0 : index
    %31 = vector.load %arg4[%c0_16, %c0_17] : memref<1x512xf32, #tpu.memory_space<vmem>>, vector<1x512xf32>
    %32 = vector.broadcast %31 : vector<1x512xf32> to vector<32x512xf32>
    %33 = arith.addf %30, %32 : vector<32x512xf32>
    %c0_18 = arith.constant 0 : index
    %c0_19 = arith.constant 0 : index
    %34 = vector.load %arg12[%c0_18, %c0_19] : memref<32x512xf32, #tpu.memory_space<vmem>>, vector<32x512xf32>
    tpu.vector_store %arg12[%c0_18, %c0_19], %33 {strides = array<i32>} : memref<32x512xf32, #tpu.memory_space<vmem>>, vector<32x512xf32>,
    %c0_20 = arith.constant 0 : index
    %c0_21 = arith.constant 0 : index
    %35 = vector.load %arg5[%c0_20, %c0_21] : memref<128x1536xbf16, #tpu.memory_space<vmem>>, vector<128x1536xbf16>
    %c0_22 = arith.constant 0 : index
    %c0_23 = arith.constant 0 : index
    %36 = vector.load %arg6[%c0_22, %c0_23] : memref<1x512xf32, #tpu.memory_space<vmem>>, vector<1x512xf32>
    %cst_24 = arith.constant 0.000000e+00 : f32
    %37 = vector.broadcast %cst_24 : f32 to vector<4x128xf32>
    %cst_25 = arith.constant 0.000000e+00 : f32
    %38 = vector.broadcast %cst_25 : f32 to vector<4x128xf32>
    %cst_26 = arith.constant 0.000000e+00 : f32
    %39 = vector.broadcast %cst_26 : f32 to vector<4x128xf32>
    %cst_27 = arith.constant 0.000000e+00 : f32
    %40 = vector.broadcast %cst_27 : f32 to vector<4x128xf32>
    %41 = tpu.concatenate %37, %39 in 0 : vector<4x128xf32>, vector<4x128xf32> -> vector<8x128xf32>
    %42 = arith.truncf %41 : vector<8x128xf32> to vector<8x128xbf16>
    %cst_28 = arith.constant dense<0.000000e+00> : vector<8x1536xf32>
    %43 = tpu.matmul %42, %35, %cst_28 {dimension_numbers = #tpu.dot_dimension_numbers<[1], [0], [0], [1], [0, 0, 1, 1], [], []>} : vector<8x128xbf16>, vector<128x1536xbf16>, vector<8x1536xf32> -> vector<8x1536xf32>
    %c0_29 = arith.constant 0 : index
    %c0_30 = arith.constant 0 : index
    %44 = vector.load %arg12[%c0_29, %c0_30] : memref<32x512xf32, #tpu.memory_space<vmem>>, vector<4x512xf32>
    %45 = vector.extract_strided_slice %43 {offsets = [0, 0], sizes = [4, 512], strides = [1, 1]} : vector<8x1536xf32> to vector<4x512xf32>
    %46 = arith.addf %44, %45 : vector<4x512xf32>
    %47 = vector.extract_strided_slice %46 {offsets = [0, 0], sizes = [4, 384], strides = [1, 1]} : vector<4x512xf32> to vector<4x384xf32>
    %48 = arith.negf %47 : vector<4x384xf32>
    %49 = math.exp %48 : vector<4x384xf32>
    %cst_31 = arith.constant 1.000000e+00 : f32
    %50 = vector.broadcast %cst_31 : f32 to vector<4x384xf32>
    %51 = arith.addf %50, %49 : vector<4x384xf32>
    %52 = arith.divf %50, %51 : vector<4x384xf32>
    %53 = vector.extract_strided_slice %46 {offsets = [0, 384], sizes = [4, 128], strides = [1, 1]} : vector<4x512xf32> to vector<4x128xf32>
    %54 = math.tanh %53 : vector<4x128xf32>
    %55 = vector.extract_strided_slice %52 {offsets = [0, 128], sizes = [4, 128], strides = [1, 1]} : vector<4x384xf32> to vector<4x128xf32>
    %56 = arith.mulf %55, %38 : vector<4x128xf32>
    %57 = vector.extract_strided_slice %52 {offsets = [0, 0], sizes = [4, 128], strides = [1, 1]} : vector<4x384xf32> to vector<4x128xf32>
    %58 = arith.mulf %57, %54 : vector<4x128xf32>
    %59 = arith.addf %56, %58 : vector<4x128xf32>
    %60 = vector.extract_strided_slice %52 {offsets = [0, 256], sizes = [4, 128], strides = [1, 1]} : vector<4x384xf32> to vector<4x128xf32>
    %61 = math.tanh %59 : vector<4x128xf32>
    %62 = arith.mulf %60, %61 : vector<4x128xf32>
    %63 = tpu.concatenate %62, %39 in 0 : vector<4x128xf32>, vector<4x128xf32> -> vector<8x128xf32>
    %64 = arith.truncf %63 : vector<8x128xf32> to vector<8x128xbf16>
    %cst_32 = arith.constant dense<0.000000e+00> : vector<8x1536xf32>
    %65 = tpu.matmul %64, %35, %cst_32 {dimension_numbers = #tpu.dot_dimension_numbers<[1], [0], [0], [1], [0, 0, 1, 1], [], []>} : vector<8x128xbf16>, vector<128x1536xbf16>, vector<8x1536xf32> -> vector<8x1536xf32>
    %66 = vector.extract_strided_slice %65 {offsets = [0, 512], sizes = [4, 512], strides = [1, 1]} : vector<8x1536xf32> to vector<4x512xf32>
    %67 = vector.extract_strided_slice %65 {offsets = [4, 1024], sizes = [4, 512], strides = [1, 1]} : vector<8x1536xf32> to vector<4x512xf32>
    %68 = arith.addf %66, %67 : vector<4x512xf32>
    %69 = vector.broadcast %36 : vector<1x512xf32> to vector<4x512xf32>
    %70 = arith.addf %68, %69 : vector<4x512xf32>
    %71 = vector.extract_strided_slice %70 {offsets = [0, 0], sizes = [4, 384], strides = [1, 1]} : vector<4x512xf32> to vector<4x384xf32>
    %72 = arith.negf %71 : vector<4x384xf32>
    %73 = math.exp %72 : vector<4x384xf32>
    %cst_33 = arith.constant 1.000000e+00 : f32
    %74 = vector.broadcast %cst_33 : f32 to vector<4x384xf32>
    %75 = arith.addf %74, %73 : vector<4x384xf32>
    %76 = arith.divf %74, %75 : vector<4x384xf32>
    %77 = vector.extract_strided_slice %70 {offsets = [0, 384], sizes = [4, 128], strides = [1, 1]} : vector<4x512xf32> to vector<4x128xf32>
    %78 = math.tanh %77 : vector<4x128xf32>
    %79 = vector.extract_strided_slice %76 {offsets = [0, 128], sizes = [4, 128], strides = [1, 1]} : vector<4x384xf32> to vector<4x128xf32>
    %80 = arith.mulf %79, %40 : vector<4x128xf32>
    %81 = vector.extract_strided_slice %76 {offsets = [0, 0], sizes = [4, 128], strides = [1, 1]} : vector<4x384xf32> to vector<4x128xf32>
    %82 = arith.mulf %81, %78 : vector<4x128xf32>
    %83 = arith.addf %80, %82 : vector<4x128xf32>
    %84 = vector.extract_strided_slice %76 {offsets = [0, 256], sizes = [4, 128], strides = [1, 1]} : vector<4x384xf32> to vector<4x128xf32>
    %85 = math.tanh %83 : vector<4x128xf32>
    %86 = arith.mulf %84, %85 : vector<4x128xf32>
    %c0_34 = arith.constant 0 : index
    %c0_35 = arith.constant 0 : index
    %87 = vector.load %arg13[%c0_34, %c0_35] : memref<4x1024xf32, #tpu.memory_space<vmem>>, vector<4x128xf32>
    tpu.vector_store %arg13[%c0_34, %c0_35], %86 {strides = array<i32>} : memref<4x1024xf32, #tpu.memory_space<vmem>>, vector<4x128xf32>,
    %c4 = arith.constant 4 : index
    %c0_36 = arith.constant 0 : index
    %88 = vector.load %arg12[%c4, %c0_36] : memref<32x512xf32, #tpu.memory_space<vmem>>, vector<4x512xf32>
    %89 = vector.extract_strided_slice %65 {offsets = [0, 0], sizes = [4, 512], strides = [1, 1]} : vector<8x1536xf32> to vector<4x512xf32>
    %90 = arith.addf %88, %89 : vector<4x512xf32>
    %91 = vector.extract_strided_slice %90 {offsets = [0, 0], sizes = [4, 384], strides = [1, 1]} : vector<4x512xf32> to vector<4x384xf32>
    %92 = arith.negf %91 : vector<4x384xf32>
    %93 = math.exp %92 : vector<4x384xf32>
    %cst_37 = arith.constant 1.000000e+00 : f32
    %94 = vector.broadcast %cst_37 : f32 to vector<4x384xf32>
    %95 = arith.addf %94, %93 : vector<4x384xf32>
    %96 = arith.divf %94, %95 : vector<4x384xf32>
    %97 = vector.extract_strided_slice %90 {offsets = [0, 384], sizes = [4, 128], strides = [1, 1]} : vector<4x512xf32> to vector<4x128xf32>
    %98 = math.tanh %97 : vector<4x128xf32>
    %99 = vector.extract_strided_slice %96 {offsets = [0, 128], sizes = [4, 128], strides = [1, 1]} : vector<4x384xf32> to vector<4x128xf32>
    %100 = arith.mulf %99, %59 : vector<4x128xf32>
    %101 = vector.extract_strided_slice %96 {offsets = [0, 0], sizes = [4, 128], strides = [1, 1]} : vector<4x384xf32> to vector<4x128xf32>
    %102 = arith.mulf %101, %98 : vector<4x128xf32>
    %103 = arith.addf %100, %102 : vector<4x128xf32>
    %104 = vector.extract_strided_slice %96 {offsets = [0, 256], sizes = [4, 128], strides = [1, 1]} : vector<4x384xf32> to vector<4x128xf32>
    %105 = math.tanh %103 : vector<4x128xf32>
    %106 = arith.mulf %104, %105 : vector<4x128xf32>
    %107 = tpu.concatenate %106, %86 in 0 : vector<4x128xf32>, vector<4x128xf32> -> vector<8x128xf32>
    %108 = arith.truncf %107 : vector<8x128xf32> to vector<8x128xbf16>
    %cst_38 = arith.constant dense<0.000000e+00> : vector<8x1536xf32>
    %109 = tpu.matmul %108, %35, %cst_38 {dimension_numbers = #tpu.dot_dimension_numbers<[1], [0], [0], [1], [0, 0, 1, 1], [], []>} : vector<8x128xbf16>, vector<128x1536xbf16>, vector<8x1536xf32> -> vector<8x1536xf32>
    %110 = vector.extract_strided_slice %109 {offsets = [0, 512], sizes = [4, 512], strides = [1, 1]} : vector<8x1536xf32> to vector<4x512xf32>
    %111 = vector.extract_strided_slice %109 {offsets = [4, 1024], sizes = [4, 512], strides = [1, 1]} : vector<8x1536xf32> to vector<4x512xf32>
    %112 = arith.addf %110, %111 : vector<4x512xf32>
    %113 = vector.broadcast %36 : vector<1x512xf32> to vector<4x512xf32>
    %114 = arith.addf %112, %113 : vector<4x512xf32>
    %115 = vector.extract_strided_slice %114 {offsets = [0, 0], sizes = [4, 384], strides = [1, 1]} : vector<4x512xf32> to vector<4x384xf32>
    %116 = arith.negf %115 : vector<4x384xf32>
    %117 = math.exp %116 : vector<4x384xf32>
    %cst_39 = arith.constant 1.000000e+00 : f32
    %118 = vector.broadcast %cst_39 : f32 to vector<4x384xf32>
    %119 = arith.addf %118, %117 : vector<4x384xf32>
    %120 = arith.divf %118, %119 : vector<4x384xf32>
    %121 = vector.extract_strided_slice %114 {offsets = [0, 384], sizes = [4, 128], strides = [1, 1]} : vector<4x512xf32> to vector<4x128xf32>
    %122 = math.tanh %121 : vector<4x128xf32>
    %123 = vector.extract_strided_slice %120 {offsets = [0, 128], sizes = [4, 128], strides = [1, 1]} : vector<4x384xf32> to vector<4x128xf32>
    %124 = arith.mulf %123, %83 : vector<4x128xf32>
    %125 = vector.extract_strided_slice %120 {offsets = [0, 0], sizes = [4, 128], strides = [1, 1]} : vector<4x384xf32> to vector<4x128xf32>
    %126 = arith.mulf %125, %122 : vector<4x128xf32>
    %127 = arith.addf %124, %126 : vector<4x128xf32>
    %128 = vector.extract_strided_slice %120 {offsets = [0, 256], sizes = [4, 128], strides = [1, 1]} : vector<4x384xf32> to vector<4x128xf32>
    %129 = math.tanh %127 : vector<4x128xf32>
    %130 = arith.mulf %128, %129 : vector<4x128xf32>
    %c0_40 = arith.constant 0 : index
    %c128 = arith.constant 128 : index
    %131 = vector.load %arg13[%c0_40, %c128] : memref<4x1024xf32, #tpu.memory_space<vmem>>, vector<4x128xf32>
    tpu.vector_store %arg13[%c0_40, %c128], %130 {strides = array<i32>} : memref<4x1024xf32, #tpu.memory_space<vmem>>, vector<4x128xf32>,
    %c8 = arith.constant 8 : index
    %c0_41 = arith.constant 0 : index
    %132 = vector.load %arg12[%c8, %c0_41] : memref<32x512xf32, #tpu.memory_space<vmem>>, vector<4x512xf32>
    %133 = vector.extract_strided_slice %109 {offsets = [0, 0], sizes = [4, 512], strides = [1, 1]} : vector<8x1536xf32> to vector<4x512xf32>
    %134 = arith.addf %132, %133 : vector<4x512xf32>
    %135 = vector.extract_strided_slice %134 {offsets = [0, 0], sizes = [4, 384], strides = [1, 1]} : vector<4x512xf32> to vector<4x384xf32>
    %136 = arith.negf %135 : vector<4x384xf32>
    %137 = math.exp %136 : vector<4x384xf32>
    %cst_42 = arith.constant 1.000000e+00 : f32
    %138 = vector.broadcast %cst_42 : f32 to vector<4x384xf32>
    %139 = arith.addf %138, %137 : vector<4x384xf32>
    %140 = arith.divf %138, %139 : vector<4x384xf32>
    %141 = vector.extract_strided_slice %134 {offsets = [0, 384], sizes = [4, 128], strides = [1, 1]} : vector<4x512xf32> to vector<4x128xf32>
    %142 = math.tanh %141 : vector<4x128xf32>
    %143 = vector.extract_strided_slice %140 {offsets = [0, 128], sizes = [4, 128], strides = [1, 1]} : vector<4x384xf32> to vector<4x128xf32>
    %144 = arith.mulf %143, %103 : vector<4x128xf32>
    %145 = vector.extract_strided_slice %140 {offsets = [0, 0], sizes = [4, 128], strides = [1, 1]} : vector<4x384xf32> to vector<4x128xf32>
    %146 = arith.mulf %145, %142 : vector<4x128xf32>
    %147 = arith.addf %144, %146 : vector<4x128xf32>
    %148 = vector.extract_strided_slice %140 {offsets = [0, 256], sizes = [4, 128], strides = [1, 1]} : vector<4x384xf32> to vector<4x128xf32>
    %149 = math.tanh %147 : vector<4x128xf32>
    %150 = arith.mulf %148, %149 : vector<4x128xf32>
    %151 = tpu.concatenate %150, %130 in 0 : vector<4x128xf32>, vector<4x128xf32> -> vector<8x128xf32>
    %152 = arith.truncf %151 : vector<8x128xf32> to vector<8x128xbf16>
    %cst_43 = arith.constant dense<0.000000e+00> : vector<8x1536xf32>
    %153 = tpu.matmul %152, %35, %cst_43 {dimension_numbers = #tpu.dot_dimension_numbers<[1], [0], [0], [1], [0, 0, 1, 1], [], []>} : vector<8x128xbf16>, vector<128x1536xbf16>, vector<8x1536xf32> -> vector<8x1536xf32>
    %154 = vector.extract_strided_slice %153 {offsets = [0, 512], sizes = [4, 512], strides = [1, 1]} : vector<8x1536xf32> to vector<4x512xf32>
    %155 = vector.extract_strided_slice %153 {offsets = [4, 1024], sizes = [4, 512], strides = [1, 1]} : vector<8x1536xf32> to vector<4x512xf32>
    %156 = arith.addf %154, %155 : vector<4x512xf32>
    %157 = vector.broadcast %36 : vector<1x512xf32> to vector<4x512xf32>
    %158 = arith.addf %156, %157 : vector<4x512xf32>
    %159 = vector.extract_strided_slice %158 {offsets = [0, 0], sizes = [4, 384], strides = [1, 1]} : vector<4x512xf32> to vector<4x384xf32>
    %160 = arith.negf %159 : vector<4x384xf32>
    %161 = math.exp %160 : vector<4x384xf32>
    %cst_44 = arith.constant 1.000000e+00 : f32
    %162 = vector.broadcast %cst_44 : f32 to vector<4x384xf32>
    %163 = arith.addf %162, %161 : vector<4x384xf32>
    %164 = arith.divf %162, %163 : vector<4x384xf32>
    %165 = vector.extract_strided_slice %158 {offsets = [0, 384], sizes = [4, 128], strides = [1, 1]} : vector<4x512xf32> to vector<4x128xf32>
    %166 = math.tanh %165 : vector<4x128xf32>
    %167 = vector.extract_strided_slice %164 {offsets = [0, 128], sizes = [4, 128], strides = [1, 1]} : vector<4x384xf32> to vector<4x128xf32>
    %168 = arith.mulf %167, %127 : vector<4x128xf32>
    %169 = vector.extract_strided_slice %164 {offsets = [0, 0], sizes = [4, 128], strides = [1, 1]} : vector<4x384xf32> to vector<4x128xf32>
    %170 = arith.mulf %169, %166 : vector<4x128xf32>
    %171 = arith.addf %168, %170 : vector<4x128xf32>
    %172 = vector.extract_strided_slice %164 {offsets = [0, 256], sizes = [4, 128], strides = [1, 1]} : vector<4x384xf32> to vector<4x128xf32>
    %173 = math.tanh %171 : vector<4x128xf32>
    %174 = arith.mulf %172, %173 : vector<4x128xf32>
    %c0_45 = arith.constant 0 : index
    %c256 = arith.constant 256 : index
    %175 = vector.load %arg13[%c0_45, %c256] : memref<4x1024xf32, #tpu.memory_space<vmem>>, vector<4x128xf32>
    tpu.vector_store %arg13[%c0_45, %c256], %174 {strides = array<i32>} : memref<4x1024xf32, #tpu.memory_space<vmem>>, vector<4x128xf32>,
    %c12 = arith.constant 12 : index
    %c0_46 = arith.constant 0 : index
    %176 = vector.load %arg12[%c12, %c0_46] : memref<32x512xf32, #tpu.memory_space<vmem>>, vector<4x512xf32>
    %177 = vector.extract_strided_slice %153 {offsets = [0, 0], sizes = [4, 512], strides = [1, 1]} : vector<8x1536xf32> to vector<4x512xf32>
    %178 = arith.addf %176, %177 : vector<4x512xf32>
    %179 = vector.extract_strided_slice %178 {offsets = [0, 0], sizes = [4, 384], strides = [1, 1]} : vector<4x512xf32> to vector<4x384xf32>
    %180 = arith.negf %179 : vector<4x384xf32>
    %181 = math.exp %180 : vector<4x384xf32>
    %cst_47 = arith.constant 1.000000e+00 : f32
    %182 = vector.broadcast %cst_47 : f32 to vector<4x384xf32>
    %183 = arith.addf %182, %181 : vector<4x384xf32>
    %184 = arith.divf %182, %183 : vector<4x384xf32>
    %185 = vector.extract_strided_slice %178 {offsets = [0, 384], sizes = [4, 128], strides = [1, 1]} : vector<4x512xf32> to vector<4x128xf32>
    %186 = math.tanh %185 : vector<4x128xf32>
    %187 = vector.extract_strided_slice %184 {offsets = [0, 128], sizes = [4, 128], strides = [1, 1]} : vector<4x384xf32> to vector<4x128xf32>
    %188 = arith.mulf %187, %147 : vector<4x128xf32>
    %189 = vector.extract_strided_slice %184 {offsets = [0, 0], sizes = [4, 128], strides = [1, 1]} : vector<4x384xf32> to vector<4x128xf32>
    %190 = arith.mulf %189, %186 : vector<4x128xf32>
    %191 = arith.addf %188, %190 : vector<4x128xf32>
    %192 = vector.extract_strided_slice %184 {offsets = [0, 256], sizes = [4, 128], strides = [1, 1]} : vector<4x384xf32> to vector<4x128xf32>
    %193 = math.tanh %191 : vector<4x128xf32>
    %194 = arith.mulf %192, %193 : vector<4x128xf32>
    %195 = tpu.concatenate %194, %174 in 0 : vector<4x128xf32>, vector<4x128xf32> -> vector<8x128xf32>
    %196 = arith.truncf %195 : vector<8x128xf32> to vector<8x128xbf16>
    %cst_48 = arith.constant dense<0.000000e+00> : vector<8x1536xf32>
    %197 = tpu.matmul %196, %35, %cst_48 {dimension_numbers = #tpu.dot_dimension_numbers<[1], [0], [0], [1], [0, 0, 1, 1], [], []>} : vector<8x128xbf16>, vector<128x1536xbf16>, vector<8x1536xf32> -> vector<8x1536xf32>
    %198 = vector.extract_strided_slice %197 {offsets = [0, 512], sizes = [4, 512], strides = [1, 1]} : vector<8x1536xf32> to vector<4x512xf32>
    %199 = vector.extract_strided_slice %197 {offsets = [4, 1024], sizes = [4, 512], strides = [1, 1]} : vector<8x1536xf32> to vector<4x512xf32>
    %200 = arith.addf %198, %199 : vector<4x512xf32>
    %201 = vector.broadcast %36 : vector<1x512xf32> to vector<4x512xf32>
    %202 = arith.addf %200, %201 : vector<4x512xf32>
    %203 = vector.extract_strided_slice %202 {offsets = [0, 0], sizes = [4, 384], strides = [1, 1]} : vector<4x512xf32> to vector<4x384xf32>
    %204 = arith.negf %203 : vector<4x384xf32>
    %205 = math.exp %204 : vector<4x384xf32>
    %cst_49 = arith.constant 1.000000e+00 : f32
    %206 = vector.broadcast %cst_49 : f32 to vector<4x384xf32>
    %207 = arith.addf %206, %205 : vector<4x384xf32>
    %208 = arith.divf %206, %207 : vector<4x384xf32>
    %209 = vector.extract_strided_slice %202 {offsets = [0, 384], sizes = [4, 128], strides = [1, 1]} : vector<4x512xf32> to vector<4x128xf32>
    %210 = math.tanh %209 : vector<4x128xf32>
    %211 = vector.extract_strided_slice %208 {offsets = [0, 128], sizes = [4, 128], strides = [1, 1]} : vector<4x384xf32> to vector<4x128xf32>
    %212 = arith.mulf %211, %171 : vector<4x128xf32>
    %213 = vector.extract_strided_slice %208 {offsets = [0, 0], sizes = [4, 128], strides = [1, 1]} : vector<4x384xf32> to vector<4x128xf32>
    %214 = arith.mulf %213, %210 : vector<4x128xf32>
    %215 = arith.addf %212, %214 : vector<4x128xf32>
    %216 = vector.extract_strided_slice %208 {offsets = [0, 256], sizes = [4, 128], strides = [1, 1]} : vector<4x384xf32> to vector<4x128xf32>
    %217 = math.tanh %215 : vector<4x128xf32>
    %218 = arith.mulf %216, %217 : vector<4x128xf32>
    %c0_50 = arith.constant 0 : index
    %c384 = arith.constant 384 : index
    %219 = vector.load %arg13[%c0_50, %c384] : memref<4x1024xf32, #tpu.memory_space<vmem>>, vector<4x128xf32>
    tpu.vector_store %arg13[%c0_50, %c384], %218 {strides = array<i32>} : memref<4x1024xf32, #tpu.memory_space<vmem>>, vector<4x128xf32>,
    %c16 = arith.constant 16 : index
    %c0_51 = arith.constant 0 : index
    %220 = vector.load %arg12[%c16, %c0_51] : memref<32x512xf32, #tpu.memory_space<vmem>>, vector<4x512xf32>
    %221 = vector.extract_strided_slice %197 {offsets = [0, 0], sizes = [4, 512], strides = [1, 1]} : vector<8x1536xf32> to vector<4x512xf32>
    %222 = arith.addf %220, %221 : vector<4x512xf32>
    %223 = vector.extract_strided_slice %222 {offsets = [0, 0], sizes = [4, 384], strides = [1, 1]} : vector<4x512xf32> to vector<4x384xf32>
    %224 = arith.negf %223 : vector<4x384xf32>
    %225 = math.exp %224 : vector<4x384xf32>
    %cst_52 = arith.constant 1.000000e+00 : f32
    %226 = vector.broadcast %cst_52 : f32 to vector<4x384xf32>
    %227 = arith.addf %226, %225 : vector<4x384xf32>
    %228 = arith.divf %226, %227 : vector<4x384xf32>
    %229 = vector.extract_strided_slice %222 {offsets = [0, 384], sizes = [4, 128], strides = [1, 1]} : vector<4x512xf32> to vector<4x128xf32>
    %230 = math.tanh %229 : vector<4x128xf32>
    %231 = vector.extract_strided_slice %228 {offsets = [0, 128], sizes = [4, 128], strides = [1, 1]} : vector<4x384xf32> to vector<4x128xf32>
    %232 = arith.mulf %231, %191 : vector<4x128xf32>
    %233 = vector.extract_strided_slice %228 {offsets = [0, 0], sizes = [4, 128], strides = [1, 1]} : vector<4x384xf32> to vector<4x128xf32>
    %234 = arith.mulf %233, %230 : vector<4x128xf32>
    %235 = arith.addf %232, %234 : vector<4x128xf32>
    %236 = vector.extract_strided_slice %228 {offsets = [0, 256], sizes = [4, 128], strides = [1, 1]} : vector<4x384xf32> to vector<4x128xf32>
    %237 = math.tanh %235 : vector<4x128xf32>
    %238 = arith.mulf %236, %237 : vector<4x128xf32>
    %239 = tpu.concatenate %238, %218 in 0 : vector<4x128xf32>, vector<4x128xf32> -> vector<8x128xf32>
    %240 = arith.truncf %239 : vector<8x128xf32> to vector<8x128xbf16>
    %cst_53 = arith.constant dense<0.000000e+00> : vector<8x1536xf32>
    %241 = tpu.matmul %240, %35, %cst_53 {dimension_numbers = #tpu.dot_dimension_numbers<[1], [0], [0], [1], [0, 0, 1, 1], [], []>} : vector<8x128xbf16>, vector<128x1536xbf16>, vector<8x1536xf32> -> vector<8x1536xf32>
    %242 = vector.extract_strided_slice %241 {offsets = [0, 512], sizes = [4, 512], strides = [1, 1]} : vector<8x1536xf32> to vector<4x512xf32>
    %243 = vector.extract_strided_slice %241 {offsets = [4, 1024], sizes = [4, 512], strides = [1, 1]} : vector<8x1536xf32> to vector<4x512xf32>
    %244 = arith.addf %242, %243 : vector<4x512xf32>
    %245 = vector.broadcast %36 : vector<1x512xf32> to vector<4x512xf32>
    %246 = arith.addf %244, %245 : vector<4x512xf32>
    %247 = vector.extract_strided_slice %246 {offsets = [0, 0], sizes = [4, 384], strides = [1, 1]} : vector<4x512xf32> to vector<4x384xf32>
    %248 = arith.negf %247 : vector<4x384xf32>
    %249 = math.exp %248 : vector<4x384xf32>
    %cst_54 = arith.constant 1.000000e+00 : f32
    %250 = vector.broadcast %cst_54 : f32 to vector<4x384xf32>
    %251 = arith.addf %250, %249 : vector<4x384xf32>
    %252 = arith.divf %250, %251 : vector<4x384xf32>
    %253 = vector.extract_strided_slice %246 {offsets = [0, 384], sizes = [4, 128], strides = [1, 1]} : vector<4x512xf32> to vector<4x128xf32>
    %254 = math.tanh %253 : vector<4x128xf32>
    %255 = vector.extract_strided_slice %252 {offsets = [0, 128], sizes = [4, 128], strides = [1, 1]} : vector<4x384xf32> to vector<4x128xf32>
    %256 = arith.mulf %255, %215 : vector<4x128xf32>
    %257 = vector.extract_strided_slice %252 {offsets = [0, 0], sizes = [4, 128], strides = [1, 1]} : vector<4x384xf32> to vector<4x128xf32>
    %258 = arith.mulf %257, %254 : vector<4x128xf32>
    %259 = arith.addf %256, %258 : vector<4x128xf32>
    %260 = vector.extract_strided_slice %252 {offsets = [0, 256], sizes = [4, 128], strides = [1, 1]} : vector<4x384xf32> to vector<4x128xf32>
    %261 = math.tanh %259 : vector<4x128xf32>
    %262 = arith.mulf %260, %261 : vector<4x128xf32>
    %c0_55 = arith.constant 0 : index
    %c512 = arith.constant 512 : index
    %263 = vector.load %arg13[%c0_55, %c512] : memref<4x1024xf32, #tpu.memory_space<vmem>>, vector<4x128xf32>
    tpu.vector_store %arg13[%c0_55, %c512], %262 {strides = array<i32>} : memref<4x1024xf32, #tpu.memory_space<vmem>>, vector<4x128xf32>,
    %c20 = arith.constant 20 : index
    %c0_56 = arith.constant 0 : index
    %264 = vector.load %arg12[%c20, %c0_56] : memref<32x512xf32, #tpu.memory_space<vmem>>, vector<4x512xf32>
    %265 = vector.extract_strided_slice %241 {offsets = [0, 0], sizes = [4, 512], strides = [1, 1]} : vector<8x1536xf32> to vector<4x512xf32>
    %266 = arith.addf %264, %265 : vector<4x512xf32>
    %267 = vector.extract_strided_slice %266 {offsets = [0, 0], sizes = [4, 384], strides = [1, 1]} : vector<4x512xf32> to vector<4x384xf32>
    %268 = arith.negf %267 : vector<4x384xf32>
    %269 = math.exp %268 : vector<4x384xf32>
    %cst_57 = arith.constant 1.000000e+00 : f32
    %270 = vector.broadcast %cst_57 : f32 to vector<4x384xf32>
    %271 = arith.addf %270, %269 : vector<4x384xf32>
    %272 = arith.divf %270, %271 : vector<4x384xf32>
    %273 = vector.extract_strided_slice %266 {offsets = [0, 384], sizes = [4, 128], strides = [1, 1]} : vector<4x512xf32> to vector<4x128xf32>
    %274 = math.tanh %273 : vector<4x128xf32>
    %275 = vector.extract_strided_slice %272 {offsets = [0, 128], sizes = [4, 128], strides = [1, 1]} : vector<4x384xf32> to vector<4x128xf32>
    %276 = arith.mulf %275, %235 : vector<4x128xf32>
    %277 = vector.extract_strided_slice %272 {offsets = [0, 0], sizes = [4, 128], strides = [1, 1]} : vector<4x384xf32> to vector<4x128xf32>
    %278 = arith.mulf %277, %274 : vector<4x128xf32>
    %279 = arith.addf %276, %278 : vector<4x128xf32>
    %280 = vector.extract_strided_slice %272 {offsets = [0, 256], sizes = [4, 128], strides = [1, 1]} : vector<4x384xf32> to vector<4x128xf32>
    %281 = math.tanh %279 : vector<4x128xf32>
    %282 = arith.mulf %280, %281 : vector<4x128xf32>
    %283 = tpu.concatenate %282, %262 in 0 : vector<4x128xf32>, vector<4x128xf32> -> vector<8x128xf32>
    %284 = arith.truncf %283 : vector<8x128xf32> to vector<8x128xbf16>
    %cst_58 = arith.constant dense<0.000000e+00> : vector<8x1536xf32>
    %285 = tpu.matmul %284, %35, %cst_58 {dimension_numbers = #tpu.dot_dimension_numbers<[1], [0], [0], [1], [0, 0, 1, 1], [], []>} : vector<8x128xbf16>, vector<128x1536xbf16>, vector<8x1536xf32> -> vector<8x1536xf32>
    %286 = vector.extract_strided_slice %285 {offsets = [0, 512], sizes = [4, 512], strides = [1, 1]} : vector<8x1536xf32> to vector<4x512xf32>
    %287 = vector.extract_strided_slice %285 {offsets = [4, 1024], sizes = [4, 512], strides = [1, 1]} : vector<8x1536xf32> to vector<4x512xf32>
    %288 = arith.addf %286, %287 : vector<4x512xf32>
    %289 = vector.broadcast %36 : vector<1x512xf32> to vector<4x512xf32>
    %290 = arith.addf %288, %289 : vector<4x512xf32>
    %291 = vector.extract_strided_slice %290 {offsets = [0, 0], sizes = [4, 384], strides = [1, 1]} : vector<4x512xf32> to vector<4x384xf32>
    %292 = arith.negf %291 : vector<4x384xf32>
    %293 = math.exp %292 : vector<4x384xf32>
    %cst_59 = arith.constant 1.000000e+00 : f32
    %294 = vector.broadcast %cst_59 : f32 to vector<4x384xf32>
    %295 = arith.addf %294, %293 : vector<4x384xf32>
    %296 = arith.divf %294, %295 : vector<4x384xf32>
    %297 = vector.extract_strided_slice %290 {offsets = [0, 384], sizes = [4, 128], strides = [1, 1]} : vector<4x512xf32> to vector<4x128xf32>
    %298 = math.tanh %297 : vector<4x128xf32>
    %299 = vector.extract_strided_slice %296 {offsets = [0, 128], sizes = [4, 128], strides = [1, 1]} : vector<4x384xf32> to vector<4x128xf32>
    %300 = arith.mulf %299, %259 : vector<4x128xf32>
    %301 = vector.extract_strided_slice %296 {offsets = [0, 0], sizes = [4, 128], strides = [1, 1]} : vector<4x384xf32> to vector<4x128xf32>
    %302 = arith.mulf %301, %298 : vector<4x128xf32>
    %303 = arith.addf %300, %302 : vector<4x128xf32>
    %304 = vector.extract_strided_slice %296 {offsets = [0, 256], sizes = [4, 128], strides = [1, 1]} : vector<4x384xf32> to vector<4x128xf32>
    %305 = math.tanh %303 : vector<4x128xf32>
    %306 = arith.mulf %304, %305 : vector<4x128xf32>
    %c0_60 = arith.constant 0 : index
    %c640 = arith.constant 640 : index
    %307 = vector.load %arg13[%c0_60, %c640] : memref<4x1024xf32, #tpu.memory_space<vmem>>, vector<4x128xf32>
    tpu.vector_store %arg13[%c0_60, %c640], %306 {strides = array<i32>} : memref<4x1024xf32, #tpu.memory_space<vmem>>, vector<4x128xf32>,
    %c24 = arith.constant 24 : index
    %c0_61 = arith.constant 0 : index
    %308 = vector.load %arg12[%c24, %c0_61] : memref<32x512xf32, #tpu.memory_space<vmem>>, vector<4x512xf32>
    %309 = vector.extract_strided_slice %285 {offsets = [0, 0], sizes = [4, 512], strides = [1, 1]} : vector<8x1536xf32> to vector<4x512xf32>
    %310 = arith.addf %308, %309 : vector<4x512xf32>
    %311 = vector.extract_strided_slice %310 {offsets = [0, 0], sizes = [4, 384], strides = [1, 1]} : vector<4x512xf32> to vector<4x384xf32>
    %312 = arith.negf %311 : vector<4x384xf32>
    %313 = math.exp %312 : vector<4x384xf32>
    %cst_62 = arith.constant 1.000000e+00 : f32
    %314 = vector.broadcast %cst_62 : f32 to vector<4x384xf32>
    %315 = arith.addf %314, %313 : vector<4x384xf32>
    %316 = arith.divf %314, %315 : vector<4x384xf32>
    %317 = vector.extract_strided_slice %310 {offsets = [0, 384], sizes = [4, 128], strides = [1, 1]} : vector<4x512xf32> to vector<4x128xf32>
    %318 = math.tanh %317 : vector<4x128xf32>
    %319 = vector.extract_strided_slice %316 {offsets = [0, 128], sizes = [4, 128], strides = [1, 1]} : vector<4x384xf32> to vector<4x128xf32>
    %320 = arith.mulf %319, %279 : vector<4x128xf32>
    %321 = vector.extract_strided_slice %316 {offsets = [0, 0], sizes = [4, 128], strides = [1, 1]} : vector<4x384xf32> to vector<4x128xf32>
    %322 = arith.mulf %321, %318 : vector<4x128xf32>
    %323 = arith.addf %320, %322 : vector<4x128xf32>
    %324 = vector.extract_strided_slice %316 {offsets = [0, 256], sizes = [4, 128], strides = [1, 1]} : vector<4x384xf32> to vector<4x128xf32>
    %325 = math.tanh %323 : vector<4x128xf32>
    %326 = arith.mulf %324, %325 : vector<4x128xf32>
    %327 = tpu.concatenate %326, %306 in 0 : vector<4x128xf32>, vector<4x128xf32> -> vector<8x128xf32>
    %328 = arith.truncf %327 : vector<8x128xf32> to vector<8x128xbf16>
    %cst_63 = arith.constant dense<0.000000e+00> : vector<8x1536xf32>
    %329 = tpu.matmul %328, %35, %cst_63 {dimension_numbers = #tpu.dot_dimension_numbers<[1], [0], [0], [1], [0, 0, 1, 1], [], []>} : vector<8x128xbf16>, vector<128x1536xbf16>, vector<8x1536xf32> -> vector<8x1536xf32>
    %330 = vector.extract_strided_slice %329 {offsets = [0, 512], sizes = [4, 512], strides = [1, 1]} : vector<8x1536xf32> to vector<4x512xf32>
    %331 = vector.extract_strided_slice %329 {offsets = [4, 1024], sizes = [4, 512], strides = [1, 1]} : vector<8x1536xf32> to vector<4x512xf32>
    %332 = arith.addf %330, %331 : vector<4x512xf32>
    %333 = vector.broadcast %36 : vector<1x512xf32> to vector<4x512xf32>
    %334 = arith.addf %332, %333 : vector<4x512xf32>
    %335 = vector.extract_strided_slice %334 {offsets = [0, 0], sizes = [4, 384], strides = [1, 1]} : vector<4x512xf32> to vector<4x384xf32>
    %336 = arith.negf %335 : vector<4x384xf32>
    %337 = math.exp %336 : vector<4x384xf32>
    %cst_64 = arith.constant 1.000000e+00 : f32
    %338 = vector.broadcast %cst_64 : f32 to vector<4x384xf32>
    %339 = arith.addf %338, %337 : vector<4x384xf32>
    %340 = arith.divf %338, %339 : vector<4x384xf32>
    %341 = vector.extract_strided_slice %334 {offsets = [0, 384], sizes = [4, 128], strides = [1, 1]} : vector<4x512xf32> to vector<4x128xf32>
    %342 = math.tanh %341 : vector<4x128xf32>
    %343 = vector.extract_strided_slice %340 {offsets = [0, 128], sizes = [4, 128], strides = [1, 1]} : vector<4x384xf32> to vector<4x128xf32>
    %344 = arith.mulf %343, %303 : vector<4x128xf32>
    %345 = vector.extract_strided_slice %340 {offsets = [0, 0], sizes = [4, 128], strides = [1, 1]} : vector<4x384xf32> to vector<4x128xf32>
    %346 = arith.mulf %345, %342 : vector<4x128xf32>
    %347 = arith.addf %344, %346 : vector<4x128xf32>
    %348 = vector.extract_strided_slice %340 {offsets = [0, 256], sizes = [4, 128], strides = [1, 1]} : vector<4x384xf32> to vector<4x128xf32>
    %349 = math.tanh %347 : vector<4x128xf32>
    %350 = arith.mulf %348, %349 : vector<4x128xf32>
    %c0_65 = arith.constant 0 : index
    %c768 = arith.constant 768 : index
    %351 = vector.load %arg13[%c0_65, %c768] : memref<4x1024xf32, #tpu.memory_space<vmem>>, vector<4x128xf32>
    tpu.vector_store %arg13[%c0_65, %c768], %350 {strides = array<i32>} : memref<4x1024xf32, #tpu.memory_space<vmem>>, vector<4x128xf32>,
    %c28 = arith.constant 28 : index
    %c0_66 = arith.constant 0 : index
    %352 = vector.load %arg12[%c28, %c0_66] : memref<32x512xf32, #tpu.memory_space<vmem>>, vector<4x512xf32>
    %353 = vector.extract_strided_slice %329 {offsets = [0, 0], sizes = [4, 512], strides = [1, 1]} : vector<8x1536xf32> to vector<4x512xf32>
    %354 = arith.addf %352, %353 : vector<4x512xf32>
    %355 = vector.extract_strided_slice %354 {offsets = [0, 0], sizes = [4, 384], strides = [1, 1]} : vector<4x512xf32> to vector<4x384xf32>
    %356 = arith.negf %355 : vector<4x384xf32>
    %357 = math.exp %356 : vector<4x384xf32>
    %cst_67 = arith.constant 1.000000e+00 : f32
    %358 = vector.broadcast %cst_67 : f32 to vector<4x384xf32>
    %359 = arith.addf %358, %357 : vector<4x384xf32>
    %360 = arith.divf %358, %359 : vector<4x384xf32>
    %361 = vector.extract_strided_slice %354 {offsets = [0, 384], sizes = [4, 128], strides = [1, 1]} : vector<4x512xf32> to vector<4x128xf32>
    %362 = math.tanh %361 : vector<4x128xf32>
    %363 = vector.extract_strided_slice %360 {offsets = [0, 128], sizes = [4, 128], strides = [1, 1]} : vector<4x384xf32> to vector<4x128xf32>
    %364 = arith.mulf %363, %323 : vector<4x128xf32>
    %365 = vector.extract_strided_slice %360 {offsets = [0, 0], sizes = [4, 128], strides = [1, 1]} : vector<4x384xf32> to vector<4x128xf32>
    %366 = arith.mulf %365, %362 : vector<4x128xf32>
    %367 = arith.addf %364, %366 : vector<4x128xf32>
    %368 = vector.extract_strided_slice %360 {offsets = [0, 256], sizes = [4, 128], strides = [1, 1]} : vector<4x384xf32> to vector<4x128xf32>
    %369 = math.tanh %367 : vector<4x128xf32>
    %370 = arith.mulf %368, %369 : vector<4x128xf32>
    %371 = tpu.concatenate %370, %350 in 0 : vector<4x128xf32>, vector<4x128xf32> -> vector<8x128xf32>
    %372 = arith.truncf %371 : vector<8x128xf32> to vector<8x128xbf16>
    %cst_68 = arith.constant dense<0.000000e+00> : vector<8x1536xf32>
    %373 = tpu.matmul %372, %35, %cst_68 {dimension_numbers = #tpu.dot_dimension_numbers<[1], [0], [0], [1], [0, 0, 1, 1], [], []>} : vector<8x128xbf16>, vector<128x1536xbf16>, vector<8x1536xf32> -> vector<8x1536xf32>
    %374 = vector.extract_strided_slice %373 {offsets = [0, 512], sizes = [4, 512], strides = [1, 1]} : vector<8x1536xf32> to vector<4x512xf32>
    %375 = vector.extract_strided_slice %373 {offsets = [4, 1024], sizes = [4, 512], strides = [1, 1]} : vector<8x1536xf32> to vector<4x512xf32>
    %376 = arith.addf %374, %375 : vector<4x512xf32>
    %377 = vector.broadcast %36 : vector<1x512xf32> to vector<4x512xf32>
    %378 = arith.addf %376, %377 : vector<4x512xf32>
    %379 = vector.extract_strided_slice %378 {offsets = [0, 0], sizes = [4, 384], strides = [1, 1]} : vector<4x512xf32> to vector<4x384xf32>
    %380 = arith.negf %379 : vector<4x384xf32>
    %381 = math.exp %380 : vector<4x384xf32>
    %cst_69 = arith.constant 1.000000e+00 : f32
    %382 = vector.broadcast %cst_69 : f32 to vector<4x384xf32>
    %383 = arith.addf %382, %381 : vector<4x384xf32>
    %384 = arith.divf %382, %383 : vector<4x384xf32>
    %385 = vector.extract_strided_slice %378 {offsets = [0, 384], sizes = [4, 128], strides = [1, 1]} : vector<4x512xf32> to vector<4x128xf32>
    %386 = math.tanh %385 : vector<4x128xf32>
    %387 = vector.extract_strided_slice %384 {offsets = [0, 128], sizes = [4, 128], strides = [1, 1]} : vector<4x384xf32> to vector<4x128xf32>
    %388 = arith.mulf %387, %347 : vector<4x128xf32>
    %389 = vector.extract_strided_slice %384 {offsets = [0, 0], sizes = [4, 128], strides = [1, 1]} : vector<4x384xf32> to vector<4x128xf32>
    %390 = arith.mulf %389, %386 : vector<4x128xf32>
    %391 = arith.addf %388, %390 : vector<4x128xf32>
    %392 = vector.extract_strided_slice %384 {offsets = [0, 256], sizes = [4, 128], strides = [1, 1]} : vector<4x384xf32> to vector<4x128xf32>
    %393 = math.tanh %391 : vector<4x128xf32>
    %394 = arith.mulf %392, %393 : vector<4x128xf32>
    %c0_70 = arith.constant 0 : index
    %c896 = arith.constant 896 : index
    %395 = vector.load %arg13[%c0_70, %c896] : memref<4x1024xf32, #tpu.memory_space<vmem>>, vector<4x128xf32>
    tpu.vector_store %arg13[%c0_70, %c896], %394 {strides = array<i32>} : memref<4x1024xf32, #tpu.memory_space<vmem>>, vector<4x128xf32>,
    %c0_71 = arith.constant 0 : index
    %c0_72 = arith.constant 0 : index
    %396 = vector.load %arg13[%c0_71, %c0_72] : memref<4x1024xf32, #tpu.memory_space<vmem>>, vector<4x1024xf32>
    %397 = arith.truncf %396 : vector<4x1024xf32> to vector<4x1024xbf16>
    %c0_73 = arith.constant 0 : index
    %c0_74 = arith.constant 0 : index
    %398 = vector.load %arg7[%c0_73, %c0_74] : memref<1024x256xbf16, #tpu.memory_space<vmem>>, vector<1024x256xbf16>
    %cst_75 = arith.constant dense<0.000000e+00> : vector<4x256xf32>
    %399 = tpu.matmul %397, %398, %cst_75 {dimension_numbers = #tpu.dot_dimension_numbers<[1], [0], [0], [1], [0, 0, 1, 1], [], []>} : vector<4x1024xbf16>, vector<1024x256xbf16>, vector<4x256xf32> -> vector<4x256xf32>
    %c0_76 = arith.constant 0 : index
    %c0_77 = arith.constant 0 : index
    %400 = vector.load %arg8[%c0_76, %c0_77] : memref<1x256xf32, #tpu.memory_space<vmem>>, vector<1x256xf32>
    %401 = vector.broadcast %400 : vector<1x256xf32> to vector<4x256xf32>
    %402 = arith.addf %399, %401 : vector<4x256xf32>
    %cst_78 = arith.constant 0.000000e+00 : f32
    %403 = vector.broadcast %cst_78 : f32 to vector<4x256xf32>
    %404 = arith.maximumf %402, %403 : vector<4x256xf32>
    %405 = arith.truncf %404 : vector<4x256xf32> to vector<4x256xbf16>
    %c0_79 = arith.constant 0 : index
    %c0_80 = arith.constant 0 : index
    %406 = vector.load %arg9[%c0_79, %c0_80] : memref<256x4xbf16, #tpu.memory_space<vmem>>, vector<256x4xbf16>
    %cst_81 = arith.constant dense<0.000000e+00> : vector<4x4xf32>
    %407 = tpu.matmul %405, %406, %cst_81 {dimension_numbers = #tpu.dot_dimension_numbers<[1], [0], [0], [1], [0, 0, 1, 1], [], []>} : vector<4x256xbf16>, vector<256x4xbf16>, vector<4x4xf32> -> vector<4x4xf32>
    %c0_82 = arith.constant 0 : index
    %c0_83 = arith.constant 0 : index
    %408 = vector.load %arg10[%c0_82, %c0_83] : memref<1x4xf32, #tpu.memory_space<vmem>>, vector<1x4xf32>
    %409 = vector.broadcast %408 : vector<1x4xf32> to vector<4x4xf32>
    %410 = arith.addf %407, %409 : vector<4x4xf32>
    %c0_84 = arith.constant 0 : index
    %c0_85 = arith.constant 0 : index
    %411 = vector.load %arg11[%c0_84, %c0_85] : memref<4x4xf32, #tpu.memory_space<vmem>>, vector<4x4xf32>
    tpu.vector_store %arg11[%c0_84, %c0_85], %410 {strides = array<i32>} : memref<4x4xf32, #tpu.memory_space<vmem>>, vector<4x4xf32>,
    return
  }
}

</mosaic_0001>

<bundles_post_ra>
// kernel: temporal_conv_lstm_forward.1
= control target key start
LH: loop header
LB: loop body
LE: loop exit
PB: predicated region body
PF: predicated region fallthrough
CT: control target
= control target key end

     0   :  { %vm85_vm0 = vcmask 1043456   ;;  %vm72_vm1 = vcmask 64512   ;;  %vm62_vm2 = vcmask 1045504   ;;  %s9479_s0 = inlined_call_operand.vmem [shape: f32[72,8], index: 0, kind: input, shape index: {}]   ;;  %s9480_s1 = inlined_call_operand.vmem [shape: bf16[3,8,64], index: 1, kind: input, shape index: {}]   ;;  %s9481_s2 = inlined_call_operand.vmem [shape: f32[1,64], index: 2, kind: input, shape index: {}]   ;;  %s9482_s3 = inlined_call_operand.vmem [shape: bf16[64,512], index: 3, kind: input, shape index: {}]   ;;  %s9483_s4 = inlined_call_operand.vmem [shape: f32[1,512], index: 4, kind: input, shape index: {}]   ;;  %s9484_s5 = inlined_call_operand.vmem [shape: bf16[128,1536], index: 5, kind: input, shape index: {}]   ;;  %s9485_s6 = inlined_call_operand.vmem [shape: f32[1,512], index: 6, kind: input, shape index: {}]   ;;  %s9486_s7 = inlined_call_operand.vmem [shape: bf16[1024,256], index: 7, kind: input, shape index: {}]   ;;  %s9487_s8 = inlined_call_operand.vmem [shape: f32[1,256], index: 8, kind: input, shape index: {}]   ;;  %s9488_s9 = inlined_call_operand.vmem [shape: bf16[256,4], index: 9, kind: input, shape index: {}]   ;;  %s9489_s10 = inlined_call_operand.vmem [shape: f32[1,4], index: 10, kind: input, shape index: {}]   ;;  %s9490_s11 = inlined_call_operand.hbm [shape: f32[4,4], index: 11, kind: output, shape index: {}]  }
   0x1   :  { %v5112_v0 = vld [vmem:[%s9480_s1 + $0x4] sm:$0xf]  ;;  %v53_v1 = vld [vmem:[%s9480_s1] sm:$0xf]  ;;  %v41_v5 = vld [vmem:[%s9479_s0 + $0x8] sm:$0xff] }
   0x2   :  { %v40_v2 = vld [vmem:[%s9479_s0] sm:$0xff]  ;;  %5521 = vmatprep.subr.msk.bf16.mxu0 %vm85_vm0, %v5112_v0  ;;  %v87_v3 = vsel %vm85_vm0, %v5112_v0, 0  ;;  %5522 = vmatprep.subr.msk.bf16.mxu1 %vm85_vm0, %v53_v1  ;;  %v167_v4 = vsel %vm85_vm0, %v53_v1, 0  ;;  %v42_v6 = vld [vmem:[%s9479_s0 + $0x10] sm:$0xff]  ;;  %v43_v7 = vld [vmem:[%s9479_s0 + $0x18] sm:$0xff] }
   0x3   :  { %5492 = vmatpush3.bf16.msra.mxu0 %v87_v3  ;;  %5502 = vmatpush3.bf16.msra.mxu1 %v167_v4  ;;  %v44_v8 = vld [vmem:[%s9479_s0 + $0x20] sm:$0xff]  ;;  %v49_v9 = vpack.c.bf16 %v41_v5, %v40_v2  ;;  %v50_v10 = vpack.c.bf16 %v43_v7, %v42_v6  ;;  %v5121_v11 = vld [vmem:[%s9480_s1 + $0x8] sm:$0xf]  ;;  %v46_v14 = vld [vmem:[%s9479_s0 + $0x30] sm:$0xff]  ;;  %v234_v29 = vpack.c.bf16 %v42_v6, %v41_v5 }
   0x4   :  { %v45_v12 = vld [vmem:[%s9479_s0 + $0x28] sm:$0xff]  ;;  %5523 = vmatprep.subr.msk.bf16.mxu0 %vm85_vm0, %v5121_v11  ;;  %v47_v15 = vld [vmem:[%s9479_s0 + $0x38] sm:$0xff]  ;;  %v48_v16 = vld [vmem:[%s9479_s0 + $0x40] sm:$0xff]  ;;  %v253_v23 = vsel %vm85_vm0, %v5121_v11, 0  ;;  %v235_v30 = vpack.c.bf16 %v44_v8, %v43_v7 }
   0x5   :  { %v51_v13 = vpack.c.bf16 %v45_v12, %v44_v8  ;;  %v63_v17 = vrot.slane %v49_v9, 2  ;;  %v64_v18 = vrot.slane %v50_v10, 2  ;;  %5503 = vmatprep.mubr.msk.bf16.mxu1 %vm72_vm1, %v49_v9  ;;  %v52_v19 = vpack.c.bf16 %v47_v15, %v46_v14  ;;  %v5529_v33 = vld [vmem:[%s9482_s3 + $0x64] ss:$16 sps:$4 sm:$0xff]   ;;  %v5532_v34 = vld [vmem:[%s9482_s3 + $0x6c] ss:$16 sps:$4 sm:$0xff]  }
   0x6   :  { %5504 = vmatmul.mubr.msk.bf16.vlgmr.msra.gmra.mxu1 %vm72_vm1, %v50_v10  ;;  %v54_v21 = vpack.c.bf16 %v48_v16, %v48_v16  ;;  %v236_v31 = vpack.c.bf16 %v46_v14, %v45_v12  ;;  %v237_v32 = vpack.c.bf16 %v48_v16, %v47_v15  ;;  %v5527_v35 = vld [vmem:[%s9482_s3 + $0x60] ss:$16 sps:$4 sm:$0xff]   ;;  %v5530_v36 = vld [vmem:[%s9482_s3 + $0x68] ss:$16 sps:$4 sm:$0xff]   ;;  %534 = vmatprep.subr.bf16.mxu1 %v5529_v33  ;;  %v5535_v37 = vld [vmem:[%s9482_s3 + $0x44] ss:$16 sps:$4 sm:$0xff]  }
   0x7   :  { %v66_v20 = vrot.slane %v51_v13, 2  ;;  %v65_v22 = vsel %vm62_vm2, %v63_v17, %v64_v18  ;;  %v68_v24 = vrot.slane %v52_v19, 2  ;;  %5507 = vmatprep.mubr.msk.bf16.mxu1 %vm72_vm1, %v51_v13  ;;  %535 = vmatpush1.bf16.msra.mxu1 %v5527_v35  ;;  %v5538_v38 = vld [vmem:[%s9482_s3 + $0x4c] ss:$16 sps:$4 sm:$0xff]   ;;  %v5533_v39 = vld [vmem:[%s9482_s3 + $0x40] ss:$16 sps:$4 sm:$0xff]  }
   0x8   :  { %5493 = vmatprep.mubr.msk.bf16.mxu0 %vm72_vm1, %v65_v22  ;;  %v70_v27 = vrot.slane %v54_v21, 2  ;;  %v5536_v40 = vld [vmem:[%s9482_s3 + $0x48] ss:$16 sps:$4 sm:$0xff]   ;;  %536 = vmatprep.subr.bf16.mxu1 %v5535_v37 }
   0x9   :  { %v67_v25 = vsel %vm62_vm2, %v64_v18, %v66_v20  ;;  %v69_v26 = vsel %vm62_vm2, %v66_v20, %v68_v24 }
   0xa   :  { %5494 = vmatmul.mubr.msk.bf16.vlgmr.msra.gmra.mxu0 %vm72_vm1, %v67_v25  ;;  %v71_v28 = vsel %vm62_vm2, %v68_v24, %v70_v27 }
   0xb   :  { %5512 = vmatpush3.bf16.msra.mxu0 %v253_v23  ;;  %5497 = vmatprep.mubr.msk.bf16.mxu0 %vm72_vm1, %v69_v26 }
   0xc   :  { %587 = vmatprep.subr.bf16.mxu0 %v5532_v34 }
   0xe   :  { %5508 = vmatmul.mubr.msk.bf16.gmra.mxu1 %vm72_vm1, %v52_v19 }
  0x12   :  { %5498 = vmatmul.mubr.msk.bf16.gmra.mxu0 %vm72_vm1, %v71_v28 }
  0x13   :  { %5513 = vmatprep.mubr.msk.bf16.mxu0 %vm72_vm1, %v234_v29 }
  0x1a   :  { %5514 = vmatmul.mubr.msk.bf16.vlgmr.msra.gmra.mxu0 %vm72_vm1, %v235_v30 }
  0x1b   :  { %5517 = vmatprep.mubr.msk.bf16.mxu0 %vm72_vm1, %v236_v31  ;;  %588 = vmatpush1.bf16.msra.mxu0 %v5530_v36 }
  0x1c   :  { %589 = vmatprep.subr.bf16.mxu0 %v5538_v38 }
  0x22   :  { %5518 = vmatmul.mubr.msk.bf16.gmra.mxu0 %vm72_vm1, %v237_v32 }
  0x23   :  { %16 = vsyncpa [#allocation5], 0  ;;  %537 = vmatpush1.bf16.msra.mxu1 %v5533_v39  ;;  %590 = vmatpush1.bf16.msra.mxu0 %v5536_v40  ;;  %v5541_v41 = vld [vmem:[%s9482_s3 + $0x24] ss:$16 sps:$4 sm:$0xff]   ;;  %v5544_v42 = vld [vmem:[%s9482_s3 + $0x2c] ss:$16 sps:$4 sm:$0xff]  }
  0x24   :  { %v5539_v43 = vld [vmem:[%s9482_s3 + $0x20] ss:$16 sps:$4 sm:$0xff]   ;;  %v5542_v44 = vld [vmem:[%s9482_s3 + $0x28] ss:$16 sps:$4 sm:$0xff]   ;;  %538 = vmatprep.subr.bf16.mxu1 %v5541_v41  ;;  %591 = vmatprep.subr.bf16.mxu0 %v5544_v42  ;;  %v5547_v45 = vld [vmem:[%s9482_s3 + $0x4] ss:$16 sps:$4 sm:$0xff]  }
  0x25   :  { %v5550_v46 = vld [vmem:[%s9482_s3 + $0xc] ss:$16 sps:$4 sm:$0xff]   ;;  %v5545_v47 = vld [vmem:[%s9482_s3] ss:$16 sps:$4 sm:$0xff]   ;;  %v5548_v48 = vld [vmem:[%s9482_s3 + $0x8] ss:$16 sps:$4 sm:$0xff]  }
  0x26   :  { %v6549_v49 = vld [vmem:[%s9484_s5 + $0x2a4] ss:$48 sps:$4 sm:$0xff]   ;;  %v6554_v50 = vld [vmem:[%s9484_s5 + $0x2ac] ss:$48 sps:$4 sm:$0xff]   ;;  %v9493_v51 = vmov 0   ;;  %vm519_vm3 = vcmask 523264   ;;  %vm6821_vm4 = vmpackc.low %vm85_vm0, %vm85_vm0 }
  0x27   :  { %539 = vmatpush1.bf16.msra.mxu1 %v5539_v43  ;;  %592 = vmatpush1.bf16.msra.mxu0 %v5542_v44  ;;  %v5126_v3 = vld [vmem:[%s9481_s2] ss:$0 sm:$0xff]  ;;  %vm5096_vm5 = vcmask 27648  }
  0x28   :  { %540 = vmatprep.subr.bf16.mxu1 %v5547_v45  ;;  %593 = vmatprep.subr.bf16.mxu0 %v5550_v46 }
  0x29   :  { %558 = vmatprep.mubr.bf16.mxu1 %v9493_v51  ;;  %611 = vmatprep.mubr.bf16.mxu0 %v9493_v51 }
  0x2b   :  { %541 = vmatpush1.bf16.msra.mxu1 %v5545_v47  ;;  %594 = vmatpush1.bf16.msra.mxu0 %v5548_v48 }
  0x2c   :  { %906 = vmatprep.subr.bf16.mxu1 %v6549_v49  ;;  %947 = vmatprep.subr.bf16.mxu0 %v6554_v50 }
  0xc6   :  { %v5505_v52 = vpop.f32.mrf.mxu1 }
  0xc8   :  { %v203_v55 = vpop.f32.mrf.mxu1 }
  0xca   :  { %v5495_v53 = vpop.f32.mrf.mxu0  ;;  %v5506_v58 = vpop.f32.mrf.mxu1 }
  0xcb   :  { %v212_v0 = vadd.f32 %v5505_v52, %v5495_v53 }
  0xcc   :  { %v123_v54 = vpop.f32.mrf.mxu0  ;;  %v206_v61 = vpop.f32.mrf.mxu1 }
  0xcd   :  { %v204_v4 = vadd.f32 %v203_v55, %v123_v54 }
  0xce   :  { %v5496_v56 = vpop.f32.mrf.mxu0  ;;  %v5509_v1 = vpop.f32.mrf.mxu1 }
  0xcf   :  { %v215_v7 = vadd.f32 %v5506_v58, %v5496_v56  ;;  %v6571_v58 = vld [vmem:[%s9484_s5 + $0x2a8] ss:$48 sps:$4 sm:$0xff]  }
  0xd0   :  { %v126_v57 = vpop.f32.mrf.mxu0  ;;  %v219_v8 = vpop.f32.mrf.mxu1 }
  0xd1   :  { %v207_v12 = vadd.f32 %v206_v61, %v126_v57  ;;  %v6566_v57 = vld [vmem:[%s9484_s5 + $0x2a0] ss:$48 sps:$4 sm:$0xff]   ;;  %v6576_v61 = vld [vmem:[%s9484_s5 + $0x244] ss:$48 sps:$4 sm:$0xff]  }
  0xd2   :  { %v5499_v59 = vpop.f32.mrf.mxu0  ;;  %v5510_v17 = vpop.f32.mrf.mxu1 }
  0xd3   :  { %v228_v21 = vadd.f32 %v5509_v1, %v5499_v59 }
  0xd4   :  { %v139_v60 = vpop.f32.mrf.mxu0  ;;  %v222_v30 = vpop.f32.mrf.mxu1 }
  0xd5   :  { %v220_v23 = vadd.f32 %v219_v8, %v139_v60 }
  0xd6   :  { %v5500_v62 = vpop.f32.mrf.mxu0 }
  0xd7   :  { %v231_v26 = vadd.f32 %v5510_v17, %v5500_v62  ;;  %v6581_v62 = vld [vmem:[%s9484_s5 + $0x24c] ss:$48 sps:$4 sm:$0xff]  }
  0xd8   :  { %v142_v63 = vpop.f32.mrf.mxu0  ;;  %v6633_v17 = vld [vmem:[%s9484_s5 + $0x18c] ss:$48 sps:$4 sm:$0xff]  }
  0xd9   :  { %v223_v41 = vadd.f32 %v222_v30, %v142_v63  ;;  %v6716_v30 = vld [vmem:[%s9484_s5 + $0x60] ss:$48 sps:$4 sm:$0xff]  }
  0xda   :  { %v5515_v2 = vpop.f32.mrf.mxu0 }
  0xdb   :  { %v322_v5 = vadd.f32 %v5515_v2, %v212_v0 }
  0xdc   :  { %v289_v6 = vpop.f32.mrf.mxu0 }
  0xdd   :  { %v337_v9 = vadd.f32 %v5126_v3, %v322_v5  ;;  %v320_v10 = vadd.f32 %v289_v6, %v204_v4  ;;  %v6590_v4 = vld [vmem:[%s9484_s5 + $0x240] ss:$48 sps:$4 sm:$0xff]   ;;  %v6595_v5 = vld [vmem:[%s9484_s5 + $0x248] ss:$48 sps:$4 sm:$0xff]   ;;  %v6602_v6 = vld [vmem:[%s9484_s5 + $0x1e4] ss:$48 sps:$4 sm:$0xff]  }
  0xde   :  { %v5516_v11 = vpop.f32.mrf.mxu0 }
  0xdf   :  { %v335_v13 = vadd.f32 %v5126_v3, %v320_v10  ;;  %v323_v14 = vadd.f32 %v5516_v11, %v215_v7  ;;  %v345_v15 = vmax.f32 %v337_v9, 0.0  ;;  %v6607_v7 = vld [vmem:[%s9484_s5 + $0x1ec] ss:$48 sps:$4 sm:$0xff]  }
  0xe0   :  { %v292_v16 = vpop.f32.mrf.mxu0 }
  0xe1   :  { %v343_v18 = vmax.f32 %v335_v13, 0.0  ;;  %v338_v19 = vadd.f32 %v5126_v3, %v323_v14  ;;  %v321_v20 = vadd.f32 %v292_v16, %v207_v12  ;;  %v361_v27 = vrot.slane %v345_v15, 4  ;;  %v6618_v13 = vld [vmem:[%s9484_s5 + $0x1e0] ss:$48 sps:$4 sm:$0xff]   ;;  %v6623_v14 = vld [vmem:[%s9484_s5 + $0x1e8] ss:$48 sps:$4 sm:$0xff]  }
  0xe2   :  { %v5519_v22 = vpop.f32.mrf.mxu0  ;;  %v6628_v16 = vld [vmem:[%s9484_s5 + $0x184] ss:$48 sps:$4 sm:$0xff]  }
  0xe3   :  { %v346_v24 = vmax.f32 %v338_v19, 0.0  ;;  %v336_v25 = vadd.f32 %v5126_v3, %v321_v20  ;;  %v326_v28 = vadd.f32 %v5519_v22, %v228_v21  ;;  %v359_v31 = vrot.slane %v343_v18, 4  ;;  %v6647_v19 = vld [vmem:[%s9484_s5 + $0x188] ss:$48 sps:$4 sm:$0xff]   ;;  %v6654_v20 = vld [vmem:[%s9484_s5 + $0x124] ss:$48 sps:$4 sm:$0xff]  }
  0xe4   :  { %v305_v29 = vpop.f32.mrf.mxu0  ;;  %v377_v43 = vmax.f32 %v345_v15, %v361_v27  ;;  %v6659_v21 = vld [vmem:[%s9484_s5 + $0x12c] ss:$48 sps:$4 sm:$0xff]   ;;  %v6668_v22 = vld [vmem:[%s9484_s5 + $0x120] ss:$48 sps:$4 sm:$0xff]   ;;  %v6697_v27 = vld [vmem:[%s9484_s5 + $0xc8] ss:$48 sps:$4 sm:$0xff]  }
  0xe5   :  { %v362_v32 = vrot.slane %v346_v24, 4  ;;  %v344_v33 = vmax.f32 %v336_v25, 0.0  ;;  %v324_v34 = vadd.f32 %v305_v29, %v220_v23  ;;  %v341_v35 = vadd.f32 %v5126_v3, %v326_v28  ;;  %v6673_v23 = vld [vmem:[%s9484_s5 + $0x128] ss:$48 sps:$4 sm:$0xff]   ;;  %v6685_v25 = vld [vmem:[%s9484_s5 + $0xcc] ss:$48 sps:$4 sm:$0xff]  }
  0xe6   :  { %v5520_v36 = vpop.f32.mrf.mxu0  ;;  %v375_v44 = vmax.f32 %v343_v18, %v359_v31  ;;  %v6642_v18 = vld [vmem:[%s9484_s5 + $0x180] ss:$48 sps:$4 sm:$0xff]   ;;  %v6704_v28 = vld [vmem:[%s9484_s5 + $0x64] ss:$48 sps:$4 sm:$0xff]   ;;  %v6709_v29 = vld [vmem:[%s9484_s5 + $0x6c] ss:$48 sps:$4 sm:$0xff]  }
  0xe7   :  { %v378_v37 = vmax.f32 %v346_v24, %v362_v32  ;;  %v360_v38 = vrot.slane %v344_v33, 4  ;;  %v339_v39 = vadd.f32 %v5126_v3, %v324_v34  ;;  %v327_v40 = vadd.f32 %v5520_v36, %v231_v26  ;;  %v6680_v24 = vld [vmem:[%s9484_s5 + $0xc4] ss:$48 sps:$4 sm:$0xff]   ;;  %v6692_v26 = vld [vmem:[%s9484_s5 + $0xc0] ss:$48 sps:$4 sm:$0xff]  }
  0xe8   :  { %v308_v42 = vpop.f32.mrf.mxu0  ;;  %v349_v47 = vmax.f32 %v341_v35, 0.0  ;;  %v6721_v31 = vld [vmem:[%s9484_s5 + $0x68] ss:$48 sps:$4 sm:$0xff]   ;;  %v6728_v32 = vld [vmem:[%s9484_s5 + $0x4] ss:$48 sps:$4 sm:$0xff]   ;;  %v6378_v36 = vmov 0.0|0.0  }
  0xe9   :  { %v376_v45 = vmax.f32 %v344_v33, %v360_v38  ;;  %v342_v46 = vadd.f32 %v5126_v3, %v327_v40  ;;  %v347_v48 = vmax.f32 %v339_v39, 0.0  ;;  %v325_v52 = vadd.f32 %v308_v42, %v223_v41  ;;  %v6733_v33 = vld [vmem:[%s9484_s5 + $0xc] ss:$48 sps:$4 sm:$0xff]   ;;  %v6740_v34 = vld [vmem:[%s9484_s5] ss:$48 sps:$4 sm:$0xff]  }
  0xea   :  { %v392_v53 = vcombine.low %v377_v43, %v378_v37  ;;  %v365_v63 = vrot.slane %v349_v47, 4  ;;  %v6745_v35 = vld [vmem:[%s9484_s5 + $0x8] ss:$48 sps:$4 sm:$0xff]   ;;  %v6788_v37 = vld [vmem:[%s9484_s5 + $0x2b4] ss:$48 sps:$4 sm:$0xff]   ;;  %v419_v39 = vlaneseq }
  0xeb   :  { %v391_v54 = vcombine.low %v375_v44, %v376_v45  ;;  %v350_v55 = vmax.f32 %v342_v46, 0.0  ;;  %v340_v56 = vadd.f32 %v5126_v3, %v325_v52  ;;  %v363_v0 = vrot.slane %v347_v48, 4  ;;  %v6793_v38 = vld [vmem:[%s9484_s5 + $0x2bc] ss:$48 sps:$4 sm:$0xff]   ;;  %v417_v43 = vld [vmem:[%s9483_s4] sm:$0xf] }
  0xec   :  { %v381_v8 = vmax.f32 %v349_v47, %v365_v63  ;;  %v6797_v40 = vshrl.u32 %v419_v39, 7 }
  0xed   :  { %v399_v59 = vpack.c.bf16 %v392_v53, %v391_v54  ;;  %v366_v60 = vrot.slane %v350_v55, 4  ;;  %v348_v1 = vmax.f32 %v340_v56, 0.0  ;;  %v379_v9 = vmax.f32 %v347_v48, %v363_v0 }
  0xee   :  { %v6800_v41 = vsub.s32 0, %v6797_v40  ;;  %v9492_v42 = vsub.s32 2, %v6797_v40  ;;  %v6807_v44 = vsub.s32 1, %v6797_v40  ;;  %v9491_v45 = vsub.s32 3, %v6797_v40 }
  0xef   :  { %5143 = vmatmul.mubr.msk.bf16.vlgmr.msra.gmra.mxu1 %vm519_vm3, %v399_v59  ;;  %5145 = vmatmul.mubr.msk.bf16.vlgmr.msra.gmra.mxu0 %vm519_vm3, %v399_v59  ;;  %v382_v2 = vmax.f32 %v350_v55, %v366_v60  ;;  %v364_v3 = vrot.slane %v348_v1, 4 }
  0xf0   :  { %907 = vmatpush1.bf16.msra.mxu1 %v6566_v57  ;;  %948 = vmatpush1.bf16.msra.mxu0 %v6571_v58  ;;  %9770 = vst [vmem:[#allocation7_spill] sm:$0xff] %v6800_v41  ;;  %9771 = vst [vmem:[#allocation8_spill] sm:$0xff] %v6807_v44  ;;  %v422_v46 = vrot.slane %v417_v43, %v6800_v41  ;;  %v430_v47 = vrot.slane %v417_v43, %v9492_v42  ;;  %v6968_v42 = vld [vmem:[%s9484_s5 + $0x74] ss:$48 sps:$4 sm:$0xff]  }
  0xf1   :  { %908 = vmatprep.subr.bf16.mxu1 %v6576_v61  ;;  %949 = vmatprep.subr.bf16.mxu0 %v6581_v62  ;;  %v380_v10 = vmax.f32 %v348_v1, %v364_v3  ;;  %v394_v11 = vcombine.low %v381_v8, %v382_v2  ;;  %v426_v48 = vrot.slane %v417_v43, %v6807_v44 }
  0xf2   :  { %568 = vmatprep.mubr.bf16.mxu1 %v9493_v51  ;;  %621 = vmatprep.mubr.bf16.mxu0 %v9493_v51  ;;  %v434_v52 = vrot.slane %v417_v43, %v9491_v45  ;;  %v6961_v45 = vld [vmem:[%s9484_s5 + $0xd8] ss:$48 sps:$4 sm:$0xff]   ;;  %9779 = vst [vmem:[#allocation14_spill] sm:$0xff] %v6968_v42 }
  0xf3   :  { %v393_v12 = vcombine.low %v379_v9, %v380_v10  ;;  %9778 = vst [vmem:[#allocation13_spill] sm:$0xff] %v6961_v45 }
  0xf4   :  { %909 = vmatpush1.bf16.msra.mxu1 %v6590_v4  ;;  %950 = vmatpush1.bf16.msra.mxu0 %v6595_v5 }
  0xf5   :  { %910 = vmatprep.subr.bf16.mxu1 %v6602_v6  ;;  %951 = vmatprep.subr.bf16.mxu0 %v6607_v7  ;;  %v400_v15 = vpack.c.bf16 %v394_v11, %v393_v12 }
  0xf7   :  { %5144 = vmatmul.mubr.msk.bf16.gmra.mxu1 %vm519_vm3, %v400_v15  ;;  %5146 = vmatmul.mubr.msk.bf16.gmra.mxu0 %vm519_vm3, %v400_v15 }
  0xf8   :  { %911 = vmatpush1.bf16.msra.mxu1 %v6618_v13  ;;  %952 = vmatpush1.bf16.msra.mxu0 %v6623_v14 }
  0xf9   :  { %912 = vmatprep.subr.bf16.mxu1 %v6628_v16  ;;  %953 = vmatprep.subr.bf16.mxu0 %v6633_v17 }
  0xfa   :  { %938 = vmatprep.mubr.bf16.mxu1 %v9493_v51  ;;  %979 = vmatprep.mubr.bf16.mxu0 %v9493_v51 }
  0xfc   :  { %913 = vmatpush1.bf16.msra.mxu1 %v6642_v18  ;;  %954 = vmatpush1.bf16.msra.mxu0 %v6647_v19 }
  0xfd   :  { %914 = vmatprep.subr.bf16.mxu1 %v6654_v20  ;;  %955 = vmatprep.subr.bf16.mxu0 %v6659_v21 }
 0x100   :  { %915 = vmatpush1.bf16.msra.mxu1 %v6668_v22  ;;  %956 = vmatpush1.bf16.msra.mxu0 %v6673_v23 }
 0x101   :  { %916 = vmatprep.subr.bf16.mxu1 %v6680_v24  ;;  %957 = vmatprep.subr.bf16.mxu0 %v6685_v25 }
 0x104   :  { %917 = vmatpush1.bf16.msra.mxu1 %v6692_v26  ;;  %958 = vmatpush1.bf16.msra.mxu0 %v6697_v27 }
 0x105   :  { %918 = vmatprep.subr.bf16.mxu1 %v6704_v28  ;;  %959 = vmatprep.subr.bf16.mxu0 %v6709_v29 }
 0x108   :  { %919 = vmatpush1.bf16.msra.mxu1 %v6716_v30  ;;  %960 = vmatpush1.bf16.msra.mxu0 %v6721_v31 }
 0x109   :  { %920 = vmatprep.subr.bf16.mxu1 %v6728_v32  ;;  %961 = vmatprep.subr.bf16.mxu0 %v6733_v33 }
 0x10c   :  { %921 = vmatpush1.bf16.msra.mxu1 %v6740_v34  ;;  %962 = vmatpush1.bf16.msra.mxu0 %v6745_v35 }
 0x10d   :  { %1342 = vmatprep.subr.bf16.mxu1 %v6549_v49  ;;  %1383 = vmatprep.subr.bf16.mxu0 %v6554_v50 }
 0x10f   :  { %939 = vmatmul.mubr.bf16.vlgmr.msra.gmra.mxu1 %v6378_v36  ;;  %980 = vmatmul.mubr.bf16.vlgmr.msra.gmra.mxu0 %v6378_v36 }
 0x110   :  { %1343 = vmatpush1.bf16.msra.mxu1 %v6566_v57  ;;  %1384 = vmatpush1.bf16.msra.mxu0 %v6571_v58 }
 0x111   :  { %1344 = vmatprep.subr.bf16.mxu1 %v6576_v61  ;;  %1385 = vmatprep.subr.bf16.mxu0 %v6581_v62 }
 0x112   :  { %1374 = vmatprep.mubr.bf16.mxu1 %v9493_v51  ;;  %1415 = vmatprep.mubr.bf16.mxu0 %v9493_v51 }
 0x114   :  { %1345 = vmatpush1.bf16.msra.mxu1 %v6590_v4  ;;  %1386 = vmatpush1.bf16.msra.mxu0 %v6595_v5 }
 0x115   :  { %1346 = vmatprep.subr.bf16.mxu1 %v6602_v6  ;;  %1387 = vmatprep.subr.bf16.mxu0 %v6607_v7 }
 0x118   :  { %1347 = vmatpush1.bf16.msra.mxu1 %v6618_v13  ;;  %1388 = vmatpush1.bf16.msra.mxu0 %v6623_v14 }
 0x119   :  { %1348 = vmatprep.subr.bf16.mxu1 %v6628_v16  ;;  %1389 = vmatprep.subr.bf16.mxu0 %v6633_v17 }
 0x11c   :  { %1349 = vmatpush1.bf16.msra.mxu1 %v6642_v18  ;;  %1390 = vmatpush1.bf16.msra.mxu0 %v6647_v19 }
 0x11d   :  { %1350 = vmatprep.subr.bf16.mxu1 %v6654_v20  ;;  %1391 = vmatprep.subr.bf16.mxu0 %v6659_v21 }
 0x120   :  { %1351 = vmatpush1.bf16.msra.mxu1 %v6668_v22  ;;  %1392 = vmatpush1.bf16.msra.mxu0 %v6673_v23 }
 0x121   :  { %1352 = vmatprep.subr.bf16.mxu1 %v6680_v24  ;;  %1393 = vmatprep.subr.bf16.mxu0 %v6685_v25 }
 0x124   :  { %1353 = vmatpush1.bf16.msra.mxu1 %v6692_v26  ;;  %1394 = vmatpush1.bf16.msra.mxu0 %v6697_v27 }
 0x125   :  { %1354 = vmatprep.subr.bf16.mxu1 %v6704_v28  ;;  %1395 = vmatprep.subr.bf16.mxu0 %v6709_v29 }
 0x128   :  { %1355 = vmatpush1.bf16.msra.mxu1 %v6716_v30  ;;  %1396 = vmatpush1.bf16.msra.mxu0 %v6721_v31 }
 0x129   :  { %1356 = vmatprep.subr.bf16.mxu1 %v6728_v32  ;;  %1397 = vmatprep.subr.bf16.mxu0 %v6733_v33 }
 0x12c   :  { %1357 = vmatpush1.bf16.msra.mxu1 %v6740_v34  ;;  %1398 = vmatpush1.bf16.msra.mxu0 %v6745_v35 }
 0x12d   :  { %1424 = vmatprep.subr.bf16.mxu1 %v6788_v37  ;;  %1465 = vmatprep.subr.bf16.mxu0 %v6793_v38 }
 0x1af   :  { %v560_v53 = vpop.f32.mrf.mxu1  ;;  %v613_v54 = vpop.f32.mrf.mxu0 }
 0x1b0   :  { %v561_v55 = vadd.f32 %v560_v53, %v422_v46  ;;  %v614_v56 = vadd.f32 %v613_v54, %v430_v47 }
 0x1b1   :  { %v562_v59 = vpop.f32.mrf.mxu1  ;;  %v615_v60 = vpop.f32.mrf.mxu0 }
 0x1b2   :  { %632 = vst [vmem:[#allocation2 + $0x30] sm:$0xff] %v561_v55  ;;  %634 = vst [vmem:[#allocation2 + $0x58] sm:$0xff] %v614_v56  ;;  %v563_v63 = vadd.f32 %v562_v59, %v426_v48  ;;  %v616_v0 = vadd.f32 %v615_v60, %v434_v52 }
 0x1b3   :  { %v564_v1 = vpop.f32.mrf.mxu1  ;;  %v617_v2 = vpop.f32.mrf.mxu0 }
 0x1b4   :  { %633 = vst [vmem:[#allocation2] sm:$0xff] %v563_v63  ;;  %635 = vst [vmem:[#allocation2 + $0x18] sm:$0xff] %v616_v0  ;;  %v565_v3 = vadd.f32 %v564_v1, %v422_v46  ;;  %v618_v8 = vadd.f32 %v617_v2, %v430_v47 }
 0x1b5   :  { %v566_v9 = vpop.f32.mrf.mxu1  ;;  %v619_v10 = vpop.f32.mrf.mxu0 }
 0x1b6   :  { %636 = vst [vmem:[#allocation2 + $0x50] sm:$0xff] %v565_v3  ;;  %638 = vst [vmem:[#allocation2 + $0x8] sm:$0xff] %v618_v8  ;;  %v567_v11 = vadd.f32 %v566_v9, %v426_v48  ;;  %v620_v12 = vadd.f32 %v619_v10, %v434_v52 }
 0x1b7   :  { %v570_v15 = vpop.f32.mrf.mxu1  ;;  %v623_v36 = vpop.f32.mrf.mxu0 }
 0x1b8   :  { %637 = vst [vmem:[#allocation2 + $0x68] sm:$0xff] %v567_v11  ;;  %639 = vst [vmem:[#allocation2 + $0x48] sm:$0xff] %v620_v12  ;;  %v571_v39 = vadd.f32 %v570_v15, %v422_v46  ;;  %v624_v43 = vadd.f32 %v623_v36, %v430_v47 }
 0x1b9   :  { %v572_v53 = vpop.f32.mrf.mxu1  ;;  %v625_v54 = vpop.f32.mrf.mxu0  ;;  %v988_v10 = vld [vmem:[#allocation2 + $0x30] sm:$0xf] }
 0x1ba   :  { %640 = vst [vmem:[#allocation2 + $0x40] sm:$0xff] %v571_v39  ;;  %642 = vst [vmem:[#allocation2 + $0x10] sm:$0xff] %v624_v43  ;;  %v573_v55 = vadd.f32 %v572_v53, %v426_v48  ;;  %v626_v56 = vadd.f32 %v625_v54, %v434_v52 }
 0x1bb   :  { %v574_v59 = vpop.f32.mrf.mxu1  ;;  %v627_v60 = vpop.f32.mrf.mxu0  ;;  %v989_v36 = vld [vmem:[#allocation2] sm:$0xf] }
 0x1bc   :  { %641 = vst [vmem:[#allocation2 + $0x20] sm:$0xff] %v573_v55  ;;  %643 = vst [vmem:[#allocation2 + $0x38] sm:$0xff] %v626_v56  ;;  %v575_v63 = vadd.f32 %v574_v59, %v422_v46  ;;  %v628_v0 = vadd.f32 %v627_v60, %v430_v47  ;;  %v991_v60 = vld [vmem:[#allocation2 + $0x18] sm:$0xf] }
 0x1bd   :  { %v576_v1 = vpop.f32.mrf.mxu1  ;;  %v629_v2 = vpop.f32.mrf.mxu0 }
 0x1be   :  { %644 = vst [vmem:[#allocation2 + $0x60] sm:$0xff] %v575_v63  ;;  %646 = vst [vmem:[#allocation2 + $0x78] sm:$0xff] %v628_v0  ;;  %v577_v3 = vadd.f32 %v576_v1, %v426_v48  ;;  %v630_v8 = vadd.f32 %v629_v2, %v434_v52  ;;  %v990_v48 = vld [vmem:[#allocation2 + $0x58] sm:$0xf] }
 0x1c0   :  { %645 = vst [vmem:[#allocation2 + $0x70] sm:$0xff] %v577_v3  ;;  %647 = vst [vmem:[#allocation2 + $0x28] sm:$0xff] %v630_v8 }
 0x1cf   :  { %v940_v9 = vpop.f32.mrf.mxu1  ;;  %v981_v11 = vpop.f32.mrf.mxu0 }
 0x1d0   :  { %v992_v12 = vadd.f32 %v988_v10, %v940_v9  ;;  %v994_v52 = vadd.f32 %v990_v48, %v981_v11  ;;  %v6840_v48 = vld [vmem:[%s9484_s5 + $0x254] ss:$48 sps:$4 sm:$0xff]  }
 0x1d1   :  { %v942_v15 = vpop.f32.mrf.mxu1  ;;  %v983_v39 = vpop.f32.mrf.mxu0 }
 0x1d2   :  { %v5179_v43 = vmul.f32 -1.442695, %v992_v12  ;;  %v993_v53 = vadd.f32 %v989_v36, %v942_v15  ;;  %v5181_v59 = vmul.f32 -1.442695, %v994_v52  ;;  %v995_v0 = vadd.f32 %v991_v60, %v983_v39  ;;  %v6845_v52 = vld [vmem:[%s9484_s5 + $0x25c] ss:$48 sps:$4 sm:$0xff]  }
 0x1d3   :  { %v944_v54 = vpop.f32.mrf.mxu1  ;;  %v985_v46 = vpop.f32.mrf.mxu0  ;;  %v6863_v60 = vld [vmem:[%s9484_s5 + $0x258] ss:$48 sps:$4 sm:$0xff]  }
 0x1d4   :  { %5907 = vpow2.f32 %v5179_v43  ;;  %v5180_v47 = vmul.f32 -1.442695, %v993_v53 }
 0x1d5   :  { %v945_v55 = vpop.f32.mrf.mxu1  ;;  %v986_v56 = vpop.f32.mrf.mxu0 }
 0x1d6   :  { %5909 = vpow2.f32 %v5180_v47  ;;  %v6828_v47 = vld [vmem:[%s9484_s5 + $0x2b0] ss:$48 sps:$4 sm:$0xff]   ;;  %v6833_v55 = vld [vmem:[%s9484_s5 + $0x2b8] ss:$48 sps:$4 sm:$0xff]  }
 0x1d7   :  { %5911 = vpow2.f32 %v5181_v59  ;;  %v6858_v59 = vld [vmem:[%s9484_s5 + $0x250] ss:$48 sps:$4 sm:$0xff]  }
 0x1e1   :  { %v5908_v63 = vpop.eup %5907 }
 0x1e2   :  { %v1005_v1 = vadd.f32 1.0, %v5908_v63  ;;  %v6870_v63 = vld [vmem:[%s9484_s5 + $0x1f4] ss:$48 sps:$4 sm:$0xff]  }
 0x1e3   :  { %v5910_v2 = vpop.eup %5909 }
 0x1e4   :  { %5913 = vrcp.f32 %v1005_v1  ;;  %v1006_v3 = vadd.f32 1.0, %v5910_v2  ;;  %v5912_v8 = vpop.eup %5911  ;;  %v6884_v1 = vld [vmem:[%s9484_s5 + $0x1f0] ss:$48 sps:$4 sm:$0xff]   ;;  %v6889_v2 = vld [vmem:[%s9484_s5 + $0x1f8] ss:$48 sps:$4 sm:$0xff]  }
 0x1e5   :  { %5915 = vtanh.f32 %v995_v0  ;;  %v1007_v15 = vadd.f32 1.0, %v5912_v8  ;;  %v6875_v0 = vld [vmem:[%s9484_s5 + $0x1fc] ss:$48 sps:$4 sm:$0xff]  }
 0x1e6   :  { %5917 = vrcp.f32 %v1006_v3  ;;  %v6896_v3 = vld [vmem:[%s9484_s5 + $0x194] ss:$48 sps:$4 sm:$0xff]   ;;  %v6901_v8 = vld [vmem:[%s9484_s5 + $0x19c] ss:$48 sps:$4 sm:$0xff]  }
 0x1e7   :  { %5919 = vrcp.f32 %v1007_v15  ;;  %v6925_v15 = vld [vmem:[%s9484_s5 + $0x13c] ss:$48 sps:$4 sm:$0xff]  }
 0x1f1   :  { %v5914_v9 = vpop.eup %5913 }
 0x1f2   :  { %v5916_v10 = vpop.eup %5915 }
 0x1f3   :  { %v5918_v12 = vpop.eup %5917  ;;  %v1016_v43 = vmul.f32 %v5916_v10, %v5914_v9  ;;  %v6908_v9 = vld [vmem:[%s9484_s5 + $0x190] ss:$48 sps:$4 sm:$0xff]   ;;  %v6913_v10 = vld [vmem:[%s9484_s5 + $0x198] ss:$48 sps:$4 sm:$0xff]  }
 0x1f4   :  { %v1015_v36 = vmul.f32 0.0, %v5918_v12  ;;  %v5920_v11 = vpop.eup %5919  ;;  %v6920_v12 = vld [vmem:[%s9484_s5 + $0x134] ss:$48 sps:$4 sm:$0xff]  }
 0x1f6   :  { %v6816_v53 = vadd.f32 %v1016_v43, %v1015_v36  ;;  %v6932_v36 = vld [vmem:[%s9484_s5 + $0x130] ss:$48 sps:$4 sm:$0xff]   ;;  %v6937_v43 = vld [vmem:[%s9484_s5 + $0x138] ss:$48 sps:$4 sm:$0xff]  }
 0x1f7   :  { %9774 = vst [vmem:[#allocation9_spill] sm:$0xff] %v6937_v43 }
 0x1f8   :  { %5921 = vtanh.f32 %v6816_v53 }
 0x205   :  { %v5922_v39 = vpop.eup %5921 }
 0x206   :  { %v1019_v54 = vmul.f32 %v5922_v39, %v5920_v11  ;;  %v6944_v11 = vld [vmem:[%s9484_s5 + $0xd4] ss:$48 sps:$4 sm:$0xff]   ;;  %v6949_v39 = vld [vmem:[%s9484_s5 + $0xdc] ss:$48 sps:$4 sm:$0xff]  }
 0x207   :  { %9775 = vst [vmem:[#allocation10_spill] sm:$0xff] %v6944_v11  ;;  %9776 = vst [vmem:[#allocation11_spill] sm:$0xff] %v6949_v39 }
 0x208   :  { %v6835_v56 = vpack.c.bf16 %v1019_v54, %v1019_v54  ;;  %v6956_v54 = vld [vmem:[%s9484_s5 + $0xd0] ss:$48 sps:$4 sm:$0xff]  }
 0x209   :  { %9777 = vst [vmem:[#allocation12_spill] sm:$0xff] %v6956_v54 }
 0x20a   :  { %5248 = vmatmul.mubr.msk.bf16.vlgmr.msra.gmra.mxu1 %vm6821_vm4, %v6835_v56  ;;  %5251 = vmatmul.mubr.msk.bf16.vlgmr.msra.gmra.mxu0 %vm6821_vm4, %v6835_v56 }
 0x20b   :  { %1425 = vmatpush1.bf16.msra.mxu1 %v6828_v47  ;;  %1466 = vmatpush1.bf16.msra.mxu0 %v6833_v55 }
 0x20c   :  { %1426 = vmatprep.subr.bf16.mxu1 %v6840_v48  ;;  %1467 = vmatprep.subr.bf16.mxu0 %v6845_v52 }
 0x20d   :  { %1456 = vmatprep.mubr.bf16.mxu1 %v9493_v51  ;;  %1497 = vmatprep.mubr.bf16.mxu0 %v9493_v51  ;;  %v6973_v51 = vld [vmem:[%s9484_s5 + $0x7c] ss:$48 sps:$4 sm:$0xff]  }
 0x20e   :  { %9780 = vst [vmem:[#allocation15_spill] sm:$0xff] %v6973_v51 }
 0x20f   :  { %1427 = vmatpush1.bf16.msra.mxu1 %v6858_v59  ;;  %1468 = vmatpush1.bf16.msra.mxu0 %v6863_v60 }
 0x210   :  { %1428 = vmatprep.subr.bf16.mxu1 %v6870_v63  ;;  %1469 = vmatprep.subr.bf16.mxu0 %v6875_v0 }
 0x213   :  { %1429 = vmatpush1.bf16.msra.mxu1 %v6884_v1  ;;  %1470 = vmatpush1.bf16.msra.mxu0 %v6889_v2 }
 0x214   :  { %1430 = vmatprep.subr.bf16.mxu1 %v6896_v3  ;;  %1471 = vmatprep.subr.bf16.mxu0 %v6901_v8 }
 0x217   :  { %1431 = vmatpush1.bf16.msra.mxu1 %v6908_v9  ;;  %1472 = vmatpush1.bf16.msra.mxu0 %v6913_v10 }
 0x218   :  { %1432 = vmatprep.subr.bf16.mxu1 %v6920_v12  ;;  %1473 = vmatprep.subr.bf16.mxu0 %v6925_v15 }
 0x21b   :  { %1433 = vmatpush1.bf16.msra.mxu1 %v6932_v36  ;;  %1474 = vmatpush1.bf16.msra.mxu0 %v6937_v43  ;;  %v9797_v43 = vmov 0  }
 0x21c   :  { %1434 = vmatprep.subr.bf16.mxu1 %v6944_v11  ;;  %1475 = vmatprep.subr.bf16.mxu0 %v6949_v39  ;;  %v6980_v11 = vld [vmem:[%s9484_s5 + $0x70] ss:$48 sps:$4 sm:$0xff]   ;;  %v6985_v39 = vld [vmem:[%s9484_s5 + $0x78] ss:$48 sps:$4 sm:$0xff]  }
 0x21d   :  { %9781 = vst [vmem:[#allocation16_spill] sm:$0xff] %v6980_v11  ;;  %9782 = vst [vmem:[#allocation17_spill] sm:$0xff] %v6985_v39 }
 0x21f   :  { %1435 = vmatpush1.bf16.msra.mxu1 %v6956_v54  ;;  %1476 = vmatpush1.bf16.msra.mxu0 %v6961_v45  ;;  %v6992_v54 = vld [vmem:[%s9484_s5 + $0x14] ss:$48 sps:$4 sm:$0xff]   ;;  %v6997_v45 = vld [vmem:[%s9484_s5 + $0x1c] ss:$48 sps:$4 sm:$0xff]  }
 0x220   :  { %1436 = vmatprep.subr.bf16.mxu1 %v6968_v42  ;;  %1477 = vmatprep.subr.bf16.mxu0 %v6973_v51  ;;  %9783 = vst [vmem:[#allocation18_spill] sm:$0xff] %v6992_v54  ;;  %9784 = vst [vmem:[#allocation19_spill] sm:$0xff] %v6997_v45  ;;  %v7004_v42 = vld [vmem:[%s9484_s5 + $0x10] ss:$48 sps:$4 sm:$0xff]   ;;  %v7009_v51 = vld [vmem:[%s9484_s5 + $0x18] ss:$48 sps:$4 sm:$0xff]  }
 0x221   :  { %9785 = vst [vmem:[#allocation20_spill] sm:$0xff] %v7004_v42  ;;  %9786 = vst [vmem:[#allocation21_spill] sm:$0xff] %v7009_v51 }
 0x223   :  { %1437 = vmatpush1.bf16.msra.mxu1 %v6980_v11  ;;  %1478 = vmatpush1.bf16.msra.mxu0 %v6985_v39  ;;  %v7016_v11 = vld [vmem:[%s9484_s5 + $0x2c4] ss:$48 sps:$4 sm:$0xff]   ;;  %v7021_v39 = vld [vmem:[%s9484_s5 + $0x2cc] ss:$48 sps:$4 sm:$0xff]  }
 0x224   :  { %1438 = vmatprep.subr.bf16.mxu1 %v6992_v54  ;;  %1479 = vmatprep.subr.bf16.mxu0 %v6997_v45  ;;  %9787 = vst [vmem:[#allocation22_spill] sm:$0xff] %v7016_v11  ;;  %9788 = vst [vmem:[#allocation23_spill] sm:$0xff] %v7021_v39  ;;  %v7028_v54 = vld [vmem:[%s9484_s5 + $0x2c0] ss:$48 sps:$4 sm:$0xff]   ;;  %v7033_v45 = vld [vmem:[%s9484_s5 + $0x2c8] ss:$48 sps:$4 sm:$0xff]  }
 0x225   :  { %9789 = vst [vmem:[#allocation24_spill] sm:$0xff] %v7028_v54  ;;  %9790 = vst [vmem:[#allocation25_spill] sm:$0xff] %v7033_v45 }
 0x227   :  { %1439 = vmatpush1.bf16.msra.mxu1 %v7004_v42  ;;  %1480 = vmatpush1.bf16.msra.mxu0 %v7009_v51  ;;  %v7040_v42 = vld [vmem:[%s9484_s5 + $0x264] ss:$48 sps:$4 sm:$0xff]   ;;  %v7045_v51 = vld [vmem:[%s9484_s5 + $0x26c] ss:$48 sps:$4 sm:$0xff]  }
 0x228   :  { %1506 = vmatprep.subr.bf16.mxu1 %v7016_v11  ;;  %1547 = vmatprep.subr.bf16.mxu0 %v7021_v39  ;;  %9791 = vst [vmem:[#allocation26_spill] sm:$0xff] %v7040_v42  ;;  %9792 = vst [vmem:[#allocation27_spill] sm:$0xff] %v7045_v51  ;;  %v7058_v39 = vld [vmem:[%s9484_s5 + $0x260] ss:$48 sps:$4 sm:$0xff]   ;;  %v7063_v11 = vld [vmem:[%s9484_s5 + $0x268] ss:$48 sps:$4 sm:$0xff]  }
 0x229   :  { %9793 = vst [vmem:[#allocation28_spill] sm:$0xff] %v7058_v39  ;;  %9794 = vst [vmem:[#allocation29_spill] sm:$0xff] %v7063_v11 }
 0x22a   :  { %5254 = vmatmul.mubr.msk.bf16.vlgmr.msra.gmra.mxu1 %vm6821_vm4, %v6835_v56  ;;  %5257 = vmatmul.mubr.msk.bf16.vlgmr.msra.gmra.mxu0 %vm6821_vm4, %v6835_v56 }
 0x22b   :  { %1507 = vmatpush1.bf16.msra.mxu1 %v7028_v54  ;;  %1548 = vmatpush1.bf16.msra.mxu0 %v7033_v45  ;;  %v7070_v54 = vld [vmem:[%s9484_s5 + $0x204] ss:$48 sps:$4 sm:$0xff]   ;;  %v7075_v45 = vld [vmem:[%s9484_s5 + $0x20c] ss:$48 sps:$4 sm:$0xff]  }
 0x22c   :  { %1508 = vmatprep.subr.bf16.mxu1 %v7040_v42  ;;  %1549 = vmatprep.subr.bf16.mxu0 %v7045_v51  ;;  %9795 = vst [vmem:[#allocation30_spill] sm:$0xff] %v7070_v54  ;;  %9796 = vst [vmem:[#allocation31_spill] sm:$0xff] %v7075_v45  ;;  %v7084_v51 = vld [vmem:[%s9484_s5 + $0x200] ss:$48 sps:$4 sm:$0xff]   ;;  %v7089_v42 = vld [vmem:[%s9484_s5 + $0x208] ss:$48 sps:$4 sm:$0xff]  }
 0x22d   :  { %1538 = vmatprep.mubr.bf16.mxu1 %v9797_v43  ;;  %1579 = vmatprep.mubr.bf16.mxu0 %v9797_v43  ;;  %9798 = vst [vmem:[#allocation32_spill] sm:$0xff] %v7084_v51  ;;  %9799 = vst [vmem:[#allocation33_spill] sm:$0xff] %v7089_v42 }
 0x22f   :  { %1509 = vmatpush1.bf16.msra.mxu1 %v7058_v39  ;;  %1550 = vmatpush1.bf16.msra.mxu0 %v7063_v11  ;;  %v7096_v39 = vld [vmem:[%s9484_s5 + $0x1a4] ss:$48 sps:$4 sm:$0xff]   ;;  %v7101_v11 = vld [vmem:[%s9484_s5 + $0x1ac] ss:$48 sps:$4 sm:$0xff]  }
 0x230   :  { %1510 = vmatprep.subr.bf16.mxu1 %v7070_v54  ;;  %1551 = vmatprep.subr.bf16.mxu0 %v7075_v45  ;;  %9800 = vst [vmem:[#allocation34_spill] sm:$0xff] %v7096_v39  ;;  %9801 = vst [vmem:[#allocation35_spill] sm:$0xff] %v7101_v11  ;;  %v7108_v54 = vld [vmem:[%s9484_s5 + $0x1a0] ss:$48 sps:$4 sm:$0xff]   ;;  %v7113_v45 = vld [vmem:[%s9484_s5 + $0x1a8] ss:$48 sps:$4 sm:$0xff]  }
 0x231   :  { %9802 = vst [vmem:[#allocation36_spill] sm:$0xff] %v7108_v54  ;;  %9803 = vst [vmem:[#allocation37_spill] sm:$0xff] %v7113_v45 }
 0x233   :  { %1511 = vmatpush1.bf16.msra.mxu1 %v7084_v51  ;;  %1552 = vmatpush1.bf16.msra.mxu0 %v7089_v42  ;;  %v7120_v51 = vld [vmem:[%s9484_s5 + $0x144] ss:$48 sps:$4 sm:$0xff]   ;;  %v7125_v42 = vld [vmem:[%s9484_s5 + $0x14c] ss:$48 sps:$4 sm:$0xff]  }
 0x234   :  { %1512 = vmatprep.subr.bf16.mxu1 %v7096_v39  ;;  %1553 = vmatprep.subr.bf16.mxu0 %v7101_v11  ;;  %9804 = vst [vmem:[#allocation38_spill] sm:$0xff] %v7120_v51  ;;  %9805 = vst [vmem:[#allocation39_spill] sm:$0xff] %v7125_v42  ;;  %v7132_v39 = vld [vmem:[%s9484_s5 + $0x140] ss:$48 sps:$4 sm:$0xff]   ;;  %v7137_v11 = vld [vmem:[%s9484_s5 + $0x148] ss:$48 sps:$4 sm:$0xff]  }
 0x235   :  { %9806 = vst [vmem:[#allocation40_spill] sm:$0xff] %v7132_v39  ;;  %9807 = vst [vmem:[#allocation41_spill] sm:$0xff] %v7137_v11 }
 0x237   :  { %1513 = vmatpush1.bf16.msra.mxu1 %v7108_v54  ;;  %1554 = vmatpush1.bf16.msra.mxu0 %v7113_v45  ;;  %v7144_v54 = vld [vmem:[%s9484_s5 + $0xe4] ss:$48 sps:$4 sm:$0xff]   ;;  %v7149_v45 = vld [vmem:[%s9484_s5 + $0xec] ss:$48 sps:$4 sm:$0xff]  }
 0x238   :  { %1514 = vmatprep.subr.bf16.mxu1 %v7120_v51  ;;  %1555 = vmatprep.subr.bf16.mxu0 %v7125_v42  ;;  %9808 = vst [vmem:[#allocation42_spill] sm:$0xff] %v7144_v54  ;;  %9809 = vst [vmem:[#allocation43_spill] sm:$0xff] %v7149_v45  ;;  %v7156_v51 = vld [vmem:[%s9484_s5 + $0xe0] ss:$48 sps:$4 sm:$0xff]   ;;  %v7161_v42 = vld [vmem:[%s9484_s5 + $0xe8] ss:$48 sps:$4 sm:$0xff]  }
 0x239   :  { %9810 = vst [vmem:[#allocation44_spill] sm:$0xff] %v7156_v51  ;;  %9811 = vst [vmem:[#allocation45_spill] sm:$0xff] %v7161_v42 }
 0x23b   :  { %1515 = vmatpush1.bf16.msra.mxu1 %v7132_v39  ;;  %1556 = vmatpush1.bf16.msra.mxu0 %v7137_v11  ;;  %v7168_v39 = vld [vmem:[%s9484_s5 + $0x84] ss:$48 sps:$4 sm:$0xff]   ;;  %v7173_v11 = vld [vmem:[%s9484_s5 + $0x8c] ss:$48 sps:$4 sm:$0xff]  }
 0x23c   :  { %1516 = vmatprep.subr.bf16.mxu1 %v7144_v54  ;;  %1557 = vmatprep.subr.bf16.mxu0 %v7149_v45  ;;  %9812 = vst [vmem:[#allocation46_spill] sm:$0xff] %v7168_v39  ;;  %9813 = vst [vmem:[#allocation47_spill] sm:$0xff] %v7173_v11  ;;  %v7180_v54 = vld [vmem:[%s9484_s5 + $0x80] ss:$48 sps:$4 sm:$0xff]   ;;  %v7185_v45 = vld [vmem:[%s9484_s5 + $0x88] ss:$48 sps:$4 sm:$0xff]  }
 0x23d   :  { %9814 = vst [vmem:[#allocation48_spill] sm:$0xff] %v7180_v54  ;;  %9815 = vst [vmem:[#allocation49_spill] sm:$0xff] %v7185_v45 }
 0x23f   :  { %1517 = vmatpush1.bf16.msra.mxu1 %v7156_v51  ;;  %1558 = vmatpush1.bf16.msra.mxu0 %v7161_v42  ;;  %v7192_v51 = vld [vmem:[%s9484_s5 + $0x24] ss:$48 sps:$4 sm:$0xff]   ;;  %v7197_v42 = vld [vmem:[%s9484_s5 + $0x2c] ss:$48 sps:$4 sm:$0xff]  }
 0x240   :  { %1518 = vmatprep.subr.bf16.mxu1 %v7168_v39  ;;  %1559 = vmatprep.subr.bf16.mxu0 %v7173_v11  ;;  %9816 = vst [vmem:[#allocation50_spill] sm:$0xff] %v7192_v51  ;;  %9817 = vst [vmem:[#allocation51_spill] sm:$0xff] %v7197_v42  ;;  %v7204_v39 = vld [vmem:[%s9484_s5 + $0x20] ss:$48 sps:$4 sm:$0xff]   ;;  %v7209_v11 = vld [vmem:[%s9484_s5 + $0x28] ss:$48 sps:$4 sm:$0xff]  }
 0x241   :  { %9818 = vst [vmem:[#allocation52_spill] sm:$0xff] %v7204_v39  ;;  %9819 = vst [vmem:[#allocation53_spill] sm:$0xff] %v7209_v11 }
 0x243   :  { %1519 = vmatpush1.bf16.msra.mxu1 %v7180_v54  ;;  %1560 = vmatpush1.bf16.msra.mxu0 %v7185_v45 }
 0x244   :  { %1520 = vmatprep.subr.bf16.mxu1 %v7192_v51  ;;  %1561 = vmatprep.subr.bf16.mxu0 %v7197_v42 }
 0x247   :  { %1521 = vmatpush1.bf16.msra.mxu1 %v7204_v39  ;;  %1562 = vmatpush1.bf16.msra.mxu0 %v7209_v11 }
 0x248   :  { %1709 = vmatprep.subr.bf16.mxu1 %v6549_v49  ;;  %1750 = vmatprep.subr.bf16.mxu0 %v6554_v50 }
 0x24a   :  { %5260 = vmatmul.mubr.msk.bf16.vlgmr.msra.gmra.mxu1 %vm6821_vm4, %v6835_v56  ;;  %5263 = vmatmul.mubr.msk.bf16.vlgmr.msra.gmra.mxu0 %vm6821_vm4, %v6835_v56 }
 0x24b   :  { %1710 = vmatpush1.bf16.msra.mxu1 %v6566_v57  ;;  %1751 = vmatpush1.bf16.msra.mxu0 %v6571_v58  ;;  %v1654_v58 = vld [vmem:[#allocation2 + $0x30] sm:$0xf0] }
 0x24c   :  { %1711 = vmatprep.subr.bf16.mxu1 %v6576_v61  ;;  %1752 = vmatprep.subr.bf16.mxu0 %v6581_v62 }
 0x24d   :  { %1741 = vmatprep.mubr.bf16.mxu1 %v9797_v43  ;;  %1782 = vmatprep.mubr.bf16.mxu0 %v9797_v43 }
 0x24f   :  { %1712 = vmatpush1.bf16.msra.mxu1 %v6590_v4  ;;  %1753 = vmatpush1.bf16.msra.mxu0 %v6595_v5 }
 0x250   :  { %1713 = vmatprep.subr.bf16.mxu1 %v6602_v6  ;;  %1754 = vmatprep.subr.bf16.mxu0 %v6607_v7  ;;  %v1655_v6 = vld [vmem:[#allocation2] sm:$0xf0] }
 0x253   :  { %1714 = vmatpush1.bf16.msra.mxu1 %v6618_v13  ;;  %1755 = vmatpush1.bf16.msra.mxu0 %v6623_v14 }
 0x254   :  { %1715 = vmatprep.subr.bf16.mxu1 %v6628_v16  ;;  %1756 = vmatprep.subr.bf16.mxu0 %v6633_v17 }
 0x257   :  { %1716 = vmatpush1.bf16.msra.mxu1 %v6642_v18  ;;  %1757 = vmatpush1.bf16.msra.mxu0 %v6647_v19 }
 0x258   :  { %1717 = vmatprep.subr.bf16.mxu1 %v6654_v20  ;;  %1758 = vmatprep.subr.bf16.mxu0 %v6659_v21  ;;  %v1656_v21 = vld [vmem:[#allocation2 + $0x58] sm:$0xf0] }
 0x25b   :  { %1718 = vmatpush1.bf16.msra.mxu1 %v6668_v22  ;;  %1759 = vmatpush1.bf16.msra.mxu0 %v6673_v23 }
 0x25c   :  { %1719 = vmatprep.subr.bf16.mxu1 %v6680_v24  ;;  %1760 = vmatprep.subr.bf16.mxu0 %v6685_v25  ;;  %v1657_v25 = vld [vmem:[#allocation2 + $0x18] sm:$0xf0] }
 0x25f   :  { %1720 = vmatpush1.bf16.msra.mxu1 %v6692_v26  ;;  %1761 = vmatpush1.bf16.msra.mxu0 %v6697_v27 }
 0x260   :  { %1721 = vmatprep.subr.bf16.mxu1 %v6704_v28  ;;  %1762 = vmatprep.subr.bf16.mxu0 %v6709_v29 }
 0x263   :  { %1722 = vmatpush1.bf16.msra.mxu1 %v6716_v30  ;;  %1763 = vmatpush1.bf16.msra.mxu0 %v6721_v31 }
 0x264   :  { %1723 = vmatprep.subr.bf16.mxu1 %v6728_v32  ;;  %1764 = vmatprep.subr.bf16.mxu0 %v6733_v33 }
 0x267   :  { %1724 = vmatpush1.bf16.msra.mxu1 %v6740_v34  ;;  %1765 = vmatpush1.bf16.msra.mxu0 %v6745_v35 }
 0x268   :  { %1791 = vmatprep.subr.bf16.mxu1 %v6788_v37  ;;  %1832 = vmatprep.subr.bf16.mxu0 %v6793_v38 }
 0x2ca   :  { %v1376_v49 = vpop.f32.mrf.mxu1  ;;  %v1417_v50 = vpop.f32.mrf.mxu0 }
 0x2cb   :  { %v1662_v57 = vrot.slane %v1376_v49, 4  ;;  %v1664_v20 = vrot.slane %v1417_v50, 4 }
 0x2cc   :  { %v1378_v61 = vpop.f32.mrf.mxu1  ;;  %v1419_v62 = vpop.f32.mrf.mxu0 }
 0x2cd   :  { %v1670_v4 = vadd.f32 %v1662_v57, %v1654_v58  ;;  %v1663_v5 = vrot.slane %v1378_v61, 4  ;;  %v1672_v22 = vadd.f32 %v1664_v20, %v1656_v21  ;;  %v1665_v23 = vrot.slane %v1419_v62, 4 }
 0x2ce   :  { %v1380_v7 = vpop.f32.mrf.mxu1  ;;  %v1421_v13 = vpop.f32.mrf.mxu0  ;;  %v1694_v57 = vrot.slane %v6816_v53, 4 }
 0x2cf   :  { %v5267_v14 = vmul.f32 -1.442695, %v1670_v4  ;;  %v1671_v16 = vadd.f32 %v1663_v5, %v1655_v6  ;;  %v5269_v24 = vmul.f32 -1.442695, %v1672_v22  ;;  %v1673_v26 = vadd.f32 %v1665_v23, %v1657_v25 }
 0x2d0   :  { %v1381_v17 = vpop.f32.mrf.mxu1  ;;  %v1422_v18 = vpop.f32.mrf.mxu0 }
 0x2d1   :  { %5923 = vpow2.f32 %v5267_v14  ;;  %v5268_v19 = vmul.f32 -1.442695, %v1671_v16  ;;  %v744_v17 = vld [vmem:[%s9485_s6] sm:$0xf] }
 0x2d2   :  { %v7268_v23 = vrot.slane %v744_v17, %v6807_v44  ;;  %v9851_v44 = vld [vmem:[#allocation38_spill] sm:$0xff] }
 0x2d3   :  { %5925 = vpow2.f32 %v5268_v19  ;;  %v7265_v19 = vrot.slane %v744_v17, %v6800_v41  ;;  %v9852_v41 = vld [vmem:[#allocation39_spill] sm:$0xff] }
 0x2d4   :  { %5927 = vpow2.f32 %v5269_v24 }
 0x2d5   :  { %5929 = vtanh.f32 %v1673_v26 }
 0x2de   :  { %v5924_v27 = vpop.eup %5923 }
 0x2df   :  { %v1683_v28 = vadd.f32 1.0, %v5924_v27 }
 0x2e0   :  { %v5926_v29 = vpop.eup %5925 }
 0x2e1   :  { %5931 = vrcp.f32 %v1683_v28  ;;  %v1684_v30 = vadd.f32 1.0, %v5926_v29  ;;  %v5928_v33 = vpop.eup %5927 }
 0x2e2   :  { %v5930_v46 = vpop.eup %5929  ;;  %v1685_v62 = vadd.f32 1.0, %v5928_v33 }
 0x2e3   :  { %5933 = vrcp.f32 %v1684_v30 }
 0x2e4   :  { %5935 = vrcp.f32 %v1685_v62 }
 0x2ea   :  { %v1458_v31 = vpop.f32.mrf.mxu1  ;;  %v1499_v32 = vpop.f32.mrf.mxu0 }
 0x2ec   :  { %v1460_v34 = vpop.f32.mrf.mxu1  ;;  %v1501_v35 = vpop.f32.mrf.mxu0 }
 0x2ee   :  { %v5932_v56 = vpop.eup %5931  ;;  %v1462_v49 = vpop.f32.mrf.mxu1 }
 0x2ef   :  { %v1503_v50 = vpop.f32.mrf.mxu0  ;;  %v1697_v58 = vmul.f32 %v5932_v56, %v5930_v46 }
 0x2f0   :  { %v5934_v61 = vpop.eup %5933  ;;  %v1463_v4 = vpop.f32.mrf.mxu1 }
 0x2f1   :  { %v1504_v5 = vpop.f32.mrf.mxu0  ;;  %v1696_v6 = vmul.f32 %v5934_v61, %v1694_v57  ;;  %v5936_v13 = vpop.eup %5935  ;;  %v9820_v57 = vsub.s32 2, %v6797_v40  ;;  %v9821_v4 = vsub.s32 3, %v6797_v40 }
 0x2f3   :  { %v7258_v7 = vadd.f32 %v1697_v58, %v1696_v6  ;;  %v7274_v58 = vrot.slane %v744_v17, %v9820_v57  ;;  %v9826_v57 = vld [vmem:[#allocation13_spill] sm:$0xff] }
 0x2f5   :  { %5937 = vtanh.f32 %v7258_v7 }
 0x302   :  { %v5938_v14 = vpop.eup %5937 }
 0x303   :  { %v1700_v16 = vmul.f32 %v5938_v14, %v5936_v13 }
 0x30a   :  { %v1540_v18 = vpop.f32.mrf.mxu1  ;;  %v1581_v53 = vpop.f32.mrf.mxu0 }
 0x30b   :  { %v1592_v20 = vrot.slane %v1540_v18, 4  ;;  %v1594_v49 = vrot.slane %v1581_v53, 4 }
 0x30c   :  { %v1542_v21 = vpop.f32.mrf.mxu1  ;;  %v1583_v22 = vpop.f32.mrf.mxu0 }
 0x30d   :  { %v1600_v24 = vadd.f32 %v1592_v20, %v1458_v31  ;;  %v1593_v25 = vrot.slane %v1542_v21, 4  ;;  %v1602_v31 = vadd.f32 %v1594_v49, %v1499_v32  ;;  %v1595_v61 = vrot.slane %v1583_v22, 4  ;;  %v9824_v49 = vld [vmem:[#allocation11_spill] sm:$0xff] }
 0x30e   :  { %v1544_v26 = vpop.f32.mrf.mxu1  ;;  %v1585_v27 = vpop.f32.mrf.mxu0 }
 0x30f   :  { %v1625_v28 = vadd.f32 %v7265_v19, %v1600_v24  ;;  %v1601_v29 = vadd.f32 %v1593_v25, %v1460_v34  ;;  %v1627_v62 = vadd.f32 %v7274_v58, %v1602_v31  ;;  %v7279_v34 = vrot.slane %v744_v17, %v9821_v4  ;;  %v9827_v31 = vld [vmem:[#allocation14_spill] sm:$0xff]  ;;  %v9830_v4 = vld [vmem:[#allocation17_spill] sm:$0xff] }
 0x310   :  { %v1545_v30 = vpop.f32.mrf.mxu1  ;;  %v1586_v33 = vpop.f32.mrf.mxu0  ;;  %v1603_v5 = vadd.f32 %v1595_v61, %v1501_v35  ;;  %v9828_v61 = vld [vmem:[#allocation15_spill] sm:$0xff] }
 0x311   :  { %v5264_v46 = vmul.f32 -1.442695, %v1625_v28  ;;  %v1626_v56 = vadd.f32 %v7268_v23, %v1601_v29  ;;  %v5266_v6 = vmul.f32 -1.442695, %v1627_v62  ;;  %v1702_v29 = vrot.slane %v1700_v16, 4  ;;  %v9822_v16 = vld [vmem:[#allocation9_spill] sm:$0xff] }
 0x312   :  { %v1628_v14 = vadd.f32 %v7279_v34, %v1603_v5  ;;  %v9829_v62 = vld [vmem:[#allocation16_spill] sm:$0xff]  ;;  %v9831_v5 = vld [vmem:[#allocation18_spill] sm:$0xff] }
 0x313   :  { %5939 = vpow2.f32 %v5264_v46  ;;  %v5265_v50 = vmul.f32 -1.442695, %v1626_v56  ;;  %v9823_v56 = vld [vmem:[#allocation10_spill] sm:$0xff] }
 0x315   :  { %5941 = vpow2.f32 %v5265_v50  ;;  %v9825_v50 = vld [vmem:[#allocation12_spill] sm:$0xff] }
 0x316   :  { %5943 = vpow2.f32 %v5266_v6  ;;  %v9832_v6 = vld [vmem:[#allocation19_spill] sm:$0xff] }
 0x320   :  { %v5940_v13 = vpop.eup %5939 }
 0x321   :  { %v1638_v18 = vadd.f32 1.0, %v5940_v13  ;;  %v9833_v13 = vld [vmem:[#allocation20_spill] sm:$0xff] }
 0x322   :  { %v5942_v53 = vpop.eup %5941 }
 0x323   :  { %5945 = vrcp.f32 %v1638_v18  ;;  %v1639_v20 = vadd.f32 1.0, %v5942_v53  ;;  %v5944_v32 = vpop.eup %5943  ;;  %v9835_v18 = vld [vmem:[#allocation22_spill] sm:$0xff]  ;;  %v9836_v53 = vld [vmem:[#allocation23_spill] sm:$0xff] }
 0x324   :  { %5947 = vtanh.f32 %v1628_v14  ;;  %v1640_v25 = vadd.f32 1.0, %v5944_v32  ;;  %v9834_v14 = vld [vmem:[#allocation21_spill] sm:$0xff] }
 0x325   :  { %5949 = vrcp.f32 %v1639_v20  ;;  %v9837_v20 = vld [vmem:[#allocation24_spill] sm:$0xff]  ;;  %v9838_v32 = vld [vmem:[#allocation25_spill] sm:$0xff] }
 0x326   :  { %5951 = vrcp.f32 %v1640_v25  ;;  %v9842_v25 = vld [vmem:[#allocation29_spill] sm:$0xff] }
 0x330   :  { %v5946_v21 = vpop.eup %5945 }
 0x331   :  { %v5948_v22 = vpop.eup %5947 }
 0x332   :  { %v5950_v24 = vpop.eup %5949  ;;  %v1649_v17 = vmul.f32 %v5948_v22, %v5946_v21  ;;  %v9839_v21 = vld [vmem:[#allocation26_spill] sm:$0xff]  ;;  %v9840_v22 = vld [vmem:[#allocation27_spill] sm:$0xff] }
 0x333   :  { %v1648_v40 = vmul.f32 0.0, %v5950_v24  ;;  %v5952_v35 = vpop.eup %5951  ;;  %v9841_v24 = vld [vmem:[#allocation28_spill] sm:$0xff] }
 0x335   :  { %v7282_v26 = vadd.f32 %v1649_v17, %v1648_v40  ;;  %v9843_v40 = vld [vmem:[#allocation30_spill] sm:$0xff]  ;;  %v9844_v17 = vld [vmem:[#allocation31_spill] sm:$0xff] }
 0x337   :  { %5953 = vtanh.f32 %v7282_v26 }
 0x344   :  { %v5954_v27 = vpop.eup %5953 }
 0x345   :  { %v1652_v28 = vmul.f32 %v5954_v27, %v5952_v35  ;;  %v9845_v35 = vld [vmem:[#allocation32_spill] sm:$0xff]  ;;  %v9846_v27 = vld [vmem:[#allocation33_spill] sm:$0xff] }
 0x347   :  { %1653 = vst [vmem:[#allocation3] sm:$0xf] %v1652_v28  ;;  %v1705_v30 = vrot.slane %v1652_v28, 4  ;;  %v9847_v28 = vld [vmem:[#allocation34_spill] sm:$0xff] }
 0x349   :  { %v1707_v33 = vsel %vm85_vm0, %v1702_v29, %v1705_v30  ;;  %v9848_v29 = vld [vmem:[#allocation35_spill] sm:$0xff]  ;;  %v9849_v30 = vld [vmem:[#allocation36_spill] sm:$0xff] }
 0x34a   :  { %v7286_v46 = vpack.c.bf16 %v1707_v33, %v1707_v33  ;;  %v9850_v33 = vld [vmem:[#allocation37_spill] sm:$0xff] }
 0x34c   :  { %1742 = vmatmul.mubr.bf16.vlgmr.msra.gmra.mxu1 %v7286_v46  ;;  %1783 = vmatmul.mubr.bf16.vlgmr.msra.gmra.mxu0 %v7286_v46 }
 0x34d   :  { %1792 = vmatpush1.bf16.msra.mxu1 %v6828_v47  ;;  %1833 = vmatpush1.bf16.msra.mxu0 %v6833_v55 }
 0x34e   :  { %1793 = vmatprep.subr.bf16.mxu1 %v6840_v48  ;;  %1834 = vmatprep.subr.bf16.mxu0 %v6845_v52 }
 0x34f   :  { %1823 = vmatprep.mubr.bf16.mxu1 %v9797_v43  ;;  %1864 = vmatprep.mubr.bf16.mxu0 %v9797_v43 }
 0x351   :  { %1794 = vmatpush1.bf16.msra.mxu1 %v6858_v59  ;;  %1835 = vmatpush1.bf16.msra.mxu0 %v6863_v60 }
 0x352   :  { %1795 = vmatprep.subr.bf16.mxu1 %v6870_v63  ;;  %1836 = vmatprep.subr.bf16.mxu0 %v6875_v0 }
 0x355   :  { %1796 = vmatpush1.bf16.msra.mxu1 %v6884_v1  ;;  %1837 = vmatpush1.bf16.msra.mxu0 %v6889_v2 }
 0x356   :  { %1797 = vmatprep.subr.bf16.mxu1 %v6896_v3  ;;  %1838 = vmatprep.subr.bf16.mxu0 %v6901_v8 }
 0x359   :  { %1798 = vmatpush1.bf16.msra.mxu1 %v6908_v9  ;;  %1839 = vmatpush1.bf16.msra.mxu0 %v6913_v10 }
 0x35a   :  { %1799 = vmatprep.subr.bf16.mxu1 %v6920_v12  ;;  %1840 = vmatprep.subr.bf16.mxu0 %v6925_v15 }
 0x35d   :  { %1800 = vmatpush1.bf16.msra.mxu1 %v6932_v36  ;;  %1841 = vmatpush1.bf16.msra.mxu0 %v9822_v16 }
 0x35e   :  { %1801 = vmatprep.subr.bf16.mxu1 %v9823_v56  ;;  %1842 = vmatprep.subr.bf16.mxu0 %v9824_v49 }
 0x361   :  { %1802 = vmatpush1.bf16.msra.mxu1 %v9825_v50  ;;  %1843 = vmatpush1.bf16.msra.mxu0 %v9826_v57 }
 0x362   :  { %1803 = vmatprep.subr.bf16.mxu1 %v9827_v31  ;;  %1844 = vmatprep.subr.bf16.mxu0 %v9828_v61 }
 0x365   :  { %1804 = vmatpush1.bf16.msra.mxu1 %v9829_v62  ;;  %1845 = vmatpush1.bf16.msra.mxu0 %v9830_v4 }
 0x366   :  { %1805 = vmatprep.subr.bf16.mxu1 %v9831_v5  ;;  %1846 = vmatprep.subr.bf16.mxu0 %v9832_v6 }
 0x369   :  { %1806 = vmatpush1.bf16.msra.mxu1 %v9833_v13  ;;  %1847 = vmatpush1.bf16.msra.mxu0 %v9834_v14 }
 0x36a   :  { %1873 = vmatprep.subr.bf16.mxu1 %v9835_v18  ;;  %1914 = vmatprep.subr.bf16.mxu0 %v9836_v53 }
 0x36c   :  { %1824 = vmatmul.mubr.bf16.vlgmr.msra.gmra.mxu1 %v7286_v46  ;;  %1865 = vmatmul.mubr.bf16.vlgmr.msra.gmra.mxu0 %v7286_v46 }
 0x36d   :  { %1874 = vmatpush1.bf16.msra.mxu1 %v9837_v20  ;;  %1915 = vmatpush1.bf16.msra.mxu0 %v9838_v32 }
 0x36e   :  { %1875 = vmatprep.subr.bf16.mxu1 %v9839_v21  ;;  %1916 = vmatprep.subr.bf16.mxu0 %v9840_v22 }
 0x36f   :  { %1905 = vmatprep.mubr.bf16.mxu1 %v9797_v43  ;;  %1946 = vmatprep.mubr.bf16.mxu0 %v9797_v43 }
 0x371   :  { %1876 = vmatpush1.bf16.msra.mxu1 %v9841_v24  ;;  %1917 = vmatpush1.bf16.msra.mxu0 %v9842_v25  ;;  %v9853_v25 = vld [vmem:[#allocation40_spill] sm:$0xff] }
 0x372   :  { %1877 = vmatprep.subr.bf16.mxu1 %v9843_v40  ;;  %1918 = vmatprep.subr.bf16.mxu0 %v9844_v17  ;;  %v9854_v40 = vld [vmem:[#allocation41_spill] sm:$0xff]  ;;  %v9855_v17 = vld [vmem:[#allocation42_spill] sm:$0xff] }
 0x375   :  { %1878 = vmatpush1.bf16.msra.mxu1 %v9845_v35  ;;  %1919 = vmatpush1.bf16.msra.mxu0 %v9846_v27  ;;  %v9856_v35 = vld [vmem:[#allocation43_spill] sm:$0xff]  ;;  %v9857_v27 = vld [vmem:[#allocation44_spill] sm:$0xff] }
 0x376   :  { %1879 = vmatprep.subr.bf16.mxu1 %v9847_v28  ;;  %1920 = vmatprep.subr.bf16.mxu0 %v9848_v29  ;;  %v9858_v28 = vld [vmem:[#allocation45_spill] sm:$0xff]  ;;  %v9859_v29 = vld [vmem:[#allocation46_spill] sm:$0xff] }
 0x379   :  { %1880 = vmatpush1.bf16.msra.mxu1 %v9849_v30  ;;  %1921 = vmatpush1.bf16.msra.mxu0 %v9850_v33  ;;  %v9860_v30 = vld [vmem:[#allocation47_spill] sm:$0xff] }
 0x37a   :  { %1881 = vmatprep.subr.bf16.mxu1 %v9851_v44  ;;  %1922 = vmatprep.subr.bf16.mxu0 %v9852_v41 }
 0x37d   :  { %1882 = vmatpush1.bf16.msra.mxu1 %v9853_v25  ;;  %1923 = vmatpush1.bf16.msra.mxu0 %v9854_v40 }
 0x37e   :  { %1883 = vmatprep.subr.bf16.mxu1 %v9855_v17  ;;  %1924 = vmatprep.subr.bf16.mxu0 %v9856_v35 }
 0x381   :  { %1884 = vmatpush1.bf16.msra.mxu1 %v9857_v27  ;;  %1925 = vmatpush1.bf16.msra.mxu0 %v9858_v28  ;;  %v7361_v28 = vld [vmem:[%s9484_s5 + $0x2a4] ss:$48 sps:$4 sm:$0xff]  }
 0x382   :  { %1885 = vmatprep.subr.bf16.mxu1 %v9859_v29  ;;  %1926 = vmatprep.subr.bf16.mxu0 %v9860_v30  ;;  %9861 = vst [vmem:[#allocation9_spill] sm:$0xff] %v7361_v28 }
 0x385   :  { %1886 = vmatpush1.bf16.msra.mxu1 %v7180_v54  ;;  %1927 = vmatpush1.bf16.msra.mxu0 %v7185_v45  ;;  %v7367_v54 = vld [vmem:[%s9484_s5 + $0x2ac] ss:$48 sps:$4 sm:$0xff]   ;;  %v2001_v45 = vld [vmem:[#allocation2 + $0x68] sm:$0xf] }
 0x386   :  { %1887 = vmatprep.subr.bf16.mxu1 %v7192_v51  ;;  %1928 = vmatprep.subr.bf16.mxu0 %v7197_v42  ;;  %9862 = vst [vmem:[#allocation10_spill] sm:$0xff] %v7367_v54 }
 0x389   :  { %1888 = vmatpush1.bf16.msra.mxu1 %v7204_v39  ;;  %1929 = vmatpush1.bf16.msra.mxu0 %v7209_v11  ;;  %v7375_v11 = vld [vmem:[%s9484_s5 + $0x2a0] ss:$48 sps:$4 sm:$0xff]  }
 0x38a   :  { %2040 = vmatprep.subr.bf16.mxu1 %v7361_v28  ;;  %2081 = vmatprep.subr.bf16.mxu0 %v7367_v54  ;;  %9863 = vst [vmem:[#allocation11_spill] sm:$0xff] %v7375_v11  ;;  %v7381_v28 = vld [vmem:[%s9484_s5 + $0x2a8] ss:$48 sps:$4 sm:$0xff]   ;;  %v7387_v54 = vld [vmem:[%s9484_s5 + $0x244] ss:$48 sps:$4 sm:$0xff]  }
 0x38b   :  { %9864 = vst [vmem:[#allocation12_spill] sm:$0xff] %v7381_v28  ;;  %9865 = vst [vmem:[#allocation13_spill] sm:$0xff] %v7387_v54 }
 0x38c   :  { %1906 = vmatmul.mubr.bf16.vlgmr.msra.gmra.mxu1 %v7286_v46  ;;  %1947 = vmatmul.mubr.bf16.vlgmr.msra.gmra.mxu0 %v7286_v46  ;;  %v7393_v46 = vld [vmem:[%s9484_s5 + $0x24c] ss:$48 sps:$4 sm:$0xff]  }
 0x38d   :  { %2041 = vmatpush1.bf16.msra.mxu1 %v7375_v11  ;;  %2082 = vmatpush1.bf16.msra.mxu0 %v7381_v28  ;;  %9866 = vst [vmem:[#allocation14_spill] sm:$0xff] %v7393_v46  ;;  %v7401_v28 = vld [vmem:[%s9484_s5 + $0x240] ss:$48 sps:$4 sm:$0xff]   ;;  %v7419_v11 = vld [vmem:[%s9484_s5 + $0x1ec] ss:$48 sps:$4 sm:$0xff]  }
 0x38e   :  { %2042 = vmatprep.subr.bf16.mxu1 %v7387_v54  ;;  %2083 = vmatprep.subr.bf16.mxu0 %v7393_v46  ;;  %9867 = vst [vmem:[#allocation15_spill] sm:$0xff] %v7401_v28  ;;  %v7407_v54 = vld [vmem:[%s9484_s5 + $0x248] ss:$48 sps:$4 sm:$0xff]   ;;  %v7413_v46 = vld [vmem:[%s9484_s5 + $0x1e4] ss:$48 sps:$4 sm:$0xff]   ;;  %9870 = vst [vmem:[#allocation18_spill] sm:$0xff] %v7419_v11 }
 0x38f   :  { %2072 = vmatprep.mubr.bf16.mxu1 %v9797_v43  ;;  %2113 = vmatprep.mubr.bf16.mxu0 %v9797_v43  ;;  %9868 = vst [vmem:[#allocation16_spill] sm:$0xff] %v7407_v54  ;;  %9869 = vst [vmem:[#allocation17_spill] sm:$0xff] %v7413_v46 }
 0x391   :  { %2043 = vmatpush1.bf16.msra.mxu1 %v7401_v28  ;;  %2084 = vmatpush1.bf16.msra.mxu0 %v7407_v54  ;;  %v7425_v28 = vld [vmem:[%s9484_s5 + $0x1e0] ss:$48 sps:$4 sm:$0xff]   ;;  %v7431_v54 = vld [vmem:[%s9484_s5 + $0x1e8] ss:$48 sps:$4 sm:$0xff]  }
 0x392   :  { %2044 = vmatprep.subr.bf16.mxu1 %v7413_v46  ;;  %2085 = vmatprep.subr.bf16.mxu0 %v7419_v11  ;;  %9871 = vst [vmem:[#allocation19_spill] sm:$0xff] %v7425_v28  ;;  %9872 = vst [vmem:[#allocation20_spill] sm:$0xff] %v7431_v54  ;;  %v7437_v46 = vld [vmem:[%s9484_s5 + $0x184] ss:$48 sps:$4 sm:$0xff]   ;;  %v7443_v11 = vld [vmem:[%s9484_s5 + $0x18c] ss:$48 sps:$4 sm:$0xff]  }
 0x393   :  { %9873 = vst [vmem:[#allocation21_spill] sm:$0xff] %v7437_v46  ;;  %9874 = vst [vmem:[#allocation22_spill] sm:$0xff] %v7443_v11 }
 0x395   :  { %2045 = vmatpush1.bf16.msra.mxu1 %v7425_v28  ;;  %2086 = vmatpush1.bf16.msra.mxu0 %v7431_v54  ;;  %v7449_v28 = vld [vmem:[%s9484_s5 + $0x180] ss:$48 sps:$4 sm:$0xff]   ;;  %v7455_v54 = vld [vmem:[%s9484_s5 + $0x188] ss:$48 sps:$4 sm:$0xff]  }
 0x396   :  { %2046 = vmatprep.subr.bf16.mxu1 %v7437_v46  ;;  %2087 = vmatprep.subr.bf16.mxu0 %v7443_v11  ;;  %9875 = vst [vmem:[#allocation23_spill] sm:$0xff] %v7449_v28  ;;  %9876 = vst [vmem:[#allocation24_spill] sm:$0xff] %v7455_v54  ;;  %v7461_v46 = vld [vmem:[%s9484_s5 + $0x124] ss:$48 sps:$4 sm:$0xff]   ;;  %v7467_v11 = vld [vmem:[%s9484_s5 + $0x12c] ss:$48 sps:$4 sm:$0xff]  }
 0x397   :  { %9877 = vst [vmem:[#allocation25_spill] sm:$0xff] %v7461_v46  ;;  %9878 = vst [vmem:[#allocation54_spill] sm:$0xff] %v7467_v11 }
 0x399   :  { %2047 = vmatpush1.bf16.msra.mxu1 %v7449_v28  ;;  %2088 = vmatpush1.bf16.msra.mxu0 %v7455_v54  ;;  %v7473_v28 = vld [vmem:[%s9484_s5 + $0x120] ss:$48 sps:$4 sm:$0xff]   ;;  %v7479_v54 = vld [vmem:[%s9484_s5 + $0x128] ss:$48 sps:$4 sm:$0xff]  }
 0x39a   :  { %2048 = vmatprep.subr.bf16.mxu1 %v7461_v46  ;;  %2089 = vmatprep.subr.bf16.mxu0 %v7467_v11  ;;  %9879 = vst [vmem:[#allocation55_spill] sm:$0xff] %v7473_v28  ;;  %9880 = vst [vmem:[#allocation56_spill] sm:$0xff] %v7479_v54  ;;  %v7485_v46 = vld [vmem:[%s9484_s5 + $0xc4] ss:$48 sps:$4 sm:$0xff]   ;;  %v7491_v11 = vld [vmem:[%s9484_s5 + $0xcc] ss:$48 sps:$4 sm:$0xff]  }
 0x39b   :  { %9881 = vst [vmem:[#allocation57_spill] sm:$0xff] %v7485_v46  ;;  %9882 = vst [vmem:[#allocation58_spill] sm:$0xff] %v7491_v11 }
 0x39d   :  { %2049 = vmatpush1.bf16.msra.mxu1 %v7473_v28  ;;  %2090 = vmatpush1.bf16.msra.mxu0 %v7479_v54  ;;  %v7497_v28 = vld [vmem:[%s9484_s5 + $0xc0] ss:$48 sps:$4 sm:$0xff]   ;;  %v7503_v54 = vld [vmem:[%s9484_s5 + $0xc8] ss:$48 sps:$4 sm:$0xff]  }
 0x39e   :  { %2050 = vmatprep.subr.bf16.mxu1 %v7485_v46  ;;  %2091 = vmatprep.subr.bf16.mxu0 %v7491_v11  ;;  %9883 = vst [vmem:[#allocation59_spill] sm:$0xff] %v7497_v28  ;;  %9884 = vst [vmem:[#allocation60_spill] sm:$0xff] %v7503_v54  ;;  %v7509_v46 = vld [vmem:[%s9484_s5 + $0x64] ss:$48 sps:$4 sm:$0xff]   ;;  %v7515_v11 = vld [vmem:[%s9484_s5 + $0x6c] ss:$48 sps:$4 sm:$0xff]  }
 0x39f   :  { %9885 = vst [vmem:[#allocation61_spill] sm:$0xff] %v7509_v46  ;;  %9886 = vst [vmem:[#allocation62_spill] sm:$0xff] %v7515_v11 }
 0x3a1   :  { %2051 = vmatpush1.bf16.msra.mxu1 %v7497_v28  ;;  %2092 = vmatpush1.bf16.msra.mxu0 %v7503_v54  ;;  %v7521_v28 = vld [vmem:[%s9484_s5 + $0x60] ss:$48 sps:$4 sm:$0xff]   ;;  %v7527_v54 = vld [vmem:[%s9484_s5 + $0x68] ss:$48 sps:$4 sm:$0xff]  }
 0x3a2   :  { %2052 = vmatprep.subr.bf16.mxu1 %v7509_v46  ;;  %2093 = vmatprep.subr.bf16.mxu0 %v7515_v11  ;;  %9887 = vst [vmem:[#allocation63_spill] sm:$0xff] %v7521_v28  ;;  %9888 = vst [vmem:[#allocation64_spill] sm:$0xff] %v7527_v54  ;;  %v7533_v46 = vld [vmem:[%s9484_s5 + $0x4] ss:$48 sps:$4 sm:$0xff]   ;;  %v7539_v11 = vld [vmem:[%s9484_s5 + $0xc] ss:$48 sps:$4 sm:$0xff]  }
 0x3a3   :  { %9889 = vst [vmem:[#allocation65_spill] sm:$0xff] %v7533_v46  ;;  %9890 = vst [vmem:[#allocation66_spill] sm:$0xff] %v7539_v11 }
 0x3a5   :  { %2053 = vmatpush1.bf16.msra.mxu1 %v7521_v28  ;;  %2094 = vmatpush1.bf16.msra.mxu0 %v7527_v54  ;;  %v7545_v28 = vld [vmem:[%s9484_s5] ss:$48 sps:$4 sm:$0xff]   ;;  %v7551_v54 = vld [vmem:[%s9484_s5 + $0x8] ss:$48 sps:$4 sm:$0xff]  }
 0x3a6   :  { %2054 = vmatprep.subr.bf16.mxu1 %v7533_v46  ;;  %2095 = vmatprep.subr.bf16.mxu0 %v7539_v11  ;;  %9891 = vst [vmem:[#allocation67_spill] sm:$0xff] %v7545_v28  ;;  %9892 = vst [vmem:[#allocation68_spill] sm:$0xff] %v7551_v54  ;;  %v2000_v11 = vld [vmem:[#allocation2 + $0x50] sm:$0xf] }
 0x3a9   :  { %2055 = vmatpush1.bf16.msra.mxu1 %v7545_v28  ;;  %2096 = vmatpush1.bf16.msra.mxu0 %v7551_v54  ;;  %v2002_v54 = vld [vmem:[#allocation2 + $0x8] sm:$0xf] }
 0x3aa   :  { %2122 = vmatprep.subr.bf16.mxu1 %v6788_v37  ;;  %2163 = vmatprep.subr.bf16.mxu0 %v6793_v38  ;;  %v2003_v38 = vld [vmem:[#allocation2 + $0x48] sm:$0xf] }
 0x40c   :  { %v1743_v46 = vpop.f32.mrf.mxu1  ;;  %v1784_v39 = vpop.f32.mrf.mxu0 }
 0x40d   :  { %v2004_v42 = vadd.f32 %v2000_v11, %v1743_v46  ;;  %v2006_v37 = vadd.f32 %v2002_v54, %v1784_v39  ;;  %v2028_v39 = vrot.slane %v7258_v7, 4 }
 0x40e   :  { %v1745_v51 = vpop.f32.mrf.mxu1  ;;  %v1786_v30 = vpop.f32.mrf.mxu0 }
 0x40f   :  { %v5273_v29 = vmul.f32 -1.442695, %v2004_v42  ;;  %v2005_v28 = vadd.f32 %v2001_v45, %v1745_v51  ;;  %v5275_v41 = vmul.f32 -1.442695, %v2006_v37  ;;  %v2007_v44 = vadd.f32 %v2003_v38, %v1786_v30 }
 0x410   :  { %v1747_v27 = vpop.f32.mrf.mxu1  ;;  %v1788_v35 = vpop.f32.mrf.mxu0 }
 0x411   :  { %5955 = vpow2.f32 %v5273_v29  ;;  %v5274_v17 = vmul.f32 -1.442695, %v2005_v28 }
 0x412   :  { %v1748_v40 = vpop.f32.mrf.mxu1  ;;  %v1789_v25 = vpop.f32.mrf.mxu0 }
 0x413   :  { %5957 = vpow2.f32 %v5274_v17 }
 0x414   :  { %5959 = vpow2.f32 %v5275_v41 }
 0x415   :  { %5961 = vtanh.f32 %v2007_v44 }
 0x41e   :  { %v5956_v33 = vpop.eup %5955 }
 0x41f   :  { %v2017_v24 = vadd.f32 1.0, %v5956_v33 }
 0x420   :  { %v5958_v11 = vpop.eup %5957 }
 0x421   :  { %5963 = vrcp.f32 %v2017_v24  ;;  %v2018_v42 = vadd.f32 1.0, %v5958_v11  ;;  %v5960_v51 = vpop.eup %5959 }
 0x422   :  { %v5962_v27 = vpop.eup %5961  ;;  %v2019_v29 = vadd.f32 1.0, %v5960_v51 }
 0x423   :  { %5965 = vrcp.f32 %v2018_v42 }
 0x424   :  { %5967 = vrcp.f32 %v2019_v29 }
 0x42c   :  { %v1825_v45 = vpop.f32.mrf.mxu1  ;;  %v1866_v35 = vpop.f32.mrf.mxu0 }
 0x42e   :  { %v5964_v40 = vpop.eup %5963  ;;  %v1827_v25 = vpop.f32.mrf.mxu1 }
 0x42f   :  { %v1868_v17 = vpop.f32.mrf.mxu0  ;;  %v2031_v54 = vmul.f32 %v5964_v40, %v5962_v27 }
 0x430   :  { %v5966_v28 = vpop.eup %5965  ;;  %v1829_v30 = vpop.f32.mrf.mxu1 }
 0x431   :  { %v1870_v33 = vpop.f32.mrf.mxu0  ;;  %v2030_v41 = vmul.f32 %v5966_v28, %v2028_v39  ;;  %v5968_v37 = vpop.eup %5967 }
 0x432   :  { %v1830_v46 = vpop.f32.mrf.mxu1 }
 0x433   :  { %v1871_v44 = vpop.f32.mrf.mxu0  ;;  %v7557_v24 = vadd.f32 %v2031_v54, %v2030_v41 }
 0x435   :  { %9893 = vst [vmem:[#allocation69_spill] sm:$0xff] %v7557_v24  ;;  %5969 = vtanh.f32 %v7557_v24 }
 0x442   :  { %v5970_v38 = vpop.eup %5969 }
 0x443   :  { %v2034_v11 = vmul.f32 %v5970_v38, %v5968_v37 }
 0x44c   :  { %v1907_v42 = vpop.f32.mrf.mxu1  ;;  %v1948_v22 = vpop.f32.mrf.mxu0 }
 0x44d   :  { %v1959_v21 = vrot.slane %v1907_v42, 4  ;;  %v1961_v44 = vrot.slane %v1948_v22, 4 }
 0x44e   :  { %v1909_v7 = vpop.f32.mrf.mxu1  ;;  %v1950_v27 = vpop.f32.mrf.mxu0 }
 0x44f   :  { %v1967_v40 = vadd.f32 %v1959_v21, %v1825_v45  ;;  %v1960_v51 = vrot.slane %v1909_v7, 4  ;;  %v1969_v38 = vadd.f32 %v1961_v44, %v1866_v35  ;;  %v1962_v42 = vrot.slane %v1950_v27, 4 }
 0x450   :  { %v1911_v30 = vpop.f32.mrf.mxu1  ;;  %v1952_v33 = vpop.f32.mrf.mxu0 }
 0x451   :  { %v1971_v39 = vadd.f32 %v1967_v40, %v7265_v19  ;;  %v1968_v28 = vadd.f32 %v1960_v51, %v1827_v25  ;;  %v1973_v24 = vadd.f32 %v1969_v38, %v7274_v58  ;;  %v1970_v21 = vadd.f32 %v1962_v42, %v1868_v17  ;;  %v9930_v38 = vld [vmem:[#allocation17_spill] sm:$0xff]  ;;  %v9931_v42 = vld [vmem:[#allocation18_spill] sm:$0xff] }
 0x452   :  { %v1912_v54 = vpop.f32.mrf.mxu1  ;;  %v1953_v41 = vpop.f32.mrf.mxu0 }
 0x453   :  { %v5270_v29 = vmul.f32 -1.442695, %v1971_v39  ;;  %v1972_v46 = vadd.f32 %v1968_v28, %v7268_v23  ;;  %v5272_v45 = vmul.f32 -1.442695, %v1973_v24  ;;  %v1974_v30 = vadd.f32 %v1970_v21, %v7279_v34  ;;  %v9932_v21 = vld [vmem:[#allocation19_spill] sm:$0xff] }
 0x455   :  { %5971 = vpow2.f32 %v5270_v29  ;;  %v5271_v37 = vmul.f32 -1.442695, %v1972_v46 }
 0x457   :  { %5973 = vpow2.f32 %v5271_v37 }
 0x458   :  { %5975 = vpow2.f32 %v5272_v45  ;;  %v9933_v45 = vld [vmem:[#allocation20_spill] sm:$0xff] }
 0x462   :  { %v5972_v7 = vpop.eup %5971 }
 0x463   :  { %v1984_v40 = vadd.f32 1.0, %v5972_v7  ;;  %v9934_v7 = vld [vmem:[#allocation21_spill] sm:$0xff] }
 0x464   :  { %v5974_v25 = vpop.eup %5973 }
 0x465   :  { %5977 = vrcp.f32 %v1984_v40  ;;  %v1985_v51 = vadd.f32 1.0, %v5974_v25  ;;  %v5976_v22 = vpop.eup %5975  ;;  %v9936_v40 = vld [vmem:[#allocation23_spill] sm:$0xff]  ;;  %v9937_v25 = vld [vmem:[#allocation24_spill] sm:$0xff] }
 0x466   :  { %5979 = vtanh.f32 %v1974_v30  ;;  %v1986_v35 = vadd.f32 1.0, %v5976_v22  ;;  %v9935_v30 = vld [vmem:[#allocation22_spill] sm:$0xff] }
 0x467   :  { %5981 = vrcp.f32 %v1985_v51  ;;  %v9938_v51 = vld [vmem:[#allocation25_spill] sm:$0xff]  ;;  %v9939_v22 = vld [vmem:[#allocation54_spill] sm:$0xff] }
 0x468   :  { %5983 = vrcp.f32 %v1986_v35  ;;  %v9943_v35 = vld [vmem:[#allocation58_spill] sm:$0xff] }
 0x472   :  { %v5978_v33 = vpop.eup %5977 }
 0x473   :  { %v5980_v39 = vpop.eup %5979 }
 0x474   :  { %v5982_v28 = vpop.eup %5981  ;;  %v1995_v54 = vmul.f32 %v5980_v39, %v5978_v33  ;;  %v9940_v33 = vld [vmem:[#allocation55_spill] sm:$0xff]  ;;  %v9941_v39 = vld [vmem:[#allocation56_spill] sm:$0xff] }
 0x475   :  { %v1994_v27 = vmul.f32 %v5982_v28, %v7282_v26  ;;  %v5984_v24 = vpop.eup %5983  ;;  %v9911_v26 = vld [vmem:[#allocation43_spill] sm:$0xff]  ;;  %v9942_v28 = vld [vmem:[#allocation57_spill] sm:$0xff] }
 0x477   :  { %v7565_v17 = vadd.f32 %v1995_v54, %v1994_v27  ;;  %v9944_v27 = vld [vmem:[#allocation59_spill] sm:$0xff]  ;;  %v9945_v54 = vld [vmem:[#allocation60_spill] sm:$0xff] }
 0x479   :  { %5985 = vtanh.f32 %v7565_v17 }
 0x486   :  { %v5986_v41 = vpop.eup %5985 }
 0x487   :  { %v1998_v29 = vmul.f32 %v5986_v41, %v5984_v24  ;;  %v9946_v24 = vld [vmem:[#allocation61_spill] sm:$0xff]  ;;  %v9947_v41 = vld [vmem:[#allocation62_spill] sm:$0xff] }
 0x489   :  { %1999 = vst [vmem:[#allocation3 + $0x4] sm:$0xf] %v1998_v29  ;;  %v2036_v46 = vrot.slane %v1998_v29, 4  ;;  %v9948_v29 = vld [vmem:[#allocation63_spill] sm:$0xff] }
 0x48b   :  { %v2038_v44 = vsel %vm85_vm0, %v2034_v11, %v2036_v46  ;;  %v9929_v11 = vld [vmem:[#allocation16_spill] sm:$0xff] }
 0x48c   :  { %v7569_v37 = vpack.c.bf16 %v2038_v44, %v2038_v44  ;;  %v9949_v46 = vld [vmem:[#allocation64_spill] sm:$0xff]  ;;  %v9950_v44 = vld [vmem:[#allocation65_spill] sm:$0xff] }
 0x48e   :  { %2073 = vmatmul.mubr.bf16.vlgmr.msra.gmra.mxu1 %v7569_v37  ;;  %2114 = vmatmul.mubr.bf16.vlgmr.msra.gmra.mxu0 %v7569_v37 }
 0x48f   :  { %2123 = vmatpush1.bf16.msra.mxu1 %v6828_v47  ;;  %2164 = vmatpush1.bf16.msra.mxu0 %v6833_v55  ;;  %v9894_v47 = vld [vmem:[#allocation26_spill] sm:$0xff]  ;;  %v9895_v55 = vld [vmem:[#allocation27_spill] sm:$0xff] }
 0x490   :  { %2124 = vmatprep.subr.bf16.mxu1 %v6840_v48  ;;  %2165 = vmatprep.subr.bf16.mxu0 %v6845_v52  ;;  %v9896_v48 = vld [vmem:[#allocation28_spill] sm:$0xff]  ;;  %v9897_v52 = vld [vmem:[#allocation29_spill] sm:$0xff] }
 0x491   :  { %2154 = vmatprep.mubr.bf16.mxu1 %v9797_v43  ;;  %2195 = vmatprep.mubr.bf16.mxu0 %v9797_v43 }
 0x493   :  { %2125 = vmatpush1.bf16.msra.mxu1 %v6858_v59  ;;  %2166 = vmatpush1.bf16.msra.mxu0 %v6863_v60  ;;  %v9898_v59 = vld [vmem:[#allocation30_spill] sm:$0xff]  ;;  %v9899_v60 = vld [vmem:[#allocation31_spill] sm:$0xff] }
 0x494   :  { %2126 = vmatprep.subr.bf16.mxu1 %v6870_v63  ;;  %2167 = vmatprep.subr.bf16.mxu0 %v6875_v0  ;;  %v9900_v63 = vld [vmem:[#allocation32_spill] sm:$0xff]  ;;  %v9901_v0 = vld [vmem:[#allocation33_spill] sm:$0xff] }
 0x497   :  { %2127 = vmatpush1.bf16.msra.mxu1 %v6884_v1  ;;  %2168 = vmatpush1.bf16.msra.mxu0 %v6889_v2  ;;  %v9902_v1 = vld [vmem:[#allocation34_spill] sm:$0xff]  ;;  %v9903_v2 = vld [vmem:[#allocation35_spill] sm:$0xff] }
 0x498   :  { %2128 = vmatprep.subr.bf16.mxu1 %v6896_v3  ;;  %2169 = vmatprep.subr.bf16.mxu0 %v6901_v8  ;;  %v9904_v3 = vld [vmem:[#allocation36_spill] sm:$0xff]  ;;  %v9905_v8 = vld [vmem:[#allocation37_spill] sm:$0xff] }
 0x49b   :  { %2129 = vmatpush1.bf16.msra.mxu1 %v6908_v9  ;;  %2170 = vmatpush1.bf16.msra.mxu0 %v6913_v10  ;;  %v9906_v9 = vld [vmem:[#allocation38_spill] sm:$0xff]  ;;  %v9907_v10 = vld [vmem:[#allocation39_spill] sm:$0xff] }
 0x49c   :  { %2130 = vmatprep.subr.bf16.mxu1 %v6920_v12  ;;  %2171 = vmatprep.subr.bf16.mxu0 %v6925_v15  ;;  %v9908_v12 = vld [vmem:[#allocation40_spill] sm:$0xff]  ;;  %v9909_v15 = vld [vmem:[#allocation41_spill] sm:$0xff] }
 0x49f   :  { %2131 = vmatpush1.bf16.msra.mxu1 %v6932_v36  ;;  %2172 = vmatpush1.bf16.msra.mxu0 %v9822_v16  ;;  %v9910_v36 = vld [vmem:[#allocation42_spill] sm:$0xff]  ;;  %v9912_v16 = vld [vmem:[#allocation44_spill] sm:$0xff] }
 0x4a0   :  { %2132 = vmatprep.subr.bf16.mxu1 %v9823_v56  ;;  %2173 = vmatprep.subr.bf16.mxu0 %v9824_v49  ;;  %v9913_v56 = vld [vmem:[#allocation45_spill] sm:$0xff]  ;;  %v9914_v49 = vld [vmem:[#allocation46_spill] sm:$0xff] }
 0x4a3   :  { %2133 = vmatpush1.bf16.msra.mxu1 %v9825_v50  ;;  %2174 = vmatpush1.bf16.msra.mxu0 %v9826_v57  ;;  %v9915_v50 = vld [vmem:[#allocation47_spill] sm:$0xff]  ;;  %v9916_v57 = vld [vmem:[#allocation48_spill] sm:$0xff] }
 0x4a4   :  { %2134 = vmatprep.subr.bf16.mxu1 %v9827_v31  ;;  %2175 = vmatprep.subr.bf16.mxu0 %v9828_v61  ;;  %v9917_v31 = vld [vmem:[#allocation49_spill] sm:$0xff]  ;;  %v9918_v61 = vld [vmem:[#allocation50_spill] sm:$0xff] }
 0x4a7   :  { %2135 = vmatpush1.bf16.msra.mxu1 %v9829_v62  ;;  %2176 = vmatpush1.bf16.msra.mxu0 %v9830_v4  ;;  %v9919_v62 = vld [vmem:[#allocation51_spill] sm:$0xff]  ;;  %v9920_v4 = vld [vmem:[#allocation52_spill] sm:$0xff] }
 0x4a8   :  { %2136 = vmatprep.subr.bf16.mxu1 %v9831_v5  ;;  %2177 = vmatprep.subr.bf16.mxu0 %v9832_v6  ;;  %v9921_v5 = vld [vmem:[#allocation53_spill] sm:$0xff] }
 0x4a9   :  { %v9922_v6 = vld [vmem:[#allocation9_spill] sm:$0xff] }
 0x4ab   :  { %2137 = vmatpush1.bf16.msra.mxu1 %v9833_v13  ;;  %2178 = vmatpush1.bf16.msra.mxu0 %v9834_v14  ;;  %v9923_v13 = vld [vmem:[#allocation10_spill] sm:$0xff]  ;;  %v9924_v14 = vld [vmem:[#allocation11_spill] sm:$0xff] }
 0x4ac   :  { %2204 = vmatprep.subr.bf16.mxu1 %v9835_v18  ;;  %2245 = vmatprep.subr.bf16.mxu0 %v9836_v53  ;;  %v9925_v18 = vld [vmem:[#allocation12_spill] sm:$0xff]  ;;  %v9926_v53 = vld [vmem:[#allocation13_spill] sm:$0xff] }
 0x4ae   :  { %2155 = vmatmul.mubr.bf16.vlgmr.msra.gmra.mxu1 %v7569_v37  ;;  %2196 = vmatmul.mubr.bf16.vlgmr.msra.gmra.mxu0 %v7569_v37 }
 0x4af   :  { %2205 = vmatpush1.bf16.msra.mxu1 %v9837_v20  ;;  %2246 = vmatpush1.bf16.msra.mxu0 %v9838_v32  ;;  %v9927_v20 = vld [vmem:[#allocation14_spill] sm:$0xff]  ;;  %v9928_v32 = vld [vmem:[#allocation15_spill] sm:$0xff] }
 0x4b0   :  { %2206 = vmatprep.subr.bf16.mxu1 %v9894_v47  ;;  %2247 = vmatprep.subr.bf16.mxu0 %v9895_v55  ;;  %v9952_v47 = vld [vmem:[#allocation67_spill] sm:$0xff]  ;;  %v9953_v55 = vld [vmem:[#allocation68_spill] sm:$0xff] }
 0x4b1   :  { %2236 = vmatprep.mubr.bf16.mxu1 %v9797_v43  ;;  %2277 = vmatprep.mubr.bf16.mxu0 %v9797_v43 }
 0x4b3   :  { %2207 = vmatpush1.bf16.msra.mxu1 %v9896_v48  ;;  %2248 = vmatpush1.bf16.msra.mxu0 %v9897_v52  ;;  %v7680_v48 = vld [vmem:[%s9484_s5 + $0x2b4] ss:$48 sps:$4 sm:$0xff]   ;;  %v7686_v52 = vld [vmem:[%s9484_s5 + $0x2bc] ss:$48 sps:$4 sm:$0xff]  }
 0x4b4   :  { %2208 = vmatprep.subr.bf16.mxu1 %v9898_v59  ;;  %2249 = vmatprep.subr.bf16.mxu0 %v9899_v60 }
 0x4b7   :  { %2209 = vmatpush1.bf16.msra.mxu1 %v9900_v63  ;;  %2250 = vmatpush1.bf16.msra.mxu0 %v9901_v0  ;;  %v2331_v0 = vld [vmem:[#allocation2 + $0x50] sm:$0xf0] }
 0x4b8   :  { %2210 = vmatprep.subr.bf16.mxu1 %v9902_v1  ;;  %2251 = vmatprep.subr.bf16.mxu0 %v9903_v2 }
 0x4bb   :  { %2211 = vmatpush1.bf16.msra.mxu1 %v9904_v3  ;;  %2252 = vmatpush1.bf16.msra.mxu0 %v9905_v8 }
 0x4bc   :  { %2212 = vmatprep.subr.bf16.mxu1 %v9906_v9  ;;  %2253 = vmatprep.subr.bf16.mxu0 %v9907_v10  ;;  %v2332_v9 = vld [vmem:[#allocation2 + $0x68] sm:$0xf0] }
 0x4bf   :  { %2213 = vmatpush1.bf16.msra.mxu1 %v9908_v12  ;;  %2254 = vmatpush1.bf16.msra.mxu0 %v9909_v15 }
 0x4c0   :  { %2214 = vmatprep.subr.bf16.mxu1 %v9910_v36  ;;  %2255 = vmatprep.subr.bf16.mxu0 %v9911_v26 }
 0x4c3   :  { %2215 = vmatpush1.bf16.msra.mxu1 %v9912_v16  ;;  %2256 = vmatpush1.bf16.msra.mxu0 %v9913_v56 }
 0x4c4   :  { %2216 = vmatprep.subr.bf16.mxu1 %v9914_v49  ;;  %2257 = vmatprep.subr.bf16.mxu0 %v9915_v50  ;;  %v2333_v50 = vld [vmem:[#allocation2 + $0x8] sm:$0xf0] }
 0x4c7   :  { %2217 = vmatpush1.bf16.msra.mxu1 %v9916_v57  ;;  %2258 = vmatpush1.bf16.msra.mxu0 %v9917_v31 }
 0x4c8   :  { %2218 = vmatprep.subr.bf16.mxu1 %v9918_v61  ;;  %2259 = vmatprep.subr.bf16.mxu0 %v9919_v62  ;;  %v2334_v62 = vld [vmem:[#allocation2 + $0x48] sm:$0xf0] }
 0x4cb   :  { %2219 = vmatpush1.bf16.msra.mxu1 %v9920_v4  ;;  %2260 = vmatpush1.bf16.msra.mxu0 %v9921_v5 }
 0x4cc   :  { %2386 = vmatprep.subr.bf16.mxu1 %v9922_v6  ;;  %2427 = vmatprep.subr.bf16.mxu0 %v9923_v13 }
 0x4ce   :  { %2237 = vmatmul.mubr.bf16.vlgmr.msra.gmra.mxu1 %v7569_v37  ;;  %2278 = vmatmul.mubr.bf16.vlgmr.msra.gmra.mxu0 %v7569_v37  ;;  %v9951_v37 = vld [vmem:[#allocation66_spill] sm:$0xff] }
 0x4cf   :  { %2387 = vmatpush1.bf16.msra.mxu1 %v9924_v14  ;;  %2428 = vmatpush1.bf16.msra.mxu0 %v9925_v18 }
 0x4d0   :  { %2388 = vmatprep.subr.bf16.mxu1 %v9926_v53  ;;  %2429 = vmatprep.subr.bf16.mxu0 %v9927_v20 }
 0x4d1   :  { %2418 = vmatprep.mubr.bf16.mxu1 %v9797_v43  ;;  %2459 = vmatprep.mubr.bf16.mxu0 %v9797_v43 }
 0x4d3   :  { %2389 = vmatpush1.bf16.msra.mxu1 %v9928_v32  ;;  %2430 = vmatpush1.bf16.msra.mxu0 %v9929_v11 }
 0x4d4   :  { %2390 = vmatprep.subr.bf16.mxu1 %v9930_v38  ;;  %2431 = vmatprep.subr.bf16.mxu0 %v9931_v42 }
 0x4d7   :  { %2391 = vmatpush1.bf16.msra.mxu1 %v9932_v21  ;;  %2432 = vmatpush1.bf16.msra.mxu0 %v9933_v45 }
 0x4d8   :  { %2392 = vmatprep.subr.bf16.mxu1 %v9934_v7  ;;  %2433 = vmatprep.subr.bf16.mxu0 %v9935_v30 }
 0x4db   :  { %2393 = vmatpush1.bf16.msra.mxu1 %v9936_v40  ;;  %2434 = vmatpush1.bf16.msra.mxu0 %v9937_v25 }
 0x4dc   :  { %2394 = vmatprep.subr.bf16.mxu1 %v9938_v51  ;;  %2435 = vmatprep.subr.bf16.mxu0 %v9939_v22 }
 0x4df   :  { %2395 = vmatpush1.bf16.msra.mxu1 %v9940_v33  ;;  %2436 = vmatpush1.bf16.msra.mxu0 %v9941_v39 }
 0x4e0   :  { %2396 = vmatprep.subr.bf16.mxu1 %v9942_v28  ;;  %2437 = vmatprep.subr.bf16.mxu0 %v9943_v35 }
 0x4e3   :  { %2397 = vmatpush1.bf16.msra.mxu1 %v9944_v27  ;;  %2438 = vmatpush1.bf16.msra.mxu0 %v9945_v54 }
 0x4e4   :  { %2398 = vmatprep.subr.bf16.mxu1 %v9946_v24  ;;  %2439 = vmatprep.subr.bf16.mxu0 %v9947_v41 }
 0x4e7   :  { %2399 = vmatpush1.bf16.msra.mxu1 %v9948_v29  ;;  %2440 = vmatpush1.bf16.msra.mxu0 %v9949_v46 }
 0x4e8   :  { %2400 = vmatprep.subr.bf16.mxu1 %v9950_v44  ;;  %2441 = vmatprep.subr.bf16.mxu0 %v9951_v37 }
 0x4eb   :  { %2401 = vmatpush1.bf16.msra.mxu1 %v9952_v47  ;;  %2442 = vmatpush1.bf16.msra.mxu0 %v9953_v55 }
 0x4ec   :  { %2468 = vmatprep.subr.bf16.mxu1 %v7680_v48  ;;  %2509 = vmatprep.subr.bf16.mxu0 %v7686_v52 }
 0x54e   :  { %v2074_v59 = vpop.f32.mrf.mxu1  ;;  %v2115_v60 = vpop.f32.mrf.mxu0 }
 0x54f   :  { %v2339_v63 = vrot.slane %v2074_v59, 4  ;;  %v2341_v49 = vrot.slane %v2115_v60, 4 }
 0x550   :  { %v2076_v1 = vpop.f32.mrf.mxu1  ;;  %v2117_v2 = vpop.f32.mrf.mxu0 }
 0x551   :  { %v2347_v3 = vadd.f32 %v2339_v63, %v2331_v0  ;;  %v2340_v8 = vrot.slane %v2076_v1, 4  ;;  %v2349_v57 = vadd.f32 %v2341_v49, %v2333_v50  ;;  %v2342_v31 = vrot.slane %v2117_v2, 4 }
 0x552   :  { %v2078_v10 = vpop.f32.mrf.mxu1  ;;  %v2119_v12 = vpop.f32.mrf.mxu0 }
 0x553   :  { %v5279_v15 = vmul.f32 -1.442695, %v2347_v3  ;;  %v2348_v36 = vadd.f32 %v2340_v8, %v2332_v9  ;;  %v5281_v61 = vmul.f32 -1.442695, %v2349_v57  ;;  %v2350_v4 = vadd.f32 %v2342_v31, %v2334_v62 }
 0x554   :  { %v2079_v26 = vpop.f32.mrf.mxu1  ;;  %v2120_v16 = vpop.f32.mrf.mxu0 }
 0x555   :  { %5987 = vpow2.f32 %v5279_v15  ;;  %v5280_v56 = vmul.f32 -1.442695, %v2348_v36  ;;  %v9954_v36 = vld [vmem:[#allocation69_spill] sm:$0xff] }
 0x556   :  { %v2371_v26 = vrot.slane %v9954_v36, 4 }
 0x557   :  { %5989 = vpow2.f32 %v5280_v56 }
 0x558   :  { %5991 = vpow2.f32 %v5281_v61 }
 0x559   :  { %5993 = vtanh.f32 %v2350_v4 }
 0x562   :  { %v5988_v5 = vpop.eup %5987 }
 0x563   :  { %v2360_v59 = vadd.f32 1.0, %v5988_v5 }
 0x564   :  { %v5990_v63 = vpop.eup %5989 }
 0x565   :  { %5995 = vrcp.f32 %v2360_v59  ;;  %v2361_v0 = vadd.f32 1.0, %v5990_v63  ;;  %v5992_v8 = vpop.eup %5991 }
 0x566   :  { %v5994_v10 = vpop.eup %5993  ;;  %v2362_v49 = vadd.f32 1.0, %v5992_v8 }
 0x567   :  { %5997 = vrcp.f32 %v2361_v0 }
 0x568   :  { %5999 = vrcp.f32 %v2362_v49 }
 0x56e   :  { %v2156_v1 = vpop.f32.mrf.mxu1  ;;  %v2197_v3 = vpop.f32.mrf.mxu0 }
 0x570   :  { %v2158_v9 = vpop.f32.mrf.mxu1  ;;  %v2199_v60 = vpop.f32.mrf.mxu0 }
 0x572   :  { %v5996_v12 = vpop.eup %5995  ;;  %v2160_v15 = vpop.f32.mrf.mxu1 }
 0x573   :  { %v2201_v2 = vpop.f32.mrf.mxu0  ;;  %v2374_v16 = vmul.f32 %v5996_v12, %v5994_v10 }
 0x574   :  { %v5998_v56 = vpop.eup %5997  ;;  %v2161_v50 = vpop.f32.mrf.mxu1 }
 0x575   :  { %v2202_v57 = vpop.f32.mrf.mxu0  ;;  %v2373_v31 = vmul.f32 %v5998_v56, %v2371_v26  ;;  %v6000_v62 = vpop.eup %5999 }
 0x577   :  { %v7690_v61 = vadd.f32 %v2374_v16, %v2373_v31 }
 0x579   :  { %9955 = vst [vmem:[#allocation26_spill] sm:$0xff] %v7690_v61  ;;  %6001 = vtanh.f32 %v7690_v61 }
 0x586   :  { %v6002_v4 = vpop.eup %6001 }
 0x587   :  { %v2377_v5 = vmul.f32 %v6002_v4, %v6000_v62 }
 0x58e   :  { %v2238_v59 = vpop.f32.mrf.mxu1  ;;  %v2279_v63 = vpop.f32.mrf.mxu0 }
 0x58f   :  { %v2290_v0 = vrot.slane %v2238_v59, 4  ;;  %v2292_v31 = vrot.slane %v2279_v63, 4 }
 0x590   :  { %v2240_v15 = vpop.f32.mrf.mxu1  ;;  %v2281_v2 = vpop.f32.mrf.mxu0 }
 0x591   :  { %v2298_v36 = vadd.f32 %v2290_v0, %v2156_v1  ;;  %v2291_v10 = vrot.slane %v2240_v15, 4  ;;  %v2300_v4 = vadd.f32 %v2292_v31, %v2197_v3  ;;  %v2293_v59 = vrot.slane %v2281_v2, 4 }
 0x592   :  { %v2242_v12 = vpop.f32.mrf.mxu1  ;;  %v2283_v8 = vpop.f32.mrf.mxu0 }
 0x593   :  { %v2302_v50 = vadd.f32 %v2298_v36, %v7265_v19  ;;  %v2299_v26 = vadd.f32 %v2291_v10, %v2158_v9  ;;  %v2304_v61 = vadd.f32 %v2300_v4, %v7274_v58  ;;  %v2301_v1 = vadd.f32 %v2293_v59, %v2199_v60  ;;  %v7721_v59 = vld [vmem:[%s9484_s5 + $0x254] ss:$48 sps:$4 sm:$0xff]  }
 0x594   :  { %v2243_v16 = vpop.f32.mrf.mxu1  ;;  %v2284_v56 = vpop.f32.mrf.mxu0 }
 0x595   :  { %v5276_v49 = vmul.f32 -1.442695, %v2302_v50  ;;  %v2303_v57 = vadd.f32 %v2299_v26, %v7268_v23  ;;  %v5278_v0 = vmul.f32 -1.442695, %v2304_v61  ;;  %v2305_v12 = vadd.f32 %v2301_v1, %v7279_v34  ;;  %v7727_v1 = vld [vmem:[%s9484_s5 + $0x25c] ss:$48 sps:$4 sm:$0xff]  }
 0x597   :  { %6003 = vpow2.f32 %v5276_v49  ;;  %v5277_v62 = vmul.f32 -1.442695, %v2303_v57  ;;  %v2379_v57 = vrot.slane %v2377_v5, 4  ;;  %v7715_v5 = vld [vmem:[%s9484_s5 + $0x2b8] ss:$48 sps:$4 sm:$0xff]  }
 0x599   :  { %6005 = vpow2.f32 %v5277_v62 }
 0x59a   :  { %6007 = vpow2.f32 %v5278_v0  ;;  %v7735_v0 = vld [vmem:[%s9484_s5 + $0x250] ss:$48 sps:$4 sm:$0xff]  }
 0x5a4   :  { %v6004_v15 = vpop.eup %6003 }
 0x5a5   :  { %v2315_v36 = vadd.f32 1.0, %v6004_v15  ;;  %v7741_v15 = vld [vmem:[%s9484_s5 + $0x258] ss:$48 sps:$4 sm:$0xff]  }
 0x5a6   :  { %v6006_v9 = vpop.eup %6005 }
 0x5a7   :  { %6009 = vrcp.f32 %v2315_v36  ;;  %v2316_v10 = vadd.f32 1.0, %v6006_v9  ;;  %v6008_v63 = vpop.eup %6007  ;;  %v7753_v36 = vld [vmem:[%s9484_s5 + $0x1fc] ss:$48 sps:$4 sm:$0xff]   ;;  %v7759_v9 = vld [vmem:[%s9484_s5 + $0x1f0] ss:$48 sps:$4 sm:$0xff]  }
 0x5a8   :  { %6011 = vtanh.f32 %v2305_v12  ;;  %v2317_v3 = vadd.f32 1.0, %v6008_v63  ;;  %v7747_v12 = vld [vmem:[%s9484_s5 + $0x1f4] ss:$48 sps:$4 sm:$0xff]  }
 0x5a9   :  { %6013 = vrcp.f32 %v2316_v10  ;;  %v7765_v10 = vld [vmem:[%s9484_s5 + $0x1f8] ss:$48 sps:$4 sm:$0xff]   ;;  %v7771_v63 = vld [vmem:[%s9484_s5 + $0x194] ss:$48 sps:$4 sm:$0xff]  }
 0x5aa   :  { %6015 = vrcp.f32 %v2317_v3  ;;  %v7795_v3 = vld [vmem:[%s9484_s5 + $0x134] ss:$48 sps:$4 sm:$0xff]  }
 0x5b4   :  { %v6010_v8 = vpop.eup %6009 }
 0x5b5   :  { %v6012_v50 = vpop.eup %6011 }
 0x5b6   :  { %v6014_v26 = vpop.eup %6013  ;;  %v2326_v16 = vmul.f32 %v6012_v50, %v6010_v8  ;;  %v7777_v8 = vld [vmem:[%s9484_s5 + $0x19c] ss:$48 sps:$4 sm:$0xff]   ;;  %v7783_v50 = vld [vmem:[%s9484_s5 + $0x190] ss:$48 sps:$4 sm:$0xff]  }
 0x5b7   :  { %v2325_v2 = vmul.f32 %v6014_v26, %v7565_v17  ;;  %v6016_v61 = vpop.eup %6015  ;;  %v7709_v17 = vld [vmem:[%s9484_s5 + $0x2b0] ss:$48 sps:$4 sm:$0xff]   ;;  %v7789_v26 = vld [vmem:[%s9484_s5 + $0x198] ss:$48 sps:$4 sm:$0xff]  }
 0x5b9   :  { %v7698_v60 = vadd.f32 %v2326_v16, %v2325_v2  ;;  %v7801_v2 = vld [vmem:[%s9484_s5 + $0x13c] ss:$48 sps:$4 sm:$0xff]   ;;  %v7807_v16 = vld [vmem:[%s9484_s5 + $0x130] ss:$48 sps:$4 sm:$0xff]  }
 0x5bb   :  { %6017 = vtanh.f32 %v7698_v60 }
 0x5c8   :  { %v6018_v56 = vpop.eup %6017 }
 0x5c9   :  { %v2329_v49 = vmul.f32 %v6018_v56, %v6016_v61  ;;  %v7813_v61 = vld [vmem:[%s9484_s5 + $0x138] ss:$48 sps:$4 sm:$0xff]   ;;  %v7819_v56 = vld [vmem:[%s9484_s5 + $0xd4] ss:$48 sps:$4 sm:$0xff]  }
 0x5cb   :  { %2330 = vst [vmem:[#allocation3 + $0x8] sm:$0xf] %v2329_v49  ;;  %v2382_v31 = vrot.slane %v2329_v49, 4  ;;  %v7825_v49 = vld [vmem:[%s9484_s5 + $0xdc] ss:$48 sps:$4 sm:$0xff]  }
 0x5cc   :  { %9956 = vst [vmem:[#allocation27_spill] sm:$0xff] %v7825_v49 }
 0x5cd   :  { %v2384_v62 = vsel %vm85_vm0, %v2379_v57, %v2382_v31  ;;  %v7831_v57 = vld [vmem:[%s9484_s5 + $0xd0] ss:$48 sps:$4 sm:$0xff]   ;;  %v7837_v31 = vld [vmem:[%s9484_s5 + $0xd8] ss:$48 sps:$4 sm:$0xff]  }
 0x5ce   :  { %v7702_v4 = vpack.c.bf16 %v2384_v62, %v2384_v62  ;;  %9957 = vst [vmem:[#allocation28_spill] sm:$0xff] %v7831_v57  ;;  %9958 = vst [vmem:[#allocation29_spill] sm:$0xff] %v7837_v31  ;;  %v7843_v62 = vld [vmem:[%s9484_s5 + $0x74] ss:$48 sps:$4 sm:$0xff]  }
 0x5cf   :  { %9959 = vst [vmem:[#allocation30_spill] sm:$0xff] %v7843_v62 }
 0x5d0   :  { %2419 = vmatmul.mubr.bf16.vlgmr.msra.gmra.mxu1 %v7702_v4  ;;  %2460 = vmatmul.mubr.bf16.vlgmr.msra.gmra.mxu0 %v7702_v4 }
 0x5d1   :  { %2469 = vmatpush1.bf16.msra.mxu1 %v7709_v17  ;;  %2510 = vmatpush1.bf16.msra.mxu0 %v7715_v5 }
 0x5d2   :  { %2470 = vmatprep.subr.bf16.mxu1 %v7721_v59  ;;  %2511 = vmatprep.subr.bf16.mxu0 %v7727_v1 }
 0x5d3   :  { %2500 = vmatprep.mubr.bf16.mxu1 %v9797_v43  ;;  %2541 = vmatprep.mubr.bf16.mxu0 %v9797_v43 }
 0x5d5   :  { %2471 = vmatpush1.bf16.msra.mxu1 %v7735_v0  ;;  %2512 = vmatpush1.bf16.msra.mxu0 %v7741_v15 }
 0x5d6   :  { %2472 = vmatprep.subr.bf16.mxu1 %v7747_v12  ;;  %2513 = vmatprep.subr.bf16.mxu0 %v7753_v36 }
 0x5d9   :  { %2473 = vmatpush1.bf16.msra.mxu1 %v7759_v9  ;;  %2514 = vmatpush1.bf16.msra.mxu0 %v7765_v10 }
 0x5da   :  { %2474 = vmatprep.subr.bf16.mxu1 %v7771_v63  ;;  %2515 = vmatprep.subr.bf16.mxu0 %v7777_v8 }
 0x5dd   :  { %2475 = vmatpush1.bf16.msra.mxu1 %v7783_v50  ;;  %2516 = vmatpush1.bf16.msra.mxu0 %v7789_v26 }
 0x5de   :  { %2476 = vmatprep.subr.bf16.mxu1 %v7795_v3  ;;  %2517 = vmatprep.subr.bf16.mxu0 %v7801_v2 }
 0x5e1   :  { %2477 = vmatpush1.bf16.msra.mxu1 %v7807_v16  ;;  %2518 = vmatpush1.bf16.msra.mxu0 %v7813_v61 }
 0x5e2   :  { %2478 = vmatprep.subr.bf16.mxu1 %v7819_v56  ;;  %2519 = vmatprep.subr.bf16.mxu0 %v7825_v49  ;;  %v7849_v49 = vld [vmem:[%s9484_s5 + $0x7c] ss:$48 sps:$4 sm:$0xff]  }
 0x5e3   :  { %9960 = vst [vmem:[#allocation31_spill] sm:$0xff] %v7849_v49 }
 0x5e5   :  { %2479 = vmatpush1.bf16.msra.mxu1 %v7831_v57  ;;  %2520 = vmatpush1.bf16.msra.mxu0 %v7837_v31  ;;  %v7855_v57 = vld [vmem:[%s9484_s5 + $0x70] ss:$48 sps:$4 sm:$0xff]   ;;  %v7861_v31 = vld [vmem:[%s9484_s5 + $0x78] ss:$48 sps:$4 sm:$0xff]  }
 0x5e6   :  { %2480 = vmatprep.subr.bf16.mxu1 %v7843_v62  ;;  %2521 = vmatprep.subr.bf16.mxu0 %v7849_v49  ;;  %9961 = vst [vmem:[#allocation32_spill] sm:$0xff] %v7855_v57  ;;  %9962 = vst [vmem:[#allocation33_spill] sm:$0xff] %v7861_v31  ;;  %v7867_v62 = vld [vmem:[%s9484_s5 + $0x14] ss:$48 sps:$4 sm:$0xff]   ;;  %v7873_v49 = vld [vmem:[%s9484_s5 + $0x1c] ss:$48 sps:$4 sm:$0xff]  }
 0x5e7   :  { %9963 = vst [vmem:[#allocation34_spill] sm:$0xff] %v7867_v62  ;;  %9964 = vst [vmem:[#allocation35_spill] sm:$0xff] %v7873_v49 }
 0x5e9   :  { %2481 = vmatpush1.bf16.msra.mxu1 %v7855_v57  ;;  %2522 = vmatpush1.bf16.msra.mxu0 %v7861_v31  ;;  %v7879_v57 = vld [vmem:[%s9484_s5 + $0x10] ss:$48 sps:$4 sm:$0xff]   ;;  %v7885_v31 = vld [vmem:[%s9484_s5 + $0x18] ss:$48 sps:$4 sm:$0xff]  }
 0x5ea   :  { %2482 = vmatprep.subr.bf16.mxu1 %v7867_v62  ;;  %2523 = vmatprep.subr.bf16.mxu0 %v7873_v49  ;;  %9965 = vst [vmem:[#allocation36_spill] sm:$0xff] %v7879_v57  ;;  %9966 = vst [vmem:[#allocation37_spill] sm:$0xff] %v7885_v31  ;;  %v7891_v62 = vld [vmem:[%s9484_s5 + $0x2c4] ss:$48 sps:$4 sm:$0xff]   ;;  %v7897_v49 = vld [vmem:[%s9484_s5 + $0x2cc] ss:$48 sps:$4 sm:$0xff]  }
 0x5eb   :  { %9967 = vst [vmem:[#allocation38_spill] sm:$0xff] %v7891_v62  ;;  %9968 = vst [vmem:[#allocation39_spill] sm:$0xff] %v7897_v49 }
 0x5ed   :  { %2483 = vmatpush1.bf16.msra.mxu1 %v7879_v57  ;;  %2524 = vmatpush1.bf16.msra.mxu0 %v7885_v31  ;;  %v7905_v31 = vld [vmem:[%s9484_s5 + $0x2c0] ss:$48 sps:$4 sm:$0xff]   ;;  %v7923_v57 = vld [vmem:[%s9484_s5 + $0x26c] ss:$48 sps:$4 sm:$0xff]  }
 0x5ee   :  { %2550 = vmatprep.subr.bf16.mxu1 %v7891_v62  ;;  %2591 = vmatprep.subr.bf16.mxu0 %v7897_v49  ;;  %9969 = vst [vmem:[#allocation40_spill] sm:$0xff] %v7905_v31  ;;  %v7911_v62 = vld [vmem:[%s9484_s5 + $0x2c8] ss:$48 sps:$4 sm:$0xff]   ;;  %v7917_v49 = vld [vmem:[%s9484_s5 + $0x264] ss:$48 sps:$4 sm:$0xff]   ;;  %9972 = vst [vmem:[#allocation43_spill] sm:$0xff] %v7923_v57 }
 0x5ef   :  { %9970 = vst [vmem:[#allocation41_spill] sm:$0xff] %v7911_v62  ;;  %9971 = vst [vmem:[#allocation42_spill] sm:$0xff] %v7917_v49 }
 0x5f0   :  { %2501 = vmatmul.mubr.bf16.vlgmr.msra.gmra.mxu1 %v7702_v4  ;;  %2542 = vmatmul.mubr.bf16.vlgmr.msra.gmra.mxu0 %v7702_v4 }
 0x5f1   :  { %2551 = vmatpush1.bf16.msra.mxu1 %v7905_v31  ;;  %2592 = vmatpush1.bf16.msra.mxu0 %v7911_v62  ;;  %v7931_v62 = vld [vmem:[%s9484_s5 + $0x260] ss:$48 sps:$4 sm:$0xff]   ;;  %v7949_v31 = vld [vmem:[%s9484_s5 + $0x20c] ss:$48 sps:$4 sm:$0xff]  }
 0x5f2   :  { %2552 = vmatprep.subr.bf16.mxu1 %v7917_v49  ;;  %2593 = vmatprep.subr.bf16.mxu0 %v7923_v57  ;;  %9973 = vst [vmem:[#allocation44_spill] sm:$0xff] %v7931_v62  ;;  %v7937_v49 = vld [vmem:[%s9484_s5 + $0x268] ss:$48 sps:$4 sm:$0xff]   ;;  %v7943_v57 = vld [vmem:[%s9484_s5 + $0x204] ss:$48 sps:$4 sm:$0xff]   ;;  %9976 = vst [vmem:[#allocation47_spill] sm:$0xff] %v7949_v31 }
 0x5f3   :  { %2582 = vmatprep.mubr.bf16.mxu1 %v9797_v43  ;;  %2623 = vmatprep.mubr.bf16.mxu0 %v9797_v43  ;;  %9974 = vst [vmem:[#allocation45_spill] sm:$0xff] %v7937_v49  ;;  %9975 = vst [vmem:[#allocation46_spill] sm:$0xff] %v7943_v57 }
 0x5f5   :  { %2553 = vmatpush1.bf16.msra.mxu1 %v7931_v62  ;;  %2594 = vmatpush1.bf16.msra.mxu0 %v7937_v49  ;;  %v7955_v62 = vld [vmem:[%s9484_s5 + $0x200] ss:$48 sps:$4 sm:$0xff]   ;;  %v7961_v49 = vld [vmem:[%s9484_s5 + $0x208] ss:$48 sps:$4 sm:$0xff]  }
 0x5f6   :  { %2554 = vmatprep.subr.bf16.mxu1 %v7943_v57  ;;  %2595 = vmatprep.subr.bf16.mxu0 %v7949_v31  ;;  %9977 = vst [vmem:[#allocation48_spill] sm:$0xff] %v7955_v62  ;;  %9978 = vst [vmem:[#allocation49_spill] sm:$0xff] %v7961_v49  ;;  %v7967_v57 = vld [vmem:[%s9484_s5 + $0x1a4] ss:$48 sps:$4 sm:$0xff]   ;;  %v7973_v31 = vld [vmem:[%s9484_s5 + $0x1ac] ss:$48 sps:$4 sm:$0xff]  }
 0x5f7   :  { %9979 = vst [vmem:[#allocation50_spill] sm:$0xff] %v7967_v57  ;;  %9980 = vst [vmem:[#allocation51_spill] sm:$0xff] %v7973_v31 }
 0x5f9   :  { %2555 = vmatpush1.bf16.msra.mxu1 %v7955_v62  ;;  %2596 = vmatpush1.bf16.msra.mxu0 %v7961_v49  ;;  %v7979_v62 = vld [vmem:[%s9484_s5 + $0x1a0] ss:$48 sps:$4 sm:$0xff]   ;;  %v7985_v49 = vld [vmem:[%s9484_s5 + $0x1a8] ss:$48 sps:$4 sm:$0xff]  }
 0x5fa   :  { %2556 = vmatprep.subr.bf16.mxu1 %v7967_v57  ;;  %2597 = vmatprep.subr.bf16.mxu0 %v7973_v31  ;;  %9981 = vst [vmem:[#allocation52_spill] sm:$0xff] %v7979_v62  ;;  %9982 = vst [vmem:[#allocation53_spill] sm:$0xff] %v7985_v49  ;;  %v7991_v57 = vld [vmem:[%s9484_s5 + $0x144] ss:$48 sps:$4 sm:$0xff]   ;;  %v7997_v31 = vld [vmem:[%s9484_s5 + $0x14c] ss:$48 sps:$4 sm:$0xff]  }
 0x5fb   :  { %9983 = vst [vmem:[#allocation9_spill] sm:$0xff] %v7991_v57  ;;  %9984 = vst [vmem:[#allocation10_spill] sm:$0xff] %v7997_v31 }
 0x5fd   :  { %2557 = vmatpush1.bf16.msra.mxu1 %v7979_v62  ;;  %2598 = vmatpush1.bf16.msra.mxu0 %v7985_v49  ;;  %v8003_v62 = vld [vmem:[%s9484_s5 + $0x140] ss:$48 sps:$4 sm:$0xff]   ;;  %v8009_v49 = vld [vmem:[%s9484_s5 + $0x148] ss:$48 sps:$4 sm:$0xff]  }
 0x5fe   :  { %2558 = vmatprep.subr.bf16.mxu1 %v7991_v57  ;;  %2599 = vmatprep.subr.bf16.mxu0 %v7997_v31  ;;  %9985 = vst [vmem:[#allocation11_spill] sm:$0xff] %v8003_v62  ;;  %9986 = vst [vmem:[#allocation12_spill] sm:$0xff] %v8009_v49  ;;  %v8015_v57 = vld [vmem:[%s9484_s5 + $0xe4] ss:$48 sps:$4 sm:$0xff]   ;;  %v8021_v31 = vld [vmem:[%s9484_s5 + $0xec] ss:$48 sps:$4 sm:$0xff]  }
 0x5ff   :  { %9987 = vst [vmem:[#allocation13_spill] sm:$0xff] %v8015_v57  ;;  %9988 = vst [vmem:[#allocation14_spill] sm:$0xff] %v8021_v31 }
 0x601   :  { %2559 = vmatpush1.bf16.msra.mxu1 %v8003_v62  ;;  %2600 = vmatpush1.bf16.msra.mxu0 %v8009_v49  ;;  %v8027_v62 = vld [vmem:[%s9484_s5 + $0xe0] ss:$48 sps:$4 sm:$0xff]   ;;  %v8033_v49 = vld [vmem:[%s9484_s5 + $0xe8] ss:$48 sps:$4 sm:$0xff]  }
 0x602   :  { %2560 = vmatprep.subr.bf16.mxu1 %v8015_v57  ;;  %2601 = vmatprep.subr.bf16.mxu0 %v8021_v31  ;;  %9989 = vst [vmem:[#allocation15_spill] sm:$0xff] %v8027_v62  ;;  %9990 = vst [vmem:[#allocation16_spill] sm:$0xff] %v8033_v49  ;;  %v8039_v57 = vld [vmem:[%s9484_s5 + $0x84] ss:$48 sps:$4 sm:$0xff]   ;;  %v8045_v31 = vld [vmem:[%s9484_s5 + $0x8c] ss:$48 sps:$4 sm:$0xff]  }
 0x603   :  { %9991 = vst [vmem:[#allocation17_spill] sm:$0xff] %v8039_v57  ;;  %9992 = vst [vmem:[#allocation18_spill] sm:$0xff] %v8045_v31 }
 0x605   :  { %2561 = vmatpush1.bf16.msra.mxu1 %v8027_v62  ;;  %2602 = vmatpush1.bf16.msra.mxu0 %v8033_v49  ;;  %v8051_v62 = vld [vmem:[%s9484_s5 + $0x80] ss:$48 sps:$4 sm:$0xff]   ;;  %v8057_v49 = vld [vmem:[%s9484_s5 + $0x88] ss:$48 sps:$4 sm:$0xff]  }
 0x606   :  { %2562 = vmatprep.subr.bf16.mxu1 %v8039_v57  ;;  %2603 = vmatprep.subr.bf16.mxu0 %v8045_v31  ;;  %9993 = vst [vmem:[#allocation19_spill] sm:$0xff] %v8051_v62  ;;  %9994 = vst [vmem:[#allocation20_spill] sm:$0xff] %v8057_v49  ;;  %v8063_v57 = vld [vmem:[%s9484_s5 + $0x24] ss:$48 sps:$4 sm:$0xff]   ;;  %v8069_v31 = vld [vmem:[%s9484_s5 + $0x2c] ss:$48 sps:$4 sm:$0xff]  }
 0x607   :  { %9995 = vst [vmem:[#allocation21_spill] sm:$0xff] %v8063_v57  ;;  %9996 = vst [vmem:[#allocation22_spill] sm:$0xff] %v8069_v31 }
 0x609   :  { %2563 = vmatpush1.bf16.msra.mxu1 %v8051_v62  ;;  %2604 = vmatpush1.bf16.msra.mxu0 %v8057_v49  ;;  %v8075_v62 = vld [vmem:[%s9484_s5 + $0x20] ss:$48 sps:$4 sm:$0xff]   ;;  %v8081_v49 = vld [vmem:[%s9484_s5 + $0x28] ss:$48 sps:$4 sm:$0xff]  }
 0x60a   :  { %2564 = vmatprep.subr.bf16.mxu1 %v8063_v57  ;;  %2605 = vmatprep.subr.bf16.mxu0 %v8069_v31  ;;  %9997 = vst [vmem:[#allocation23_spill] sm:$0xff] %v8075_v62  ;;  %9998 = vst [vmem:[#allocation24_spill] sm:$0xff] %v8081_v49 }
 0x60d   :  { %2565 = vmatpush1.bf16.msra.mxu1 %v8075_v62  ;;  %2606 = vmatpush1.bf16.msra.mxu0 %v8081_v49 }
 0x60e   :  { %2717 = vmatprep.subr.bf16.mxu1 %v9922_v6  ;;  %2758 = vmatprep.subr.bf16.mxu0 %v9923_v13  ;;  %v2677_v13 = vld [vmem:[#allocation2 + $0x40] sm:$0xf] }
 0x610   :  { %2583 = vmatmul.mubr.bf16.vlgmr.msra.gmra.mxu1 %v7702_v4  ;;  %2624 = vmatmul.mubr.bf16.vlgmr.msra.gmra.mxu0 %v7702_v4 }
 0x611   :  { %2718 = vmatpush1.bf16.msra.mxu1 %v9924_v14  ;;  %2759 = vmatpush1.bf16.msra.mxu0 %v9925_v18 }
 0x612   :  { %2719 = vmatprep.subr.bf16.mxu1 %v9926_v53  ;;  %2760 = vmatprep.subr.bf16.mxu0 %v9927_v20  ;;  %v2678_v20 = vld [vmem:[#allocation2 + $0x20] sm:$0xf] }
 0x613   :  { %2749 = vmatprep.mubr.bf16.mxu1 %v9797_v43  ;;  %2790 = vmatprep.mubr.bf16.mxu0 %v9797_v43 }
 0x615   :  { %2720 = vmatpush1.bf16.msra.mxu1 %v9928_v32  ;;  %2761 = vmatpush1.bf16.msra.mxu0 %v9929_v11 }
 0x616   :  { %2721 = vmatprep.subr.bf16.mxu1 %v9930_v38  ;;  %2762 = vmatprep.subr.bf16.mxu0 %v9931_v42 }
 0x619   :  { %2722 = vmatpush1.bf16.msra.mxu1 %v9932_v21  ;;  %2763 = vmatpush1.bf16.msra.mxu0 %v9933_v45 }
 0x61a   :  { %2723 = vmatprep.subr.bf16.mxu1 %v9934_v7  ;;  %2764 = vmatprep.subr.bf16.mxu0 %v9935_v30 }
 0x61d   :  { %2724 = vmatpush1.bf16.msra.mxu1 %v9936_v40  ;;  %2765 = vmatpush1.bf16.msra.mxu0 %v9937_v25  ;;  %v2679_v40 = vld [vmem:[#allocation2 + $0x10] sm:$0xf] }
 0x61e   :  { %2725 = vmatprep.subr.bf16.mxu1 %v9938_v51  ;;  %2766 = vmatprep.subr.bf16.mxu0 %v9939_v22  ;;  %v2680_v22 = vld [vmem:[#allocation2 + $0x38] sm:$0xf] }
 0x621   :  { %2726 = vmatpush1.bf16.msra.mxu1 %v9940_v33  ;;  %2767 = vmatpush1.bf16.msra.mxu0 %v9941_v39 }
 0x622   :  { %2727 = vmatprep.subr.bf16.mxu1 %v9942_v28  ;;  %2768 = vmatprep.subr.bf16.mxu0 %v9943_v35 }
 0x625   :  { %2728 = vmatpush1.bf16.msra.mxu1 %v9944_v27  ;;  %2769 = vmatpush1.bf16.msra.mxu0 %v9945_v54 }
 0x626   :  { %2729 = vmatprep.subr.bf16.mxu1 %v9946_v24  ;;  %2770 = vmatprep.subr.bf16.mxu0 %v9947_v41 }
 0x629   :  { %2730 = vmatpush1.bf16.msra.mxu1 %v9948_v29  ;;  %2771 = vmatpush1.bf16.msra.mxu0 %v9949_v46 }
 0x62a   :  { %2731 = vmatprep.subr.bf16.mxu1 %v9950_v44  ;;  %2772 = vmatprep.subr.bf16.mxu0 %v9951_v37 }
 0x62d   :  { %2732 = vmatpush1.bf16.msra.mxu1 %v9952_v47  ;;  %2773 = vmatpush1.bf16.msra.mxu0 %v9953_v55  ;;  %v9999_v47 = vld [vmem:[#allocation26_spill] sm:$0xff] }
 0x62e   :  { %2799 = vmatprep.subr.bf16.mxu1 %v7680_v48  ;;  %2840 = vmatprep.subr.bf16.mxu0 %v7686_v52  ;;  %v2705_v55 = vrot.slane %v9999_v47, 4 }
 0x690   :  { %v2420_v6 = vpop.f32.mrf.mxu1  ;;  %v2461_v14 = vpop.f32.mrf.mxu0 }
 0x691   :  { %v2681_v18 = vadd.f32 %v2677_v13, %v2420_v6  ;;  %v2683_v25 = vadd.f32 %v2679_v40, %v2461_v14 }
 0x692   :  { %v2422_v53 = vpop.f32.mrf.mxu1  ;;  %v2463_v32 = vpop.f32.mrf.mxu0 }
 0x693   :  { %v5285_v11 = vmul.f32 -1.442695, %v2681_v18  ;;  %v2682_v38 = vadd.f32 %v2678_v20, %v2422_v53  ;;  %v5287_v51 = vmul.f32 -1.442695, %v2683_v25  ;;  %v2684_v33 = vadd.f32 %v2680_v22, %v2463_v32 }
 0x694   :  { %v2424_v42 = vpop.f32.mrf.mxu1  ;;  %v2465_v21 = vpop.f32.mrf.mxu0 }
 0x695   :  { %6019 = vpow2.f32 %v5285_v11  ;;  %v5286_v45 = vmul.f32 -1.442695, %v2682_v38 }
 0x696   :  { %v2425_v7 = vpop.f32.mrf.mxu1  ;;  %v2466_v30 = vpop.f32.mrf.mxu0 }
 0x697   :  { %6021 = vpow2.f32 %v5286_v45 }
 0x698   :  { %6023 = vpow2.f32 %v5287_v51 }
 0x699   :  { %6025 = vtanh.f32 %v2684_v33 }
 0x6a2   :  { %v6020_v39 = vpop.eup %6019 }
 0x6a3   :  { %v2694_v28 = vadd.f32 1.0, %v6020_v39 }
 0x6a4   :  { %v6022_v35 = vpop.eup %6021 }
 0x6a5   :  { %6027 = vrcp.f32 %v2694_v28  ;;  %v2695_v27 = vadd.f32 1.0, %v6022_v35  ;;  %v6024_v54 = vpop.eup %6023 }
 0x6a6   :  { %v6026_v29 = vpop.eup %6025  ;;  %v2696_v13 = vadd.f32 1.0, %v6024_v54 }
 0x6a7   :  { %6029 = vrcp.f32 %v2695_v27 }
 0x6a8   :  { %6031 = vrcp.f32 %v2696_v13 }
 0x6b0   :  { %v2502_v24 = vpop.f32.mrf.mxu1  ;;  %v2543_v41 = vpop.f32.mrf.mxu0 }
 0x6b2   :  { %v6028_v46 = vpop.eup %6027  ;;  %v2504_v44 = vpop.f32.mrf.mxu1 }
 0x6b3   :  { %v2545_v37 = vpop.f32.mrf.mxu0  ;;  %v2708_v4 = vmul.f32 %v6028_v46, %v6026_v29 }
 0x6b4   :  { %v6030_v6 = vpop.eup %6029  ;;  %v2506_v14 = vpop.f32.mrf.mxu1 }
 0x6b5   :  { %v2547_v18 = vpop.f32.mrf.mxu0  ;;  %v2707_v53 = vmul.f32 %v6030_v6, %v2705_v55  ;;  %v6032_v38 = vpop.eup %6031 }
 0x6b6   :  { %v2507_v20 = vpop.f32.mrf.mxu1 }
 0x6b7   :  { %v2548_v32 = vpop.f32.mrf.mxu0  ;;  %v8123_v11 = vadd.f32 %v2708_v4, %v2707_v53 }
 0x6b9   :  { %6033 = vtanh.f32 %v8123_v11 }
 0x6c6   :  { %v6034_v42 = vpop.eup %6033 }
 0x6c7   :  { %v2711_v21 = vmul.f32 %v6034_v42, %v6032_v38 }
 0x6d0   :  { %v2584_v45 = vpop.f32.mrf.mxu1  ;;  %v2625_v7 = vpop.f32.mrf.mxu0 }
 0x6d1   :  { %v2636_v30 = vrot.slane %v2584_v45, 4  ;;  %v2638_v47 = vrot.slane %v2625_v7, 4 }
 0x6d2   :  { %v2586_v40 = vpop.f32.mrf.mxu1  ;;  %v2627_v25 = vpop.f32.mrf.mxu0 }
 0x6d3   :  { %v2644_v51 = vadd.f32 %v2636_v30, %v2502_v24  ;;  %v2637_v22 = vrot.slane %v2586_v40, 4  ;;  %v2646_v4 = vadd.f32 %v2638_v47, %v2543_v41  ;;  %v2639_v6 = vrot.slane %v2627_v25, 4  ;;  %v10007_v47 = vld [vmem:[#allocation34_spill] sm:$0xff] }
 0x6d4   :  { %v2588_v33 = vpop.f32.mrf.mxu1  ;;  %v2629_v39 = vpop.f32.mrf.mxu0 }
 0x6d5   :  { %v2648_v28 = vadd.f32 %v2644_v51, %v7265_v19  ;;  %v2645_v35 = vadd.f32 %v2637_v22, %v2504_v44  ;;  %v2650_v13 = vadd.f32 %v2646_v4, %v7274_v58  ;;  %v2647_v24 = vadd.f32 %v2639_v6, %v2545_v37  ;;  %v10009_v4 = vld [vmem:[#allocation36_spill] sm:$0xff]  ;;  %v10010_v6 = vld [vmem:[#allocation37_spill] sm:$0xff] }
 0x6d6   :  { %v2589_v27 = vpop.f32.mrf.mxu1  ;;  %v2630_v54 = vpop.f32.mrf.mxu0 }
 0x6d7   :  { %v5282_v29 = vmul.f32 -1.442695, %v2648_v28  ;;  %v2649_v46 = vadd.f32 %v2645_v35, %v7268_v23  ;;  %v5284_v14 = vmul.f32 -1.442695, %v2650_v13  ;;  %v2651_v53 = vadd.f32 %v2647_v24, %v7279_v34  ;;  %v10002_v35 = vld [vmem:[#allocation29_spill] sm:$0xff]  ;;  %v10003_v27 = vld [vmem:[#allocation30_spill] sm:$0xff] }
 0x6d8   :  { %v10004_v54 = vld [vmem:[#allocation31_spill] sm:$0xff]  ;;  %v10011_v13 = vld [vmem:[#allocation38_spill] sm:$0xff] }
 0x6d9   :  { %6035 = vpow2.f32 %v5282_v29  ;;  %v5283_v55 = vmul.f32 -1.442695, %v2649_v46  ;;  %v10005_v29 = vld [vmem:[#allocation32_spill] sm:$0xff]  ;;  %v10006_v46 = vld [vmem:[#allocation33_spill] sm:$0xff]  ;;  %v10012_v24 = vld [vmem:[#allocation39_spill] sm:$0xff] }
 0x6db   :  { %6037 = vpow2.f32 %v5283_v55  ;;  %v10008_v55 = vld [vmem:[#allocation35_spill] sm:$0xff] }
 0x6dc   :  { %6039 = vpow2.f32 %v5284_v14  ;;  %v10013_v14 = vld [vmem:[#allocation40_spill] sm:$0xff] }
 0x6e6   :  { %v6036_v18 = vpop.eup %6035 }
 0x6e7   :  { %v2661_v20 = vadd.f32 1.0, %v6036_v18  ;;  %v10014_v18 = vld [vmem:[#allocation41_spill] sm:$0xff] }
 0x6e8   :  { %v6038_v44 = vpop.eup %6037 }
 0x6e9   :  { %6041 = vrcp.f32 %v2661_v20  ;;  %v2662_v32 = vadd.f32 1.0, %v6038_v44  ;;  %v6040_v38 = vpop.eup %6039  ;;  %v10016_v20 = vld [vmem:[#allocation43_spill] sm:$0xff]  ;;  %v10017_v44 = vld [vmem:[#allocation44_spill] sm:$0xff] }
 0x6ea   :  { %6043 = vtanh.f32 %v2651_v53  ;;  %v2663_v41 = vadd.f32 1.0, %v6040_v38  ;;  %v10015_v53 = vld [vmem:[#allocation42_spill] sm:$0xff] }
 0x6eb   :  { %6045 = vrcp.f32 %v2662_v32  ;;  %v10018_v32 = vld [vmem:[#allocation45_spill] sm:$0xff]  ;;  %v10019_v38 = vld [vmem:[#allocation46_spill] sm:$0xff] }
 0x6ec   :  { %6047 = vrcp.f32 %v2663_v41  ;;  %v10023_v41 = vld [vmem:[#allocation50_spill] sm:$0xff] }
 0x6f6   :  { %v6042_v42 = vpop.eup %6041 }
 0x6f7   :  { %v6044_v45 = vpop.eup %6043 }
 0x6f8   :  { %v6046_v7 = vpop.eup %6045  ;;  %v2672_v40 = vmul.f32 %v6044_v45, %v6042_v42  ;;  %v10020_v42 = vld [vmem:[#allocation47_spill] sm:$0xff]  ;;  %v10021_v45 = vld [vmem:[#allocation48_spill] sm:$0xff] }
 0x6f9   :  { %v2671_v30 = vmul.f32 %v6046_v7, %v7698_v60  ;;  %v6048_v25 = vpop.eup %6047  ;;  %v10000_v60 = vld [vmem:[#allocation27_spill] sm:$0xff]  ;;  %v10022_v7 = vld [vmem:[#allocation49_spill] sm:$0xff] }
 0x6fb   :  { %v8131_v37 = vadd.f32 %v2672_v40, %v2671_v30  ;;  %v10024_v30 = vld [vmem:[#allocation51_spill] sm:$0xff]  ;;  %v10025_v40 = vld [vmem:[#allocation52_spill] sm:$0xff] }
 0x6fd   :  { %6049 = vtanh.f32 %v8131_v37 }
 0x70a   :  { %v6050_v51 = vpop.eup %6049 }
 0x70b   :  { %v2675_v22 = vmul.f32 %v6050_v51, %v6048_v25  ;;  %v10026_v25 = vld [vmem:[#allocation53_spill] sm:$0xff] }
 0x70c   :  { %v10027_v51 = vld [vmem:[#allocation9_spill] sm:$0xff] }
 0x70d   :  { %2676 = vst [vmem:[#allocation3 + $0xc] sm:$0xf] %v2675_v22  ;;  %v2713_v33 = vrot.slane %v2675_v22, 4  ;;  %v10028_v22 = vld [vmem:[#allocation10_spill] sm:$0xff] }
 0x70f   :  { %v2715_v39 = vsel %vm85_vm0, %v2711_v21, %v2713_v33  ;;  %v10001_v21 = vld [vmem:[#allocation28_spill] sm:$0xff]  ;;  %v10029_v33 = vld [vmem:[#allocation11_spill] sm:$0xff] }
 0x710   :  { %v8135_v28 = vpack.c.bf16 %v2715_v39, %v2715_v39  ;;  %v10030_v39 = vld [vmem:[#allocation12_spill] sm:$0xff] }
 0x712   :  { %2750 = vmatmul.mubr.bf16.vlgmr.msra.gmra.mxu1 %v8135_v28  ;;  %2791 = vmatmul.mubr.bf16.vlgmr.msra.gmra.mxu0 %v8135_v28 }
 0x713   :  { %2800 = vmatpush1.bf16.msra.mxu1 %v7709_v17  ;;  %2841 = vmatpush1.bf16.msra.mxu0 %v7715_v5 }
 0x714   :  { %2801 = vmatprep.subr.bf16.mxu1 %v7721_v59  ;;  %2842 = vmatprep.subr.bf16.mxu0 %v7727_v1 }
 0x715   :  { %2831 = vmatprep.mubr.bf16.mxu1 %v9797_v43  ;;  %2872 = vmatprep.mubr.bf16.mxu0 %v9797_v43 }
 0x717   :  { %2802 = vmatpush1.bf16.msra.mxu1 %v7735_v0  ;;  %2843 = vmatpush1.bf16.msra.mxu0 %v7741_v15 }
 0x718   :  { %2803 = vmatprep.subr.bf16.mxu1 %v7747_v12  ;;  %2844 = vmatprep.subr.bf16.mxu0 %v7753_v36 }
 0x71b   :  { %2804 = vmatpush1.bf16.msra.mxu1 %v7759_v9  ;;  %2845 = vmatpush1.bf16.msra.mxu0 %v7765_v10 }
 0x71c   :  { %2805 = vmatprep.subr.bf16.mxu1 %v7771_v63  ;;  %2846 = vmatprep.subr.bf16.mxu0 %v7777_v8 }
 0x71f   :  { %2806 = vmatpush1.bf16.msra.mxu1 %v7783_v50  ;;  %2847 = vmatpush1.bf16.msra.mxu0 %v7789_v26 }
 0x720   :  { %2807 = vmatprep.subr.bf16.mxu1 %v7795_v3  ;;  %2848 = vmatprep.subr.bf16.mxu0 %v7801_v2 }
 0x723   :  { %2808 = vmatpush1.bf16.msra.mxu1 %v7807_v16  ;;  %2849 = vmatpush1.bf16.msra.mxu0 %v7813_v61 }
 0x724   :  { %2809 = vmatprep.subr.bf16.mxu1 %v7819_v56  ;;  %2850 = vmatprep.subr.bf16.mxu0 %v10000_v60 }
 0x727   :  { %2810 = vmatpush1.bf16.msra.mxu1 %v10001_v21  ;;  %2851 = vmatpush1.bf16.msra.mxu0 %v10002_v35 }
 0x728   :  { %2811 = vmatprep.subr.bf16.mxu1 %v10003_v27  ;;  %2852 = vmatprep.subr.bf16.mxu0 %v10004_v54 }
 0x72b   :  { %2812 = vmatpush1.bf16.msra.mxu1 %v10005_v29  ;;  %2853 = vmatpush1.bf16.msra.mxu0 %v10006_v46 }
 0x72c   :  { %2813 = vmatprep.subr.bf16.mxu1 %v10007_v47  ;;  %2854 = vmatprep.subr.bf16.mxu0 %v10008_v55 }
 0x72f   :  { %2814 = vmatpush1.bf16.msra.mxu1 %v10009_v4  ;;  %2855 = vmatpush1.bf16.msra.mxu0 %v10010_v6 }
 0x730   :  { %2881 = vmatprep.subr.bf16.mxu1 %v10011_v13  ;;  %2922 = vmatprep.subr.bf16.mxu0 %v10012_v24 }
 0x732   :  { %2832 = vmatmul.mubr.bf16.vlgmr.msra.gmra.mxu1 %v8135_v28  ;;  %2873 = vmatmul.mubr.bf16.vlgmr.msra.gmra.mxu0 %v8135_v28 }
 0x733   :  { %2882 = vmatpush1.bf16.msra.mxu1 %v10013_v14  ;;  %2923 = vmatpush1.bf16.msra.mxu0 %v10014_v18 }
 0x734   :  { %2883 = vmatprep.subr.bf16.mxu1 %v10015_v53  ;;  %2924 = vmatprep.subr.bf16.mxu0 %v10016_v20 }
 0x735   :  { %2913 = vmatprep.mubr.bf16.mxu1 %v9797_v43  ;;  %2954 = vmatprep.mubr.bf16.mxu0 %v9797_v43 }
 0x737   :  { %2884 = vmatpush1.bf16.msra.mxu1 %v10017_v44  ;;  %2925 = vmatpush1.bf16.msra.mxu0 %v10018_v32  ;;  %v3011_v44 = vld [vmem:[#allocation2 + $0x38] sm:$0xf0] }
 0x738   :  { %2885 = vmatprep.subr.bf16.mxu1 %v10019_v38  ;;  %2926 = vmatprep.subr.bf16.mxu0 %v10020_v42  ;;  %v10031_v42 = vld [vmem:[#allocation13_spill] sm:$0xff] }
 0x73b   :  { %2886 = vmatpush1.bf16.msra.mxu1 %v10021_v45  ;;  %2927 = vmatpush1.bf16.msra.mxu0 %v10022_v7  ;;  %v10032_v45 = vld [vmem:[#allocation14_spill] sm:$0xff]  ;;  %v10033_v7 = vld [vmem:[#allocation15_spill] sm:$0xff] }
 0x73c   :  { %2887 = vmatprep.subr.bf16.mxu1 %v10023_v41  ;;  %2928 = vmatprep.subr.bf16.mxu0 %v10024_v30  ;;  %v10034_v41 = vld [vmem:[#allocation16_spill] sm:$0xff]  ;;  %v10035_v30 = vld [vmem:[#allocation17_spill] sm:$0xff] }
 0x73f   :  { %2888 = vmatpush1.bf16.msra.mxu1 %v10025_v40  ;;  %2929 = vmatpush1.bf16.msra.mxu0 %v10026_v25  ;;  %v10036_v40 = vld [vmem:[#allocation18_spill] sm:$0xff]  ;;  %v10037_v25 = vld [vmem:[#allocation19_spill] sm:$0xff] }
 0x740   :  { %2889 = vmatprep.subr.bf16.mxu1 %v10027_v51  ;;  %2930 = vmatprep.subr.bf16.mxu0 %v10028_v22  ;;  %v10038_v51 = vld [vmem:[#allocation20_spill] sm:$0xff] }
 0x743   :  { %2890 = vmatpush1.bf16.msra.mxu1 %v10029_v33  ;;  %2931 = vmatpush1.bf16.msra.mxu0 %v10030_v39 }
 0x744   :  { %2891 = vmatprep.subr.bf16.mxu1 %v10031_v42  ;;  %2932 = vmatprep.subr.bf16.mxu0 %v10032_v45 }
 0x747   :  { %2892 = vmatpush1.bf16.msra.mxu1 %v10033_v7  ;;  %2933 = vmatpush1.bf16.msra.mxu0 %v10034_v41  ;;  %v8210_v41 = vld [vmem:[%s9484_s5 + $0x2a4] ss:$48 sps:$4 sm:$0xff]  }
 0x748   :  { %2893 = vmatprep.subr.bf16.mxu1 %v10035_v30  ;;  %2934 = vmatprep.subr.bf16.mxu0 %v10036_v40  ;;  %10039 = vst [vmem:[#allocation25_spill] sm:$0xff] %v8210_v41 }
 0x74b   :  { %2894 = vmatpush1.bf16.msra.mxu1 %v10037_v25  ;;  %2935 = vmatpush1.bf16.msra.mxu0 %v10038_v51  ;;  %v8216_v25 = vld [vmem:[%s9484_s5 + $0x2ac] ss:$48 sps:$4 sm:$0xff]  }
 0x74c   :  { %2895 = vmatprep.subr.bf16.mxu1 %v8063_v57  ;;  %2936 = vmatprep.subr.bf16.mxu0 %v8069_v31  ;;  %10040 = vst [vmem:[#allocation54_spill] sm:$0xff] %v8216_v25  ;;  %v3008_v31 = vld [vmem:[#allocation2 + $0x40] sm:$0xf0] }
 0x74f   :  { %2896 = vmatpush1.bf16.msra.mxu1 %v8075_v62  ;;  %2937 = vmatpush1.bf16.msra.mxu0 %v8081_v49  ;;  %v8224_v49 = vld [vmem:[%s9484_s5 + $0x2a0] ss:$48 sps:$4 sm:$0xff]  }
 0x750   :  { %3063 = vmatprep.subr.bf16.mxu1 %v8210_v41  ;;  %3104 = vmatprep.subr.bf16.mxu0 %v8216_v25  ;;  %10041 = vst [vmem:[#allocation55_spill] sm:$0xff] %v8224_v49  ;;  %v8230_v41 = vld [vmem:[%s9484_s5 + $0x2a8] ss:$48 sps:$4 sm:$0xff]   ;;  %v8236_v25 = vld [vmem:[%s9484_s5 + $0x244] ss:$48 sps:$4 sm:$0xff]  }
 0x751   :  { %10042 = vst [vmem:[#allocation56_spill] sm:$0xff] %v8230_v41  ;;  %10043 = vst [vmem:[#allocation57_spill] sm:$0xff] %v8236_v25 }
 0x752   :  { %2914 = vmatmul.mubr.bf16.vlgmr.msra.gmra.mxu1 %v8135_v28  ;;  %2955 = vmatmul.mubr.bf16.vlgmr.msra.gmra.mxu0 %v8135_v28  ;;  %v8242_v28 = vld [vmem:[%s9484_s5 + $0x24c] ss:$48 sps:$4 sm:$0xff]  }
 0x753   :  { %3064 = vmatpush1.bf16.msra.mxu1 %v8224_v49  ;;  %3105 = vmatpush1.bf16.msra.mxu0 %v8230_v41  ;;  %10044 = vst [vmem:[#allocation58_spill] sm:$0xff] %v8242_v28  ;;  %v8250_v41 = vld [vmem:[%s9484_s5 + $0x240] ss:$48 sps:$4 sm:$0xff]   ;;  %v8268_v49 = vld [vmem:[%s9484_s5 + $0x1ec] ss:$48 sps:$4 sm:$0xff]  }
 0x754   :  { %3065 = vmatprep.subr.bf16.mxu1 %v8236_v25  ;;  %3106 = vmatprep.subr.bf16.mxu0 %v8242_v28  ;;  %10045 = vst [vmem:[#allocation59_spill] sm:$0xff] %v8250_v41  ;;  %v8256_v25 = vld [vmem:[%s9484_s5 + $0x248] ss:$48 sps:$4 sm:$0xff]   ;;  %v8262_v28 = vld [vmem:[%s9484_s5 + $0x1e4] ss:$48 sps:$4 sm:$0xff]   ;;  %10048 = vst [vmem:[#allocation62_spill] sm:$0xff] %v8268_v49 }
 0x755   :  { %3095 = vmatprep.mubr.bf16.mxu1 %v9797_v43  ;;  %3136 = vmatprep.mubr.bf16.mxu0 %v9797_v43  ;;  %10046 = vst [vmem:[#allocation60_spill] sm:$0xff] %v8256_v25  ;;  %10047 = vst [vmem:[#allocation61_spill] sm:$0xff] %v8262_v28 }
 0x757   :  { %3066 = vmatpush1.bf16.msra.mxu1 %v8250_v41  ;;  %3107 = vmatpush1.bf16.msra.mxu0 %v8256_v25  ;;  %v8274_v41 = vld [vmem:[%s9484_s5 + $0x1e0] ss:$48 sps:$4 sm:$0xff]   ;;  %v8280_v25 = vld [vmem:[%s9484_s5 + $0x1e8] ss:$48 sps:$4 sm:$0xff]  }
 0x758   :  { %3067 = vmatprep.subr.bf16.mxu1 %v8262_v28  ;;  %3108 = vmatprep.subr.bf16.mxu0 %v8268_v49  ;;  %10049 = vst [vmem:[#allocation63_spill] sm:$0xff] %v8274_v41  ;;  %10050 = vst [vmem:[#allocation64_spill] sm:$0xff] %v8280_v25  ;;  %v8286_v28 = vld [vmem:[%s9484_s5 + $0x184] ss:$48 sps:$4 sm:$0xff]   ;;  %v8292_v49 = vld [vmem:[%s9484_s5 + $0x18c] ss:$48 sps:$4 sm:$0xff]  }
 0x759   :  { %10051 = vst [vmem:[#allocation65_spill] sm:$0xff] %v8286_v28  ;;  %10052 = vst [vmem:[#allocation66_spill] sm:$0xff] %v8292_v49 }
 0x75b   :  { %3068 = vmatpush1.bf16.msra.mxu1 %v8274_v41  ;;  %3109 = vmatpush1.bf16.msra.mxu0 %v8280_v25  ;;  %v8298_v41 = vld [vmem:[%s9484_s5 + $0x180] ss:$48 sps:$4 sm:$0xff]   ;;  %v8304_v25 = vld [vmem:[%s9484_s5 + $0x188] ss:$48 sps:$4 sm:$0xff]  }
 0x75c   :  { %3069 = vmatprep.subr.bf16.mxu1 %v8286_v28  ;;  %3110 = vmatprep.subr.bf16.mxu0 %v8292_v49  ;;  %10053 = vst [vmem:[#allocation67_spill] sm:$0xff] %v8298_v41  ;;  %10054 = vst [vmem:[#allocation68_spill] sm:$0xff] %v8304_v25  ;;  %v8310_v28 = vld [vmem:[%s9484_s5 + $0x124] ss:$48 sps:$4 sm:$0xff]   ;;  %v8316_v49 = vld [vmem:[%s9484_s5 + $0x12c] ss:$48 sps:$4 sm:$0xff]  }
 0x75d   :  { %10055 = vst [vmem:[#allocation69_spill] sm:$0xff] %v8310_v28  ;;  %10056 = vst [vmem:[#allocation26_spill] sm:$0xff] %v8316_v49 }
 0x75f   :  { %3070 = vmatpush1.bf16.msra.mxu1 %v8298_v41  ;;  %3111 = vmatpush1.bf16.msra.mxu0 %v8304_v25  ;;  %v8322_v41 = vld [vmem:[%s9484_s5 + $0x120] ss:$48 sps:$4 sm:$0xff]   ;;  %v8328_v25 = vld [vmem:[%s9484_s5 + $0x128] ss:$48 sps:$4 sm:$0xff]  }
 0x760   :  { %3071 = vmatprep.subr.bf16.mxu1 %v8310_v28  ;;  %3112 = vmatprep.subr.bf16.mxu0 %v8316_v49  ;;  %10057 = vst [vmem:[#allocation27_spill] sm:$0xff] %v8322_v41  ;;  %10058 = vst [vmem:[#allocation28_spill] sm:$0xff] %v8328_v25  ;;  %v8334_v28 = vld [vmem:[%s9484_s5 + $0xc4] ss:$48 sps:$4 sm:$0xff]   ;;  %v8340_v49 = vld [vmem:[%s9484_s5 + $0xcc] ss:$48 sps:$4 sm:$0xff]  }
 0x761   :  { %10059 = vst [vmem:[#allocation29_spill] sm:$0xff] %v8334_v28  ;;  %10060 = vst [vmem:[#allocation30_spill] sm:$0xff] %v8340_v49 }
 0x763   :  { %3072 = vmatpush1.bf16.msra.mxu1 %v8322_v41  ;;  %3113 = vmatpush1.bf16.msra.mxu0 %v8328_v25  ;;  %v8346_v41 = vld [vmem:[%s9484_s5 + $0xc0] ss:$48 sps:$4 sm:$0xff]   ;;  %v8352_v25 = vld [vmem:[%s9484_s5 + $0xc8] ss:$48 sps:$4 sm:$0xff]  }
 0x764   :  { %3073 = vmatprep.subr.bf16.mxu1 %v8334_v28  ;;  %3114 = vmatprep.subr.bf16.mxu0 %v8340_v49  ;;  %10061 = vst [vmem:[#allocation31_spill] sm:$0xff] %v8346_v41  ;;  %10062 = vst [vmem:[#allocation32_spill] sm:$0xff] %v8352_v25  ;;  %v8358_v28 = vld [vmem:[%s9484_s5 + $0x64] ss:$48 sps:$4 sm:$0xff]   ;;  %v8364_v49 = vld [vmem:[%s9484_s5 + $0x6c] ss:$48 sps:$4 sm:$0xff]  }
 0x765   :  { %10063 = vst [vmem:[#allocation33_spill] sm:$0xff] %v8358_v28  ;;  %10064 = vst [vmem:[#allocation34_spill] sm:$0xff] %v8364_v49 }
 0x767   :  { %3074 = vmatpush1.bf16.msra.mxu1 %v8346_v41  ;;  %3115 = vmatpush1.bf16.msra.mxu0 %v8352_v25  ;;  %v8370_v41 = vld [vmem:[%s9484_s5 + $0x60] ss:$48 sps:$4 sm:$0xff]   ;;  %v8376_v25 = vld [vmem:[%s9484_s5 + $0x68] ss:$48 sps:$4 sm:$0xff]  }
 0x768   :  { %3075 = vmatprep.subr.bf16.mxu1 %v8358_v28  ;;  %3116 = vmatprep.subr.bf16.mxu0 %v8364_v49  ;;  %10065 = vst [vmem:[#allocation35_spill] sm:$0xff] %v8370_v41  ;;  %10066 = vst [vmem:[#allocation36_spill] sm:$0xff] %v8376_v25  ;;  %v8382_v28 = vld [vmem:[%s9484_s5 + $0x4] ss:$48 sps:$4 sm:$0xff]   ;;  %v8388_v49 = vld [vmem:[%s9484_s5 + $0xc] ss:$48 sps:$4 sm:$0xff]  }
 0x769   :  { %10067 = vst [vmem:[#allocation37_spill] sm:$0xff] %v8382_v28  ;;  %10068 = vst [vmem:[#allocation38_spill] sm:$0xff] %v8388_v49 }
 0x76b   :  { %3076 = vmatpush1.bf16.msra.mxu1 %v8370_v41  ;;  %3117 = vmatpush1.bf16.msra.mxu0 %v8376_v25  ;;  %v8394_v41 = vld [vmem:[%s9484_s5] ss:$48 sps:$4 sm:$0xff]   ;;  %v8400_v25 = vld [vmem:[%s9484_s5 + $0x8] ss:$48 sps:$4 sm:$0xff]  }
 0x76c   :  { %3077 = vmatprep.subr.bf16.mxu1 %v8382_v28  ;;  %3118 = vmatprep.subr.bf16.mxu0 %v8388_v49  ;;  %10069 = vst [vmem:[#allocation39_spill] sm:$0xff] %v8394_v41  ;;  %10070 = vst [vmem:[#allocation40_spill] sm:$0xff] %v8400_v25 }
 0x76f   :  { %3078 = vmatpush1.bf16.msra.mxu1 %v8394_v41  ;;  %3119 = vmatpush1.bf16.msra.mxu0 %v8400_v25  ;;  %v3009_v41 = vld [vmem:[#allocation2 + $0x20] sm:$0xf0] }
 0x770   :  { %3145 = vmatprep.subr.bf16.mxu1 %v7680_v48  ;;  %3186 = vmatprep.subr.bf16.mxu0 %v7686_v52  ;;  %v3010_v52 = vld [vmem:[#allocation2 + $0x10] sm:$0xf0] }
 0x7d2   :  { %v2751_v28 = vpop.f32.mrf.mxu1  ;;  %v2792_v49 = vpop.f32.mrf.mxu0 }
 0x7d3   :  { %v3016_v62 = vrot.slane %v2751_v28, 4  ;;  %v3018_v48 = vrot.slane %v2792_v49, 4 }
 0x7d4   :  { %v2753_v57 = vpop.f32.mrf.mxu1  ;;  %v2794_v51 = vpop.f32.mrf.mxu0 }
 0x7d5   :  { %v3024_v40 = vadd.f32 %v3016_v62, %v3008_v31  ;;  %v3017_v30 = vrot.slane %v2753_v57, 4  ;;  %v3026_v38 = vadd.f32 %v3018_v48, %v3010_v52  ;;  %v3019_v32 = vrot.slane %v2794_v51, 4 }
 0x7d6   :  { %v2755_v7 = vpop.f32.mrf.mxu1  ;;  %v2796_v45 = vpop.f32.mrf.mxu0 }
 0x7d7   :  { %v5291_v42 = vmul.f32 -1.442695, %v3024_v40  ;;  %v3025_v39 = vadd.f32 %v3017_v30, %v3009_v41  ;;  %v5293_v28 = vmul.f32 -1.442695, %v3026_v38  ;;  %v3027_v20 = vadd.f32 %v3019_v32, %v3011_v44 }
 0x7d8   :  { %v2756_v33 = vpop.f32.mrf.mxu1  ;;  %v2797_v22 = vpop.f32.mrf.mxu0  ;;  %v3048_v38 = vrot.slane %v8123_v11, 4 }
 0x7d9   :  { %6051 = vpow2.f32 %v5291_v42  ;;  %v5292_v25 = vmul.f32 -1.442695, %v3025_v39 }
 0x7db   :  { %6053 = vpow2.f32 %v5292_v25 }
 0x7dc   :  { %6055 = vpow2.f32 %v5293_v28 }
 0x7dd   :  { %6057 = vtanh.f32 %v3027_v20 }
 0x7e6   :  { %v6052_v53 = vpop.eup %6051 }
 0x7e7   :  { %v3037_v31 = vadd.f32 1.0, %v6052_v53 }
 0x7e8   :  { %v6054_v57 = vpop.eup %6053 }
 0x7e9   :  { %6059 = vrcp.f32 %v3037_v31  ;;  %v3038_v62 = vadd.f32 1.0, %v6054_v57  ;;  %v6056_v42 = vpop.eup %6055 }
 0x7ea   :  { %v6058_v30 = vpop.eup %6057  ;;  %v3039_v53 = vadd.f32 1.0, %v6056_v42 }
 0x7eb   :  { %6061 = vrcp.f32 %v3038_v62 }
 0x7ec   :  { %6063 = vrcp.f32 %v3039_v53 }
 0x7f2   :  { %v2833_v45 = vpop.f32.mrf.mxu1  ;;  %v2874_v7 = vpop.f32.mrf.mxu0 }
 0x7f4   :  { %v2835_v41 = vpop.f32.mrf.mxu1  ;;  %v2876_v49 = vpop.f32.mrf.mxu0 }
 0x7f6   :  { %v6060_v40 = vpop.eup %6059  ;;  %v2837_v25 = vpop.f32.mrf.mxu1 }
 0x7f7   :  { %v2878_v51 = vpop.f32.mrf.mxu0  ;;  %v3051_v44 = vmul.f32 %v6060_v40, %v6058_v30 }
 0x7f8   :  { %v6062_v32 = vpop.eup %6061  ;;  %v2838_v22 = vpop.f32.mrf.mxu1 }
 0x7f9   :  { %v2879_v33 = vpop.f32.mrf.mxu0  ;;  %v3050_v20 = vmul.f32 %v6062_v32, %v3048_v38  ;;  %v6064_v48 = vpop.eup %6063 }
 0x7fb   :  { %v8406_v39 = vadd.f32 %v3051_v44, %v3050_v20 }
 0x7fd   :  { %10071 = vst [vmem:[#allocation41_spill] sm:$0xff] %v8406_v39  ;;  %6065 = vtanh.f32 %v8406_v39 }
 0x80a   :  { %v6066_v52 = vpop.eup %6065 }
 0x80b   :  { %v3054_v28 = vmul.f32 %v6066_v52, %v6064_v48 }
 0x812   :  { %v2915_v31 = vpop.f32.mrf.mxu1  ;;  %v2956_v57 = vpop.f32.mrf.mxu0 }
 0x813   :  { %v2967_v62 = vrot.slane %v2915_v31, 4  ;;  %v2969_v20 = vrot.slane %v2956_v57, 4 }
 0x814   :  { %v2917_v25 = vpop.f32.mrf.mxu1  ;;  %v2958_v51 = vpop.f32.mrf.mxu0 }
 0x815   :  { %v2975_v11 = vadd.f32 %v2967_v62, %v2833_v45  ;;  %v2968_v30 = vrot.slane %v2917_v25, 4  ;;  %v2977_v52 = vadd.f32 %v2969_v20, %v2874_v7  ;;  %v2970_v31 = vrot.slane %v2958_v51, 4 }
 0x816   :  { %v2919_v40 = vpop.f32.mrf.mxu1  ;;  %v2960_v42 = vpop.f32.mrf.mxu0 }
 0x817   :  { %v2979_v22 = vadd.f32 %v2975_v11, %v7265_v19  ;;  %v2976_v38 = vadd.f32 %v2968_v30, %v2835_v41  ;;  %v2981_v39 = vadd.f32 %v2977_v52, %v7274_v58  ;;  %v2978_v45 = vadd.f32 %v2970_v31, %v2876_v49  ;;  %v10108_v31 = vld [vmem:[#allocation61_spill] sm:$0xff] }
 0x818   :  { %v2920_v44 = vpop.f32.mrf.mxu1  ;;  %v2961_v32 = vpop.f32.mrf.mxu0 }
 0x819   :  { %v5288_v53 = vmul.f32 -1.442695, %v2979_v22  ;;  %v2980_v33 = vadd.f32 %v2976_v38, %v7268_v23  ;;  %v5290_v62 = vmul.f32 -1.442695, %v2981_v39  ;;  %v2982_v40 = vadd.f32 %v2978_v45, %v7279_v34  ;;  %v10109_v45 = vld [vmem:[#allocation62_spill] sm:$0xff] }
 0x81b   :  { %6067 = vpow2.f32 %v5288_v53  ;;  %v5289_v48 = vmul.f32 -1.442695, %v2980_v33  ;;  %v3056_v33 = vrot.slane %v3054_v28, 4  ;;  %v10107_v28 = vld [vmem:[#allocation60_spill] sm:$0xff] }
 0x81d   :  { %6069 = vpow2.f32 %v5289_v48 }
 0x81e   :  { %6071 = vpow2.f32 %v5290_v62  ;;  %v10110_v62 = vld [vmem:[#allocation63_spill] sm:$0xff] }
 0x828   :  { %v6068_v25 = vpop.eup %6067 }
 0x829   :  { %v2992_v11 = vadd.f32 1.0, %v6068_v25  ;;  %v10111_v25 = vld [vmem:[#allocation64_spill] sm:$0xff] }
 0x82a   :  { %v6070_v41 = vpop.eup %6069 }
 0x82b   :  { %6073 = vrcp.f32 %v2992_v11  ;;  %v2993_v30 = vadd.f32 1.0, %v6070_v41  ;;  %v6072_v57 = vpop.eup %6071  ;;  %v10113_v11 = vld [vmem:[#allocation66_spill] sm:$0xff]  ;;  %v10114_v41 = vld [vmem:[#allocation67_spill] sm:$0xff] }
 0x82c   :  { %6075 = vtanh.f32 %v2982_v40  ;;  %v2994_v7 = vadd.f32 1.0, %v6072_v57  ;;  %v10112_v40 = vld [vmem:[#allocation65_spill] sm:$0xff] }
 0x82d   :  { %6077 = vrcp.f32 %v2993_v30  ;;  %v10115_v30 = vld [vmem:[#allocation68_spill] sm:$0xff]  ;;  %v10116_v57 = vld [vmem:[#allocation69_spill] sm:$0xff] }
 0x82e   :  { %6079 = vrcp.f32 %v2994_v7  ;;  %v10120_v7 = vld [vmem:[#allocation29_spill] sm:$0xff] }
 0x838   :  { %v6074_v42 = vpop.eup %6073 }
 0x839   :  { %v6076_v22 = vpop.eup %6075 }
 0x83a   :  { %v6078_v38 = vpop.eup %6077  ;;  %v3003_v44 = vmul.f32 %v6076_v22, %v6074_v42  ;;  %v10117_v42 = vld [vmem:[#allocation26_spill] sm:$0xff]  ;;  %v10118_v22 = vld [vmem:[#allocation27_spill] sm:$0xff] }
 0x83b   :  { %v3002_v51 = vmul.f32 %v6078_v38, %v8131_v37  ;;  %v6080_v39 = vpop.eup %6079  ;;  %v10091_v37 = vld [vmem:[#allocation16_spill] sm:$0xff] }
 0x83c   :  { %v10119_v38 = vld [vmem:[#allocation28_spill] sm:$0xff] }
 0x83d   :  { %v8414_v49 = vadd.f32 %v3003_v44, %v3002_v51  ;;  %v10121_v51 = vld [vmem:[#allocation30_spill] sm:$0xff]  ;;  %v10122_v44 = vld [vmem:[#allocation31_spill] sm:$0xff] }
 0x83f   :  { %6081 = vtanh.f32 %v8414_v49 }
 0x84c   :  { %v6082_v32 = vpop.eup %6081 }
 0x84d   :  { %v3006_v53 = vmul.f32 %v6082_v32, %v6080_v39  ;;  %v10123_v39 = vld [vmem:[#allocation32_spill] sm:$0xff]  ;;  %v10124_v32 = vld [vmem:[#allocation33_spill] sm:$0xff] }
 0x84f   :  { %3007 = vst [vmem:[#allocation3 + $0x10] sm:$0xf] %v3006_v53  ;;  %v3059_v20 = vrot.slane %v3006_v53, 4  ;;  %v10125_v53 = vld [vmem:[#allocation34_spill] sm:$0xff] }
 0x851   :  { %v3061_v48 = vsel %vm85_vm0, %v3056_v33, %v3059_v20  ;;  %v10126_v33 = vld [vmem:[#allocation35_spill] sm:$0xff]  ;;  %v10127_v20 = vld [vmem:[#allocation36_spill] sm:$0xff] }
 0x852   :  { %v8418_v52 = vpack.c.bf16 %v3061_v48, %v3061_v48  ;;  %v10128_v48 = vld [vmem:[#allocation37_spill] sm:$0xff] }
 0x854   :  { %3096 = vmatmul.mubr.bf16.vlgmr.msra.gmra.mxu1 %v8418_v52  ;;  %3137 = vmatmul.mubr.bf16.vlgmr.msra.gmra.mxu0 %v8418_v52 }
 0x855   :  { %3146 = vmatpush1.bf16.msra.mxu1 %v7709_v17  ;;  %3187 = vmatpush1.bf16.msra.mxu0 %v7715_v5  ;;  %v10072_v17 = vld [vmem:[#allocation42_spill] sm:$0xff]  ;;  %v10073_v5 = vld [vmem:[#allocation43_spill] sm:$0xff] }
 0x856   :  { %3147 = vmatprep.subr.bf16.mxu1 %v7721_v59  ;;  %3188 = vmatprep.subr.bf16.mxu0 %v7727_v1  ;;  %v10074_v59 = vld [vmem:[#allocation44_spill] sm:$0xff]  ;;  %v10075_v1 = vld [vmem:[#allocation45_spill] sm:$0xff] }
 0x857   :  { %3177 = vmatprep.mubr.bf16.mxu1 %v9797_v43  ;;  %3218 = vmatprep.mubr.bf16.mxu0 %v9797_v43 }
 0x859   :  { %3148 = vmatpush1.bf16.msra.mxu1 %v7735_v0  ;;  %3189 = vmatpush1.bf16.msra.mxu0 %v7741_v15  ;;  %v10076_v0 = vld [vmem:[#allocation46_spill] sm:$0xff]  ;;  %v10077_v15 = vld [vmem:[#allocation47_spill] sm:$0xff] }
 0x85a   :  { %3149 = vmatprep.subr.bf16.mxu1 %v7747_v12  ;;  %3190 = vmatprep.subr.bf16.mxu0 %v7753_v36  ;;  %v10078_v12 = vld [vmem:[#allocation48_spill] sm:$0xff]  ;;  %v10079_v36 = vld [vmem:[#allocation49_spill] sm:$0xff] }
 0x85d   :  { %3150 = vmatpush1.bf16.msra.mxu1 %v7759_v9  ;;  %3191 = vmatpush1.bf16.msra.mxu0 %v7765_v10  ;;  %v10080_v9 = vld [vmem:[#allocation50_spill] sm:$0xff]  ;;  %v10081_v10 = vld [vmem:[#allocation51_spill] sm:$0xff] }
 0x85e   :  { %3151 = vmatprep.subr.bf16.mxu1 %v7771_v63  ;;  %3192 = vmatprep.subr.bf16.mxu0 %v7777_v8  ;;  %v10082_v63 = vld [vmem:[#allocation52_spill] sm:$0xff]  ;;  %v10083_v8 = vld [vmem:[#allocation53_spill] sm:$0xff] }
 0x861   :  { %3152 = vmatpush1.bf16.msra.mxu1 %v7783_v50  ;;  %3193 = vmatpush1.bf16.msra.mxu0 %v7789_v26  ;;  %v10084_v50 = vld [vmem:[#allocation9_spill] sm:$0xff]  ;;  %v10085_v26 = vld [vmem:[#allocation10_spill] sm:$0xff] }
 0x862   :  { %3153 = vmatprep.subr.bf16.mxu1 %v7795_v3  ;;  %3194 = vmatprep.subr.bf16.mxu0 %v7801_v2  ;;  %v10086_v3 = vld [vmem:[#allocation11_spill] sm:$0xff]  ;;  %v10087_v2 = vld [vmem:[#allocation12_spill] sm:$0xff] }
 0x865   :  { %3154 = vmatpush1.bf16.msra.mxu1 %v7807_v16  ;;  %3195 = vmatpush1.bf16.msra.mxu0 %v7813_v61  ;;  %v10088_v16 = vld [vmem:[#allocation13_spill] sm:$0xff]  ;;  %v10089_v61 = vld [vmem:[#allocation14_spill] sm:$0xff] }
 0x866   :  { %3155 = vmatprep.subr.bf16.mxu1 %v7819_v56  ;;  %3196 = vmatprep.subr.bf16.mxu0 %v10000_v60  ;;  %v10090_v56 = vld [vmem:[#allocation15_spill] sm:$0xff]  ;;  %v10092_v60 = vld [vmem:[#allocation17_spill] sm:$0xff] }
 0x869   :  { %3156 = vmatpush1.bf16.msra.mxu1 %v10001_v21  ;;  %3197 = vmatpush1.bf16.msra.mxu0 %v10002_v35  ;;  %v10093_v21 = vld [vmem:[#allocation18_spill] sm:$0xff]  ;;  %v10094_v35 = vld [vmem:[#allocation19_spill] sm:$0xff] }
 0x86a   :  { %3157 = vmatprep.subr.bf16.mxu1 %v10003_v27  ;;  %3198 = vmatprep.subr.bf16.mxu0 %v10004_v54  ;;  %v10095_v27 = vld [vmem:[#allocation20_spill] sm:$0xff]  ;;  %v10096_v54 = vld [vmem:[#allocation21_spill] sm:$0xff] }
 0x86d   :  { %3158 = vmatpush1.bf16.msra.mxu1 %v10005_v29  ;;  %3199 = vmatpush1.bf16.msra.mxu0 %v10006_v46  ;;  %v10097_v29 = vld [vmem:[#allocation22_spill] sm:$0xff]  ;;  %v10098_v46 = vld [vmem:[#allocation23_spill] sm:$0xff] }
 0x86e   :  { %3159 = vmatprep.subr.bf16.mxu1 %v10007_v47  ;;  %3200 = vmatprep.subr.bf16.mxu0 %v10008_v55  ;;  %v10099_v47 = vld [vmem:[#allocation24_spill] sm:$0xff]  ;;  %v10100_v55 = vld [vmem:[#allocation25_spill] sm:$0xff] }
 0x871   :  { %3160 = vmatpush1.bf16.msra.mxu1 %v10009_v4  ;;  %3201 = vmatpush1.bf16.msra.mxu0 %v10010_v6  ;;  %v10101_v4 = vld [vmem:[#allocation54_spill] sm:$0xff]  ;;  %v10102_v6 = vld [vmem:[#allocation55_spill] sm:$0xff] }
 0x872   :  { %3227 = vmatprep.subr.bf16.mxu1 %v10011_v13  ;;  %3268 = vmatprep.subr.bf16.mxu0 %v10012_v24  ;;  %v10103_v13 = vld [vmem:[#allocation56_spill] sm:$0xff]  ;;  %v10104_v24 = vld [vmem:[#allocation57_spill] sm:$0xff] }
 0x874   :  { %3178 = vmatmul.mubr.bf16.vlgmr.msra.gmra.mxu1 %v8418_v52  ;;  %3219 = vmatmul.mubr.bf16.vlgmr.msra.gmra.mxu0 %v8418_v52 }
 0x875   :  { %3228 = vmatpush1.bf16.msra.mxu1 %v10013_v14  ;;  %3269 = vmatpush1.bf16.msra.mxu0 %v10014_v18  ;;  %v10105_v14 = vld [vmem:[#allocation58_spill] sm:$0xff]  ;;  %v10106_v18 = vld [vmem:[#allocation59_spill] sm:$0xff] }
 0x876   :  { %3229 = vmatprep.subr.bf16.mxu1 %v10072_v17  ;;  %3270 = vmatprep.subr.bf16.mxu0 %v10073_v5  ;;  %v10130_v17 = vld [vmem:[#allocation39_spill] sm:$0xff]  ;;  %v10131_v5 = vld [vmem:[#allocation40_spill] sm:$0xff] }
 0x877   :  { %3259 = vmatprep.mubr.bf16.mxu1 %v9797_v43  ;;  %3300 = vmatprep.mubr.bf16.mxu0 %v9797_v43 }
 0x879   :  { %3230 = vmatpush1.bf16.msra.mxu1 %v10074_v59  ;;  %3271 = vmatpush1.bf16.msra.mxu0 %v10075_v1  ;;  %v8529_v59 = vld [vmem:[%s9484_s5 + $0x2b4] ss:$48 sps:$4 sm:$0xff]   ;;  %v8535_v1 = vld [vmem:[%s9484_s5 + $0x2bc] ss:$48 sps:$4 sm:$0xff]  }
 0x87a   :  { %3231 = vmatprep.subr.bf16.mxu1 %v10076_v0  ;;  %3272 = vmatprep.subr.bf16.mxu0 %v10077_v15  ;;  %v3354_v15 = vld [vmem:[#allocation2 + $0x60] sm:$0xf] }
 0x87d   :  { %3232 = vmatpush1.bf16.msra.mxu1 %v10078_v12  ;;  %3273 = vmatpush1.bf16.msra.mxu0 %v10079_v36 }
 0x87e   :  { %3233 = vmatprep.subr.bf16.mxu1 %v10080_v9  ;;  %3274 = vmatprep.subr.bf16.mxu0 %v10081_v10  ;;  %v3355_v10 = vld [vmem:[#allocation2 + $0x70] sm:$0xf] }
 0x881   :  { %3234 = vmatpush1.bf16.msra.mxu1 %v10082_v63  ;;  %3275 = vmatpush1.bf16.msra.mxu0 %v10083_v8 }
 0x882   :  { %3235 = vmatprep.subr.bf16.mxu1 %v10084_v50  ;;  %3276 = vmatprep.subr.bf16.mxu0 %v10085_v26 }
 0x885   :  { %3236 = vmatpush1.bf16.msra.mxu1 %v10086_v3  ;;  %3277 = vmatpush1.bf16.msra.mxu0 %v10087_v2 }
 0x886   :  { %3237 = vmatprep.subr.bf16.mxu1 %v10088_v16  ;;  %3278 = vmatprep.subr.bf16.mxu0 %v10089_v61 }
 0x889   :  { %3238 = vmatpush1.bf16.msra.mxu1 %v10090_v56  ;;  %3279 = vmatpush1.bf16.msra.mxu0 %v10091_v37  ;;  %v3356_v56 = vld [vmem:[#allocation2 + $0x78] sm:$0xf] }
 0x88a   :  { %3239 = vmatprep.subr.bf16.mxu1 %v10092_v60  ;;  %3280 = vmatprep.subr.bf16.mxu0 %v10093_v21  ;;  %v3357_v21 = vld [vmem:[#allocation2 + $0x28] sm:$0xf] }
 0x88d   :  { %3240 = vmatpush1.bf16.msra.mxu1 %v10094_v35  ;;  %3281 = vmatpush1.bf16.msra.mxu0 %v10095_v27 }
 0x88e   :  { %3241 = vmatprep.subr.bf16.mxu1 %v10096_v54  ;;  %3282 = vmatprep.subr.bf16.mxu0 %v10097_v29 }
 0x891   :  { %3242 = vmatpush1.bf16.msra.mxu1 %v10098_v46  ;;  %3283 = vmatpush1.bf16.msra.mxu0 %v10099_v47 }
 0x892   :  { %3394 = vmatprep.subr.bf16.mxu1 %v10100_v55  ;;  %3435 = vmatprep.subr.bf16.mxu0 %v10101_v4 }
 0x894   :  { %3260 = vmatmul.mubr.bf16.vlgmr.msra.gmra.mxu1 %v8418_v52  ;;  %3301 = vmatmul.mubr.bf16.vlgmr.msra.gmra.mxu0 %v8418_v52  ;;  %v10129_v52 = vld [vmem:[#allocation38_spill] sm:$0xff] }
 0x895   :  { %3395 = vmatpush1.bf16.msra.mxu1 %v10102_v6  ;;  %3436 = vmatpush1.bf16.msra.mxu0 %v10103_v13 }
 0x896   :  { %3396 = vmatprep.subr.bf16.mxu1 %v10104_v24  ;;  %3437 = vmatprep.subr.bf16.mxu0 %v10105_v14 }
 0x897   :  { %3426 = vmatprep.mubr.bf16.mxu1 %v9797_v43  ;;  %3467 = vmatprep.mubr.bf16.mxu0 %v9797_v43 }
 0x899   :  { %3397 = vmatpush1.bf16.msra.mxu1 %v10106_v18  ;;  %3438 = vmatpush1.bf16.msra.mxu0 %v10107_v28  ;;  %v10132_v18 = vld [vmem:[#allocation41_spill] sm:$0xff] }
 0x89a   :  { %3398 = vmatprep.subr.bf16.mxu1 %v10108_v31  ;;  %3439 = vmatprep.subr.bf16.mxu0 %v10109_v45  ;;  %v3382_v28 = vrot.slane %v10132_v18, 4  ;;  %v8570_v18 = vld [vmem:[%s9484_s5 + $0x254] ss:$48 sps:$4 sm:$0xff]  }
 0x89d   :  { %3399 = vmatpush1.bf16.msra.mxu1 %v10110_v62  ;;  %3440 = vmatpush1.bf16.msra.mxu0 %v10111_v25 }
 0x89e   :  { %3400 = vmatprep.subr.bf16.mxu1 %v10112_v40  ;;  %3441 = vmatprep.subr.bf16.mxu0 %v10113_v11 }
 0x8a1   :  { %3401 = vmatpush1.bf16.msra.mxu1 %v10114_v41  ;;  %3442 = vmatpush1.bf16.msra.mxu0 %v10115_v30 }
 0x8a2   :  { %3402 = vmatprep.subr.bf16.mxu1 %v10116_v57  ;;  %3443 = vmatprep.subr.bf16.mxu0 %v10117_v42 }
 0x8a5   :  { %3403 = vmatpush1.bf16.msra.mxu1 %v10118_v22  ;;  %3444 = vmatpush1.bf16.msra.mxu0 %v10119_v38 }
 0x8a6   :  { %3404 = vmatprep.subr.bf16.mxu1 %v10120_v7  ;;  %3445 = vmatprep.subr.bf16.mxu0 %v10121_v51 }
 0x8a9   :  { %3405 = vmatpush1.bf16.msra.mxu1 %v10122_v44  ;;  %3446 = vmatpush1.bf16.msra.mxu0 %v10123_v39 }
 0x8aa   :  { %3406 = vmatprep.subr.bf16.mxu1 %v10124_v32  ;;  %3447 = vmatprep.subr.bf16.mxu0 %v10125_v53 }
 0x8ad   :  { %3407 = vmatpush1.bf16.msra.mxu1 %v10126_v33  ;;  %3448 = vmatpush1.bf16.msra.mxu0 %v10127_v20 }
 0x8ae   :  { %3408 = vmatprep.subr.bf16.mxu1 %v10128_v48  ;;  %3449 = vmatprep.subr.bf16.mxu0 %v10129_v52 }
 0x8b1   :  { %3409 = vmatpush1.bf16.msra.mxu1 %v10130_v17  ;;  %3450 = vmatpush1.bf16.msra.mxu0 %v10131_v5 }
 0x8b2   :  { %3476 = vmatprep.subr.bf16.mxu1 %v8529_v59  ;;  %3517 = vmatprep.subr.bf16.mxu0 %v8535_v1 }
 0x914   :  { %v3097_v0 = vpop.f32.mrf.mxu1  ;;  %v3138_v12 = vpop.f32.mrf.mxu0 }
 0x915   :  { %v3358_v36 = vadd.f32 %v3354_v15, %v3097_v0  ;;  %v3360_v37 = vadd.f32 %v3356_v56, %v3138_v12 }
 0x916   :  { %v3099_v9 = vpop.f32.mrf.mxu1  ;;  %v3140_v63 = vpop.f32.mrf.mxu0 }
 0x917   :  { %v5297_v8 = vmul.f32 -1.442695, %v3358_v36  ;;  %v3359_v50 = vadd.f32 %v3355_v10, %v3099_v9  ;;  %v5299_v60 = vmul.f32 -1.442695, %v3360_v37  ;;  %v3361_v35 = vadd.f32 %v3357_v21, %v3140_v63 }
 0x918   :  { %v3101_v26 = vpop.f32.mrf.mxu1  ;;  %v3142_v3 = vpop.f32.mrf.mxu0 }
 0x919   :  { %6083 = vpow2.f32 %v5297_v8  ;;  %v5298_v2 = vmul.f32 -1.442695, %v3359_v50 }
 0x91a   :  { %v3102_v16 = vpop.f32.mrf.mxu1  ;;  %v3143_v61 = vpop.f32.mrf.mxu0 }
 0x91b   :  { %6085 = vpow2.f32 %v5298_v2 }
 0x91c   :  { %6087 = vpow2.f32 %v5299_v60 }
 0x91d   :  { %6089 = vtanh.f32 %v3361_v35 }
 0x926   :  { %v6084_v27 = vpop.eup %6083 }
 0x927   :  { %v3371_v54 = vadd.f32 1.0, %v6084_v27 }
 0x928   :  { %v6086_v29 = vpop.eup %6085 }
 0x929   :  { %6091 = vrcp.f32 %v3371_v54  ;;  %v3372_v46 = vadd.f32 1.0, %v6086_v29  ;;  %v6088_v47 = vpop.eup %6087 }
 0x92a   :  { %v6090_v6 = vpop.eup %6089  ;;  %v3373_v62 = vadd.f32 1.0, %v6088_v47 }
 0x92b   :  { %6093 = vrcp.f32 %v3372_v46 }
 0x92c   :  { %6095 = vrcp.f32 %v3373_v62  ;;  %v8596_v62 = vld [vmem:[%s9484_s5 + $0x1f4] ss:$48 sps:$4 sm:$0xff]  }
 0x934   :  { %v3179_v55 = vpop.f32.mrf.mxu1  ;;  %v3220_v4 = vpop.f32.mrf.mxu0 }
 0x936   :  { %v6092_v13 = vpop.eup %6091  ;;  %v3181_v24 = vpop.f32.mrf.mxu1 }
 0x937   :  { %v3222_v14 = vpop.f32.mrf.mxu0  ;;  %v3385_v31 = vmul.f32 %v6092_v13, %v6090_v6 }
 0x938   :  { %v6094_v45 = vpop.eup %6093  ;;  %v3183_v25 = vpop.f32.mrf.mxu1 }
 0x939   :  { %v3224_v40 = vpop.f32.mrf.mxu0  ;;  %v3384_v11 = vmul.f32 %v6094_v45, %v3382_v28  ;;  %v6096_v42 = vpop.eup %6095  ;;  %v8576_v28 = vld [vmem:[%s9484_s5 + $0x25c] ss:$48 sps:$4 sm:$0xff]   ;;  %v8590_v45 = vld [vmem:[%s9484_s5 + $0x258] ss:$48 sps:$4 sm:$0xff]  }
 0x93a   :  { %v3184_v41 = vpop.f32.mrf.mxu1  ;;  %v8602_v25 = vld [vmem:[%s9484_s5 + $0x1fc] ss:$48 sps:$4 sm:$0xff]   ;;  %v8608_v40 = vld [vmem:[%s9484_s5 + $0x1f0] ss:$48 sps:$4 sm:$0xff]  }
 0x93b   :  { %v3225_v30 = vpop.f32.mrf.mxu0  ;;  %v8539_v57 = vadd.f32 %v3385_v31, %v3384_v11  ;;  %v8584_v31 = vld [vmem:[%s9484_s5 + $0x250] ss:$48 sps:$4 sm:$0xff]   ;;  %v8614_v11 = vld [vmem:[%s9484_s5 + $0x1f8] ss:$48 sps:$4 sm:$0xff]   ;;  %v8620_v41 = vld [vmem:[%s9484_s5 + $0x194] ss:$48 sps:$4 sm:$0xff]  }
 0x93c   :  { %v8626_v30 = vld [vmem:[%s9484_s5 + $0x19c] ss:$48 sps:$4 sm:$0xff]  }
 0x93d   :  { %6097 = vtanh.f32 %v8539_v57 }
 0x94a   :  { %v6098_v22 = vpop.eup %6097 }
 0x94b   :  { %v3388_v38 = vmul.f32 %v6098_v22, %v6096_v42  ;;  %v8632_v42 = vld [vmem:[%s9484_s5 + $0x190] ss:$48 sps:$4 sm:$0xff]   ;;  %v8638_v22 = vld [vmem:[%s9484_s5 + $0x198] ss:$48 sps:$4 sm:$0xff]  }
 0x954   :  { %v3261_v7 = vpop.f32.mrf.mxu1  ;;  %v3302_v51 = vpop.f32.mrf.mxu0 }
 0x955   :  { %v3313_v44 = vrot.slane %v3261_v7, 4  ;;  %v3315_v36 = vrot.slane %v3302_v51, 4  ;;  %v8650_v7 = vld [vmem:[%s9484_s5 + $0x13c] ss:$48 sps:$4 sm:$0xff]   ;;  %v8656_v51 = vld [vmem:[%s9484_s5 + $0x130] ss:$48 sps:$4 sm:$0xff]  }
 0x956   :  { %v3263_v39 = vpop.f32.mrf.mxu1  ;;  %v3304_v32 = vpop.f32.mrf.mxu0 }
 0x957   :  { %v3321_v53 = vadd.f32 %v3313_v44, %v3179_v55  ;;  %v3314_v33 = vrot.slane %v3263_v39, 4  ;;  %v3323_v10 = vadd.f32 %v3315_v36, %v3220_v4  ;;  %v3316_v63 = vrot.slane %v3304_v32, 4  ;;  %v8662_v44 = vld [vmem:[%s9484_s5 + $0x138] ss:$48 sps:$4 sm:$0xff]   ;;  %v8668_v39 = vld [vmem:[%s9484_s5 + $0xd4] ss:$48 sps:$4 sm:$0xff]  }
 0x958   :  { %v3265_v20 = vpop.f32.mrf.mxu1  ;;  %v3306_v48 = vpop.f32.mrf.mxu0  ;;  %v8674_v32 = vld [vmem:[%s9484_s5 + $0xdc] ss:$48 sps:$4 sm:$0xff]   ;;  %v8740_v36 = vld [vmem:[%s9484_s5 + $0x2c4] ss:$48 sps:$4 sm:$0xff]  }
 0x959   :  { %v3325_v52 = vadd.f32 %v3321_v53, %v7265_v19  ;;  %v3322_v17 = vadd.f32 %v3314_v33, %v3181_v24  ;;  %v3327_v8 = vadd.f32 %v3323_v10, %v7274_v58  ;;  %v3324_v50 = vadd.f32 %v3316_v63, %v3222_v14  ;;  %v8564_v14 = vld [vmem:[%s9484_s5 + $0x2b8] ss:$48 sps:$4 sm:$0xff]   ;;  %v8680_v53 = vld [vmem:[%s9484_s5 + $0xd0] ss:$48 sps:$4 sm:$0xff]   ;;  %v8692_v20 = vld [vmem:[%s9484_s5 + $0x74] ss:$48 sps:$4 sm:$0xff]  }
 0x95a   :  { %v3266_v5 = vpop.f32.mrf.mxu1  ;;  %v3307_v0 = vpop.f32.mrf.mxu0  ;;  %v8686_v33 = vld [vmem:[%s9484_s5 + $0xd8] ss:$48 sps:$4 sm:$0xff]   ;;  %v8698_v48 = vld [vmem:[%s9484_s5 + $0x7c] ss:$48 sps:$4 sm:$0xff]   ;;  %v8754_v10 = vld [vmem:[%s9484_s5 + $0x2c0] ss:$48 sps:$4 sm:$0xff]  }
 0x95b   :  { %v5294_v15 = vmul.f32 -1.442695, %v3325_v52  ;;  %v3326_v12 = vadd.f32 %v3322_v17, %v7268_v23  ;;  %v5296_v26 = vmul.f32 -1.442695, %v3327_v8  ;;  %v3328_v2 = vadd.f32 %v3324_v50, %v7279_v34  ;;  %v8704_v52 = vld [vmem:[%s9484_s5 + $0x70] ss:$48 sps:$4 sm:$0xff]  }
 0x95c   :  { %v8710_v17 = vld [vmem:[%s9484_s5 + $0x78] ss:$48 sps:$4 sm:$0xff]   ;;  %v8716_v5 = vld [vmem:[%s9484_s5 + $0x14] ss:$48 sps:$4 sm:$0xff]   ;;  %v8722_v0 = vld [vmem:[%s9484_s5 + $0x1c] ss:$48 sps:$4 sm:$0xff]  }
 0x95d   :  { %6099 = vpow2.f32 %v5294_v15  ;;  %v5295_v9 = vmul.f32 -1.442695, %v3326_v12  ;;  %v8728_v15 = vld [vmem:[%s9484_s5 + $0x10] ss:$48 sps:$4 sm:$0xff]   ;;  %v8734_v12 = vld [vmem:[%s9484_s5 + $0x18] ss:$48 sps:$4 sm:$0xff]  }
 0x95e   :  { %v8760_v63 = vld [vmem:[%s9484_s5 + $0x2c8] ss:$48 sps:$4 sm:$0xff]   ;;  %v8766_v8 = vld [vmem:[%s9484_s5 + $0x264] ss:$48 sps:$4 sm:$0xff]   ;;  %v8772_v50 = vld [vmem:[%s9484_s5 + $0x26c] ss:$48 sps:$4 sm:$0xff]  }
 0x95f   :  { %6101 = vpow2.f32 %v5295_v9  ;;  %v8746_v9 = vld [vmem:[%s9484_s5 + $0x2cc] ss:$48 sps:$4 sm:$0xff]  }
 0x960   :  { %6103 = vpow2.f32 %v5296_v26  ;;  %v8780_v26 = vld [vmem:[%s9484_s5 + $0x260] ss:$48 sps:$4 sm:$0xff]  }
 0x96a   :  { %v6100_v3 = vpop.eup %6099 }
 0x96b   :  { %v3338_v16 = vadd.f32 1.0, %v6100_v3  ;;  %v8786_v3 = vld [vmem:[%s9484_s5 + $0x268] ss:$48 sps:$4 sm:$0xff]  }
 0x96c   :  { %v6102_v61 = vpop.eup %6101 }
 0x96d   :  { %6105 = vrcp.f32 %v3338_v16  ;;  %v3339_v56 = vadd.f32 1.0, %v6102_v61  ;;  %v6104_v37 = vpop.eup %6103  ;;  %v8798_v16 = vld [vmem:[%s9484_s5 + $0x20c] ss:$48 sps:$4 sm:$0xff]   ;;  %v8804_v61 = vld [vmem:[%s9484_s5 + $0x200] ss:$48 sps:$4 sm:$0xff]  }
 0x96e   :  { %6107 = vtanh.f32 %v3328_v2  ;;  %v3340_v27 = vadd.f32 1.0, %v6104_v37  ;;  %v8792_v2 = vld [vmem:[%s9484_s5 + $0x204] ss:$48 sps:$4 sm:$0xff]  }
 0x96f   :  { %6109 = vrcp.f32 %v3339_v56  ;;  %v8810_v56 = vld [vmem:[%s9484_s5 + $0x208] ss:$48 sps:$4 sm:$0xff]   ;;  %v8816_v37 = vld [vmem:[%s9484_s5 + $0x1a4] ss:$48 sps:$4 sm:$0xff]  }
 0x970   :  { %6111 = vrcp.f32 %v3340_v27  ;;  %v8840_v27 = vld [vmem:[%s9484_s5 + $0x144] ss:$48 sps:$4 sm:$0xff]  }
 0x97a   :  { %v6106_v60 = vpop.eup %6105 }
 0x97b   :  { %v6108_v21 = vpop.eup %6107 }
 0x97c   :  { %v6110_v35 = vpop.eup %6109  ;;  %v3349_v29 = vmul.f32 %v6108_v21, %v6106_v60  ;;  %v8822_v60 = vld [vmem:[%s9484_s5 + $0x1ac] ss:$48 sps:$4 sm:$0xff]   ;;  %v8828_v21 = vld [vmem:[%s9484_s5 + $0x1a0] ss:$48 sps:$4 sm:$0xff]  }
 0x97d   :  { %v3348_v54 = vmul.f32 %v6110_v35, %v8414_v49  ;;  %v6112_v47 = vpop.eup %6111  ;;  %v8558_v49 = vld [vmem:[%s9484_s5 + $0x2b0] ss:$48 sps:$4 sm:$0xff]   ;;  %v8834_v35 = vld [vmem:[%s9484_s5 + $0x1a8] ss:$48 sps:$4 sm:$0xff]  }
 0x97f   :  { %v8547_v46 = vadd.f32 %v3349_v29, %v3348_v54  ;;  %v8846_v54 = vld [vmem:[%s9484_s5 + $0x14c] ss:$48 sps:$4 sm:$0xff]   ;;  %v8852_v29 = vld [vmem:[%s9484_s5 + $0x140] ss:$48 sps:$4 sm:$0xff]  }
 0x981   :  { %6113 = vtanh.f32 %v8547_v46 }
 0x98e   :  { %v6114_v55 = vpop.eup %6113 }
 0x98f   :  { %v3352_v4 = vmul.f32 %v6114_v55, %v6112_v47  ;;  %v8858_v47 = vld [vmem:[%s9484_s5 + $0x148] ss:$48 sps:$4 sm:$0xff]   ;;  %v8864_v55 = vld [vmem:[%s9484_s5 + $0xe4] ss:$48 sps:$4 sm:$0xff]  }
 0x990   :  { %10133 = vst [vmem:[#allocation42_spill] sm:$0xff] %v8864_v55 }
 0x991   :  { %3353 = vst [vmem:[#allocation3 + $0x14] sm:$0xf] %v3352_v4  ;;  %v3390_v6 = vrot.slane %v3352_v4, 4  ;;  %v8870_v4 = vld [vmem:[%s9484_s5 + $0xec] ss:$48 sps:$4 sm:$0xff]  }
 0x992   :  { %10134 = vst [vmem:[#allocation43_spill] sm:$0xff] %v8870_v4 }
 0x993   :  { %v3392_v13 = vsel %vm85_vm0, %v3388_v38, %v3390_v6  ;;  %v8644_v38 = vld [vmem:[%s9484_s5 + $0x134] ss:$48 sps:$4 sm:$0xff]   ;;  %v8876_v6 = vld [vmem:[%s9484_s5 + $0xe0] ss:$48 sps:$4 sm:$0xff]  }
 0x994   :  { %v8551_v24 = vpack.c.bf16 %v3392_v13, %v3392_v13  ;;  %10135 = vst [vmem:[#allocation44_spill] sm:$0xff] %v8876_v6  ;;  %v8882_v13 = vld [vmem:[%s9484_s5 + $0xe8] ss:$48 sps:$4 sm:$0xff]  }
 0x995   :  { %10136 = vst [vmem:[#allocation45_spill] sm:$0xff] %v8882_v13 }
 0x996   :  { %3427 = vmatmul.mubr.bf16.vlgmr.msra.gmra.mxu1 %v8551_v24  ;;  %3468 = vmatmul.mubr.bf16.vlgmr.msra.gmra.mxu0 %v8551_v24 }
 0x997   :  { %3477 = vmatpush1.bf16.msra.mxu1 %v8558_v49  ;;  %3518 = vmatpush1.bf16.msra.mxu0 %v8564_v14 }
 0x998   :  { %3478 = vmatprep.subr.bf16.mxu1 %v8570_v18  ;;  %3519 = vmatprep.subr.bf16.mxu0 %v8576_v28 }
 0x999   :  { %3508 = vmatprep.mubr.bf16.mxu1 %v9797_v43  ;;  %3549 = vmatprep.mubr.bf16.mxu0 %v9797_v43 }
 0x99b   :  { %3479 = vmatpush1.bf16.msra.mxu1 %v8584_v31  ;;  %3520 = vmatpush1.bf16.msra.mxu0 %v8590_v45 }
 0x99c   :  { %3480 = vmatprep.subr.bf16.mxu1 %v8596_v62  ;;  %3521 = vmatprep.subr.bf16.mxu0 %v8602_v25 }
 0x99f   :  { %3481 = vmatpush1.bf16.msra.mxu1 %v8608_v40  ;;  %3522 = vmatpush1.bf16.msra.mxu0 %v8614_v11 }
 0x9a0   :  { %3482 = vmatprep.subr.bf16.mxu1 %v8620_v41  ;;  %3523 = vmatprep.subr.bf16.mxu0 %v8626_v30 }
 0x9a3   :  { %3483 = vmatpush1.bf16.msra.mxu1 %v8632_v42  ;;  %3524 = vmatpush1.bf16.msra.mxu0 %v8638_v22 }
 0x9a4   :  { %3484 = vmatprep.subr.bf16.mxu1 %v8644_v38  ;;  %3525 = vmatprep.subr.bf16.mxu0 %v8650_v7 }
 0x9a7   :  { %3485 = vmatpush1.bf16.msra.mxu1 %v8656_v51  ;;  %3526 = vmatpush1.bf16.msra.mxu0 %v8662_v44 }
 0x9a8   :  { %3486 = vmatprep.subr.bf16.mxu1 %v8668_v39  ;;  %3527 = vmatprep.subr.bf16.mxu0 %v8674_v32 }
 0x9ab   :  { %3487 = vmatpush1.bf16.msra.mxu1 %v8680_v53  ;;  %3528 = vmatpush1.bf16.msra.mxu0 %v8686_v33 }
 0x9ac   :  { %3488 = vmatprep.subr.bf16.mxu1 %v8692_v20  ;;  %3529 = vmatprep.subr.bf16.mxu0 %v8698_v48 }
 0x9af   :  { %3489 = vmatpush1.bf16.msra.mxu1 %v8704_v52  ;;  %3530 = vmatpush1.bf16.msra.mxu0 %v8710_v17 }
 0x9b0   :  { %3490 = vmatprep.subr.bf16.mxu1 %v8716_v5  ;;  %3531 = vmatprep.subr.bf16.mxu0 %v8722_v0 }
 0x9b3   :  { %3491 = vmatpush1.bf16.msra.mxu1 %v8728_v15  ;;  %3532 = vmatpush1.bf16.msra.mxu0 %v8734_v12 }
 0x9b4   :  { %3558 = vmatprep.subr.bf16.mxu1 %v8740_v36  ;;  %3599 = vmatprep.subr.bf16.mxu0 %v8746_v9 }
 0x9b6   :  { %3509 = vmatmul.mubr.bf16.vlgmr.msra.gmra.mxu1 %v8551_v24  ;;  %3550 = vmatmul.mubr.bf16.vlgmr.msra.gmra.mxu0 %v8551_v24 }
 0x9b7   :  { %3559 = vmatpush1.bf16.msra.mxu1 %v8754_v10  ;;  %3600 = vmatpush1.bf16.msra.mxu0 %v8760_v63 }
 0x9b8   :  { %3560 = vmatprep.subr.bf16.mxu1 %v8766_v8  ;;  %3601 = vmatprep.subr.bf16.mxu0 %v8772_v50 }
 0x9b9   :  { %3590 = vmatprep.mubr.bf16.mxu1 %v9797_v43  ;;  %3631 = vmatprep.mubr.bf16.mxu0 %v9797_v43 }
 0x9bb   :  { %3561 = vmatpush1.bf16.msra.mxu1 %v8780_v26  ;;  %3602 = vmatpush1.bf16.msra.mxu0 %v8786_v3 }
 0x9bc   :  { %3562 = vmatprep.subr.bf16.mxu1 %v8792_v2  ;;  %3603 = vmatprep.subr.bf16.mxu0 %v8798_v16 }
 0x9bf   :  { %3563 = vmatpush1.bf16.msra.mxu1 %v8804_v61  ;;  %3604 = vmatpush1.bf16.msra.mxu0 %v8810_v56 }
 0x9c0   :  { %3564 = vmatprep.subr.bf16.mxu1 %v8816_v37  ;;  %3605 = vmatprep.subr.bf16.mxu0 %v8822_v60 }
 0x9c3   :  { %3565 = vmatpush1.bf16.msra.mxu1 %v8828_v21  ;;  %3606 = vmatpush1.bf16.msra.mxu0 %v8834_v35 }
 0x9c4   :  { %3566 = vmatprep.subr.bf16.mxu1 %v8840_v27  ;;  %3607 = vmatprep.subr.bf16.mxu0 %v8846_v54 }
 0x9c7   :  { %3567 = vmatpush1.bf16.msra.mxu1 %v8852_v29  ;;  %3608 = vmatpush1.bf16.msra.mxu0 %v8858_v47 }
 0x9c8   :  { %3568 = vmatprep.subr.bf16.mxu1 %v8864_v55  ;;  %3609 = vmatprep.subr.bf16.mxu0 %v8870_v4  ;;  %v8888_v55 = vld [vmem:[%s9484_s5 + $0x84] ss:$48 sps:$4 sm:$0xff]   ;;  %v8894_v4 = vld [vmem:[%s9484_s5 + $0x8c] ss:$48 sps:$4 sm:$0xff]  }
 0x9c9   :  { %10137 = vst [vmem:[#allocation46_spill] sm:$0xff] %v8888_v55  ;;  %10138 = vst [vmem:[#allocation47_spill] sm:$0xff] %v8894_v4 }
 0x9cb   :  { %3569 = vmatpush1.bf16.msra.mxu1 %v8876_v6  ;;  %3610 = vmatpush1.bf16.msra.mxu0 %v8882_v13  ;;  %v8900_v6 = vld [vmem:[%s9484_s5 + $0x80] ss:$48 sps:$4 sm:$0xff]   ;;  %v8906_v13 = vld [vmem:[%s9484_s5 + $0x88] ss:$48 sps:$4 sm:$0xff]  }
 0x9cc   :  { %3570 = vmatprep.subr.bf16.mxu1 %v8888_v55  ;;  %3611 = vmatprep.subr.bf16.mxu0 %v8894_v4  ;;  %10139 = vst [vmem:[#allocation48_spill] sm:$0xff] %v8900_v6  ;;  %10140 = vst [vmem:[#allocation49_spill] sm:$0xff] %v8906_v13  ;;  %v8912_v55 = vld [vmem:[%s9484_s5 + $0x24] ss:$48 sps:$4 sm:$0xff]   ;;  %v8918_v4 = vld [vmem:[%s9484_s5 + $0x2c] ss:$48 sps:$4 sm:$0xff]  }
 0x9cf   :  { %3571 = vmatpush1.bf16.msra.mxu1 %v8900_v6  ;;  %3612 = vmatpush1.bf16.msra.mxu0 %v8906_v13  ;;  %v8924_v6 = vld [vmem:[%s9484_s5 + $0x20] ss:$48 sps:$4 sm:$0xff]   ;;  %v8930_v13 = vld [vmem:[%s9484_s5 + $0x28] ss:$48 sps:$4 sm:$0xff]  }
 0x9d0   :  { %3572 = vmatprep.subr.bf16.mxu1 %v8912_v55  ;;  %3613 = vmatprep.subr.bf16.mxu0 %v8918_v4 }
 0x9d3   :  { %3573 = vmatpush1.bf16.msra.mxu1 %v8924_v6  ;;  %3614 = vmatpush1.bf16.msra.mxu0 %v8930_v13 }
 0x9d4   :  { %3740 = vmatprep.subr.bf16.mxu1 %v8529_v59  ;;  %3781 = vmatprep.subr.bf16.mxu0 %v8535_v1 }
 0x9d6   :  { %3591 = vmatmul.mubr.bf16.vlgmr.msra.gmra.mxu1 %v8551_v24  ;;  %3632 = vmatmul.mubr.bf16.vlgmr.msra.gmra.mxu0 %v8551_v24 }
 0x9d7   :  { %3741 = vmatpush1.bf16.msra.mxu1 %v8558_v49  ;;  %3782 = vmatpush1.bf16.msra.mxu0 %v8564_v14  ;;  %v3685_v49 = vld [vmem:[#allocation2 + $0x60] sm:$0xf0] }
 0x9d8   :  { %3742 = vmatprep.subr.bf16.mxu1 %v8570_v18  ;;  %3783 = vmatprep.subr.bf16.mxu0 %v8576_v28 }
 0x9d9   :  { %3772 = vmatprep.mubr.bf16.mxu1 %v9797_v43  ;;  %3813 = vmatprep.mubr.bf16.mxu0 %v9797_v43 }
 0x9db   :  { %3743 = vmatpush1.bf16.msra.mxu1 %v8584_v31  ;;  %3784 = vmatpush1.bf16.msra.mxu0 %v8590_v45  ;;  %v3686_v45 = vld [vmem:[#allocation2 + $0x70] sm:$0xf0] }
 0x9dc   :  { %3744 = vmatprep.subr.bf16.mxu1 %v8596_v62  ;;  %3785 = vmatprep.subr.bf16.mxu0 %v8602_v25 }
 0x9df   :  { %3745 = vmatpush1.bf16.msra.mxu1 %v8608_v40  ;;  %3786 = vmatpush1.bf16.msra.mxu0 %v8614_v11 }
 0x9e0   :  { %3746 = vmatprep.subr.bf16.mxu1 %v8620_v41  ;;  %3787 = vmatprep.subr.bf16.mxu0 %v8626_v30 }
 0x9e3   :  { %3747 = vmatpush1.bf16.msra.mxu1 %v8632_v42  ;;  %3788 = vmatpush1.bf16.msra.mxu0 %v8638_v22 }
 0x9e4   :  { %3748 = vmatprep.subr.bf16.mxu1 %v8644_v38  ;;  %3789 = vmatprep.subr.bf16.mxu0 %v8650_v7  ;;  %v3687_v38 = vld [vmem:[#allocation2 + $0x78] sm:$0xf0] }
 0x9e7   :  { %3749 = vmatpush1.bf16.msra.mxu1 %v8656_v51  ;;  %3790 = vmatpush1.bf16.msra.mxu0 %v8662_v44 }
 0x9e8   :  { %3750 = vmatprep.subr.bf16.mxu1 %v8668_v39  ;;  %3791 = vmatprep.subr.bf16.mxu0 %v8674_v32  ;;  %v3688_v39 = vld [vmem:[#allocation2 + $0x28] sm:$0xf0] }
 0x9eb   :  { %3751 = vmatpush1.bf16.msra.mxu1 %v8680_v53  ;;  %3792 = vmatpush1.bf16.msra.mxu0 %v8686_v33 }
 0x9ec   :  { %3752 = vmatprep.subr.bf16.mxu1 %v8692_v20  ;;  %3793 = vmatprep.subr.bf16.mxu0 %v8698_v48 }
 0x9ef   :  { %3753 = vmatpush1.bf16.msra.mxu1 %v8704_v52  ;;  %3794 = vmatpush1.bf16.msra.mxu0 %v8710_v17 }
 0x9f0   :  { %3754 = vmatprep.subr.bf16.mxu1 %v8716_v5  ;;  %3795 = vmatprep.subr.bf16.mxu0 %v8722_v0 }
 0x9f3   :  { %3755 = vmatpush1.bf16.msra.mxu1 %v8728_v15  ;;  %3796 = vmatpush1.bf16.msra.mxu0 %v8734_v12 }
 0x9f4   :  { %3822 = vmatprep.subr.bf16.mxu1 %v8740_v36  ;;  %3863 = vmatprep.subr.bf16.mxu0 %v8746_v9 }
 0xa56   :  { %v3428_v59 = vpop.f32.mrf.mxu1  ;;  %v3469_v1 = vpop.f32.mrf.mxu0 }
 0xa57   :  { %v3693_v24 = vrot.slane %v3428_v59, 4  ;;  %v3695_v22 = vrot.slane %v3469_v1, 4  ;;  %v3725_v1 = vrot.slane %v8539_v57, 4 }
 0xa58   :  { %v3430_v14 = vpop.f32.mrf.mxu1  ;;  %v3471_v18 = vpop.f32.mrf.mxu0 }
 0xa59   :  { %v3701_v28 = vadd.f32 %v3693_v24, %v3685_v49  ;;  %v3694_v31 = vrot.slane %v3430_v14, 4  ;;  %v3703_v7 = vadd.f32 %v3695_v22, %v3687_v38  ;;  %v3696_v51 = vrot.slane %v3471_v18, 4 }
 0xa5a   :  { %v3432_v62 = vpop.f32.mrf.mxu1  ;;  %v3473_v25 = vpop.f32.mrf.mxu0 }
 0xa5b   :  { %v5303_v40 = vmul.f32 -1.442695, %v3701_v28  ;;  %v3702_v11 = vadd.f32 %v3694_v31, %v3686_v45  ;;  %v5305_v44 = vmul.f32 -1.442695, %v3703_v7  ;;  %v3704_v32 = vadd.f32 %v3696_v51, %v3688_v39 }
 0xa5c   :  { %v3433_v41 = vpop.f32.mrf.mxu1  ;;  %v3474_v30 = vpop.f32.mrf.mxu0 }
 0xa5d   :  { %6115 = vpow2.f32 %v5303_v40  ;;  %v5304_v42 = vmul.f32 -1.442695, %v3702_v11 }
 0xa5f   :  { %6117 = vpow2.f32 %v5304_v42 }
 0xa60   :  { %6119 = vpow2.f32 %v5305_v44 }
 0xa61   :  { %6121 = vtanh.f32 %v3704_v32 }
 0xa6a   :  { %v6116_v53 = vpop.eup %6115 }
 0xa6b   :  { %v3714_v33 = vadd.f32 1.0, %v6116_v53 }
 0xa6c   :  { %v6118_v20 = vpop.eup %6117 }
 0xa6d   :  { %6123 = vrcp.f32 %v3714_v33  ;;  %v3715_v48 = vadd.f32 1.0, %v6118_v20  ;;  %v6120_v5 = vpop.eup %6119 }
 0xa6e   :  { %v6122_v12 = vpop.eup %6121  ;;  %v3716_v14 = vadd.f32 1.0, %v6120_v5 }
 0xa6f   :  { %6125 = vrcp.f32 %v3715_v48 }
 0xa70   :  { %6127 = vrcp.f32 %v3716_v14 }
 0xa76   :  { %v3510_v52 = vpop.f32.mrf.mxu1  ;;  %v3551_v17 = vpop.f32.mrf.mxu0 }
 0xa78   :  { %v3512_v0 = vpop.f32.mrf.mxu1  ;;  %v3553_v15 = vpop.f32.mrf.mxu0 }
 0xa7a   :  { %v6124_v36 = vpop.eup %6123  ;;  %v3514_v9 = vpop.f32.mrf.mxu1 }
 0xa7b   :  { %v3555_v59 = vpop.f32.mrf.mxu0  ;;  %v3728_v24 = vmul.f32 %v6124_v36, %v6122_v12 }
 0xa7c   :  { %v6126_v49 = vpop.eup %6125  ;;  %v3515_v18 = vpop.f32.mrf.mxu1 }
 0xa7d   :  { %v3556_v28 = vpop.f32.mrf.mxu0  ;;  %v3727_v31 = vmul.f32 %v6126_v49, %v3725_v1  ;;  %v6128_v62 = vpop.eup %6127 }
 0xa7f   :  { %v3729_v45 = vadd.f32 %v3728_v24, %v3727_v31 }
 0xa81   :  { %6129 = vtanh.f32 %v3729_v45 }
 0xa8e   :  { %v6130_v25 = vpop.eup %6129 }
 0xa8f   :  { %v3731_v40 = vmul.f32 %v6130_v25, %v6128_v62 }
 0xa96   :  { %v3592_v11 = vpop.f32.mrf.mxu1  ;;  %v3633_v41 = vpop.f32.mrf.mxu0 }
 0xa97   :  { %v3644_v30 = vrot.slane %v3592_v11, 4  ;;  %v3646_v48 = vrot.slane %v3633_v41, 4 }
 0xa98   :  { %v3594_v42 = vpop.f32.mrf.mxu1  ;;  %v3635_v22 = vpop.f32.mrf.mxu0 }
 0xa99   :  { %v3652_v38 = vadd.f32 %v3644_v30, %v3510_v52  ;;  %v3645_v7 = vrot.slane %v3594_v42, 4  ;;  %v3654_v12 = vadd.f32 %v3646_v48, %v3551_v17  ;;  %v3647_v36 = vrot.slane %v3635_v22, 4  ;;  %v5724_v48 = vld [vmem:[%s9486_s7 + $0x130] ss:$8 sps:$4 sm:$0xff]  }
 0xa9a   :  { %v3596_v57 = vpop.f32.mrf.mxu1  ;;  %v3637_v51 = vpop.f32.mrf.mxu0  ;;  %v3733_v42 = vrot.slane %v3731_v40, 4  ;;  %v5709_v40 = vld [vmem:[%s9486_s7 + $0x50] ss:$8 sps:$4 sm:$0xff]  }
 0xa9b   :  { %v3656_v44 = vadd.f32 %v3652_v38, %v7265_v19  ;;  %v3653_v39 = vadd.f32 %v3645_v7, %v3512_v0  ;;  %v3658_v9 = vadd.f32 %v3654_v12, %v7274_v58  ;;  %v3655_v52 = vadd.f32 %v3647_v36, %v3553_v15  ;;  %v5712_v57 = vld [vmem:[%s9486_s7 + $0x150] ss:$8 sps:$4 sm:$0xff]   ;;  %v5717_v51 = vld [vmem:[%s9486_s7 + $0x44] ss:$8 sps:$4 sm:$0xff]   ;;  %v5727_v36 = vld [vmem:[%s9486_s7 + $0x20] ss:$8 sps:$4 sm:$0xff]  }
 0xa9c   :  { %v3597_v32 = vpop.f32.mrf.mxu1  ;;  %v3638_v53 = vpop.f32.mrf.mxu0  ;;  %v5732_v12 = vld [vmem:[%s9486_s7 + $0x124] ss:$8 sps:$4 sm:$0xff]  }
 0xa9d   :  { %v5300_v33 = vmul.f32 -1.442695, %v3656_v44  ;;  %v3657_v20 = vadd.f32 %v3653_v39, %v7268_v23  ;;  %v5302_v59 = vmul.f32 -1.442695, %v3658_v9  ;;  %v3659_v24 = vadd.f32 %v3655_v52, %v7279_v34  ;;  %v5720_v44 = vld [vmem:[%s9486_s7 + $0x144] ss:$8 sps:$4 sm:$0xff]  }
 0xa9e   :  { %v5715_v39 = vld [vmem:[%s9486_s7 + $0x40] ss:$8 sps:$4 sm:$0xff]   ;;  %v5723_v53 = vld [vmem:[%s9486_s7 + $0x34] ss:$8 sps:$4 sm:$0xff]  }
 0xa9f   :  { %6131 = vpow2.f32 %v5300_v33  ;;  %v5301_v5 = vmul.f32 -1.442695, %v3657_v20  ;;  %v5718_v32 = vld [vmem:[%s9486_s7 + $0x140] ss:$8 sps:$4 sm:$0xff]   ;;  %v5726_v33 = vld [vmem:[%s9486_s7 + $0x134] ss:$8 sps:$4 sm:$0xff]  }
 0xaa0   :  { %v5721_v20 = vld [vmem:[%s9486_s7 + $0x30] ss:$8 sps:$4 sm:$0xff]   ;;  %v5730_v9 = vld [vmem:[%s9486_s7 + $0x120] ss:$8 sps:$4 sm:$0xff]   ;;  %v5735_v52 = vld [vmem:[%s9486_s7 + $0x14] ss:$8 sps:$4 sm:$0xff]  }
 0xaa1   :  { %6133 = vpow2.f32 %v5301_v5  ;;  %v5729_v5 = vld [vmem:[%s9486_s7 + $0x24] ss:$8 sps:$4 sm:$0xff]  }
 0xaa2   :  { %6135 = vpow2.f32 %v5302_v59  ;;  %v5738_v59 = vld [vmem:[%s9486_s7 + $0x114] ss:$8 sps:$4 sm:$0xff]  }
 0xaac   :  { %v6132_v1 = vpop.eup %6131 }
 0xaad   :  { %v3669_v49 = vadd.f32 1.0, %v6132_v1  ;;  %v5733_v1 = vld [vmem:[%s9486_s7 + $0x10] ss:$8 sps:$4 sm:$0xff]  }
 0xaae   :  { %v6134_v0 = vpop.eup %6133 }
 0xaaf   :  { %6137 = vrcp.f32 %v3669_v49  ;;  %v3670_v14 = vadd.f32 1.0, %v6134_v0  ;;  %v6136_v18 = vpop.eup %6135  ;;  %v5741_v49 = vld [vmem:[%s9486_s7 + $0x4] ss:$8 sps:$4 sm:$0xff]  }
 0xab0   :  { %6139 = vtanh.f32 %v3659_v24  ;;  %v3671_v17 = vadd.f32 1.0, %v6136_v18  ;;  %v5736_v24 = vld [vmem:[%s9486_s7 + $0x110] ss:$8 sps:$4 sm:$0xff]   ;;  %v5744_v0 = vld [vmem:[%s9486_s7 + $0x104] ss:$8 sps:$4 sm:$0xff]  }
 0xab1   :  { %6141 = vrcp.f32 %v3670_v14  ;;  %v5739_v14 = vld [vmem:[%s9486_s7] ss:$8 sps:$4 sm:$0xff]  }
 0xab2   :  { %6143 = vrcp.f32 %v3671_v17  ;;  %v5742_v18 = vld [vmem:[%s9486_s7 + $0x100] ss:$8 sps:$4 sm:$0xff]   ;;  %v5748_v17 = vld [vmem:[%s9486_s7 + $0x1f0] ss:$8 sps:$4 sm:$0xff]  }
 0xabc   :  { %v6138_v28 = vpop.eup %6137 }
 0xabd   :  { %v6140_v31 = vpop.eup %6139 }
 0xabe   :  { %v6142_v45 = vpop.eup %6141  ;;  %v3680_v25 = vmul.f32 %v6140_v31, %v6138_v28  ;;  %v5747_v28 = vld [vmem:[%s9486_s7 + $0xf4] ss:$8 sps:$4 sm:$0xff]  }
 0xabf   :  { %v3679_v62 = vmul.f32 %v6142_v45, %v8547_v46  ;;  %v6144_v11 = vpop.eup %6143  ;;  %v10142_v46 = vld [vmem:[#allocation43_spill] sm:$0xff]  ;;  %v5750_v31 = vld [vmem:[%s9486_s7 + $0x1f4] ss:$8 sps:$4 sm:$0xff]   ;;  %v5745_v45 = vld [vmem:[%s9486_s7 + $0xf0] ss:$8 sps:$4 sm:$0xff]  }
 0xac1   :  { %v8977_v15 = vadd.f32 %v3680_v25, %v3679_v62  ;;  %v5753_v62 = vld [vmem:[%s9486_s7 + $0xe4] ss:$8 sps:$4 sm:$0xff]  }
 0xac2   :  { %v5756_v25 = vld [vmem:[%s9486_s7 + $0x1e4] ss:$8 sps:$4 sm:$0xff]  }
 0xac3   :  { %6145 = vtanh.f32 %v8977_v15 }
 0xad0   :  { %v6146_v41 = vpop.eup %6145 }
 0xad1   :  { %v3683_v30 = vmul.f32 %v6146_v41, %v6144_v11  ;;  %v5751_v11 = vld [vmem:[%s9486_s7 + $0xe0] ss:$8 sps:$4 sm:$0xff]  }
 0xad2   :  { %v5754_v41 = vld [vmem:[%s9486_s7 + $0x1e0] ss:$8 sps:$4 sm:$0xff]  }
 0xad3   :  { %3684 = vst [vmem:[#allocation3 + $0x18] sm:$0xf] %v3683_v30  ;;  %v3736_v22 = vrot.slane %v3683_v30, 4  ;;  %v5759_v30 = vld [vmem:[%s9486_s7 + $0xd4] ss:$8 sps:$4 sm:$0xff]  }
 0xad5   :  { %v3738_v38 = vsel %vm85_vm0, %v3733_v42, %v3736_v22  ;;  %v5762_v42 = vld [vmem:[%s9486_s7 + $0x1d4] ss:$8 sps:$4 sm:$0xff]   ;;  %v5757_v22 = vld [vmem:[%s9486_s7 + $0xd0] ss:$8 sps:$4 sm:$0xff]  }
 0xad6   :  { %v3739_v7 = vpack.c.bf16 %v3738_v38, %v3738_v38  ;;  %v5760_v38 = vld [vmem:[%s9486_s7 + $0x1d0] ss:$8 sps:$4 sm:$0xff]  }
 0xad8   :  { %3773 = vmatmul.mubr.bf16.vlgmr.msra.gmra.mxu1 %v3739_v7  ;;  %3814 = vmatmul.mubr.bf16.vlgmr.msra.gmra.mxu0 %v3739_v7 }
 0xad9   :  { %3823 = vmatpush1.bf16.msra.mxu1 %v8754_v10  ;;  %3864 = vmatpush1.bf16.msra.mxu0 %v8760_v63  ;;  %v10143_v10 = vld [vmem:[#allocation44_spill] sm:$0xff]  ;;  %v10144_v63 = vld [vmem:[#allocation45_spill] sm:$0xff] }
 0xada   :  { %3824 = vmatprep.subr.bf16.mxu1 %v8766_v8  ;;  %3865 = vmatprep.subr.bf16.mxu0 %v8772_v50  ;;  %v10145_v8 = vld [vmem:[#allocation46_spill] sm:$0xff]  ;;  %v10146_v50 = vld [vmem:[#allocation47_spill] sm:$0xff] }
 0xadb   :  { %3854 = vmatprep.mubr.bf16.mxu1 %v9797_v43  ;;  %3895 = vmatprep.mubr.bf16.mxu0 %v9797_v43  ;;  %v10141_v43 = vld [vmem:[#allocation42_spill] sm:$0xff] }
 0xadd   :  { %3825 = vmatpush1.bf16.msra.mxu1 %v8780_v26  ;;  %3866 = vmatpush1.bf16.msra.mxu0 %v8786_v3  ;;  %v9007_v26 = vld [vmem:[#allocation3] sm:$0xff]  ;;  %v10147_v3 = vld [vmem:[#allocation48_spill] sm:$0xff] }
 0xade   :  { %3826 = vmatprep.subr.bf16.mxu1 %v8792_v2  ;;  %3867 = vmatprep.subr.bf16.mxu0 %v8798_v16  ;;  %v10148_v2 = vld [vmem:[#allocation49_spill] sm:$0xff]  ;;  %v9011_v16 = vld [vmem:[#allocation3 + $0x8] sm:$0xff] }
 0xae1   :  { %3827 = vmatpush1.bf16.msra.mxu1 %v8804_v61  ;;  %3868 = vmatpush1.bf16.msra.mxu0 %v8810_v56  ;;  %v5697_v61 = vld [vmem:[%s9486_s7 + $0x74] ss:$8 sps:$4 sm:$0xff]  }
 0xae2   :  { %3828 = vmatprep.subr.bf16.mxu1 %v8816_v37  ;;  %3869 = vmatprep.subr.bf16.mxu0 %v8822_v60  ;;  %v5700_v56 = vld [vmem:[%s9486_s7 + $0x174] ss:$8 sps:$4 sm:$0xff]   ;;  %v3957_v37 = vcombine.high %v9007_v26, %v9007_v26  ;;  %v3958_v60 = vcombine.high %v9011_v16, %v9011_v16 }
 0xae5   :  { %3829 = vmatpush1.bf16.msra.mxu1 %v8828_v21  ;;  %3870 = vmatpush1.bf16.msra.mxu0 %v8834_v35  ;;  %v5695_v21 = vld [vmem:[%s9486_s7 + $0x70] ss:$8 sps:$4 sm:$0xff]  }
 0xae6   :  { %3830 = vmatprep.subr.bf16.mxu1 %v8840_v27  ;;  %3871 = vmatprep.subr.bf16.mxu0 %v8846_v54  ;;  %v5698_v35 = vld [vmem:[%s9486_s7 + $0x170] ss:$8 sps:$4 sm:$0xff]   ;;  %v3966_v27 = vpack.c.bf16 %v3957_v37, %v3957_v37  ;;  %v5705_v54 = vld [vmem:[%s9486_s7 + $0x64] ss:$8 sps:$4 sm:$0xff]   ;;  %v5778_v37 = vld [vmem:[%s9486_s7 + $0x1a0] ss:$8 sps:$4 sm:$0xff]  }
 0xae9   :  { %3831 = vmatpush1.bf16.msra.mxu1 %v8852_v29  ;;  %3872 = vmatpush1.bf16.msra.mxu0 %v8858_v47  ;;  %v5708_v29 = vld [vmem:[%s9486_s7 + $0x164] ss:$8 sps:$4 sm:$0xff]   ;;  %v3968_v47 = vpack.c.bf16 %v3958_v60, %v3958_v60  ;;  %v5783_v60 = vld [vmem:[%s9486_s7 + $0x94] ss:$8 sps:$4 sm:$0xff]  }
 0xaea   :  { %3832 = vmatprep.subr.bf16.mxu1 %v10141_v43  ;;  %3873 = vmatprep.subr.bf16.mxu0 %v10142_v46  ;;  %v5768_v43 = vld [vmem:[%s9486_s7 + $0x1c4] ss:$8 sps:$4 sm:$0xff]   ;;  %v5763_v46 = vld [vmem:[%s9486_s7 + $0xc0] ss:$8 sps:$4 sm:$0xff]  }
 0xaed   :  { %3833 = vmatpush1.bf16.msra.mxu1 %v10143_v10  ;;  %3874 = vmatpush1.bf16.msra.mxu0 %v10144_v63  ;;  %v5766_v10 = vld [vmem:[%s9486_s7 + $0x1c0] ss:$8 sps:$4 sm:$0xff]   ;;  %v5771_v63 = vld [vmem:[%s9486_s7 + $0xb4] ss:$8 sps:$4 sm:$0xff]  }
 0xaee   :  { %3834 = vmatprep.subr.bf16.mxu1 %v10145_v8  ;;  %3875 = vmatprep.subr.bf16.mxu0 %v10146_v50  ;;  %v5774_v8 = vld [vmem:[%s9486_s7 + $0x1b4] ss:$8 sps:$4 sm:$0xff]   ;;  %v5769_v50 = vld [vmem:[%s9486_s7 + $0xb0] ss:$8 sps:$4 sm:$0xff]  }
 0xaf1   :  { %3835 = vmatpush1.bf16.msra.mxu1 %v10147_v3  ;;  %3876 = vmatpush1.bf16.msra.mxu0 %v10148_v2  ;;  %v5772_v3 = vld [vmem:[%s9486_s7 + $0x1b0] ss:$8 sps:$4 sm:$0xff]   ;;  %v5777_v2 = vld [vmem:[%s9486_s7 + $0xa4] ss:$8 sps:$4 sm:$0xff]  }
 0xaf2   :  { %3836 = vmatprep.subr.bf16.mxu1 %v8912_v55  ;;  %3877 = vmatprep.subr.bf16.mxu0 %v8918_v4  ;;  %v5703_v55 = vld [vmem:[%s9486_s7 + $0x60] ss:$8 sps:$4 sm:$0xff]  }
 0xaf3   :  { %v5706_v4 = vld [vmem:[%s9486_s7 + $0x160] ss:$8 sps:$4 sm:$0xff]  }
 0xaf5   :  { %3837 = vmatpush1.bf16.msra.mxu1 %v8924_v6  ;;  %3878 = vmatpush1.bf16.msra.mxu0 %v8930_v13  ;;  %v5711_v6 = vld [vmem:[%s9486_s7 + $0x54] ss:$8 sps:$4 sm:$0xff]  }
 0xaf6   :  { %4753 = vmatprep.subr.bf16.mxu1 %v5697_v61  ;;  %4794 = vmatprep.subr.bf16.mxu0 %v5700_v56  ;;  %v5714_v13 = vld [vmem:[%s9486_s7 + $0x154] ss:$8 sps:$4 sm:$0xff]   ;;  %v5780_v61 = vld [vmem:[%s9486_s7 + $0x1a4] ss:$8 sps:$4 sm:$0xff]   ;;  %v5775_v56 = vld [vmem:[%s9486_s7 + $0xa0] ss:$8 sps:$4 sm:$0xff]  }
 0xaf8   :  { %3855 = vmatmul.mubr.bf16.vlgmr.msra.gmra.mxu1 %v3739_v7  ;;  %3896 = vmatmul.mubr.bf16.vlgmr.msra.gmra.mxu0 %v3739_v7  ;;  %v5765_v7 = vld [vmem:[%s9486_s7 + $0xc4] ss:$8 sps:$4 sm:$0xff]  }
 0xaf9   :  { %4754 = vmatpush1.bf16.msra.mxu1 %v5695_v21  ;;  %4785 = vmatprep.mubr.bf16.mxu1 %v3966_v27  ;;  %v5786_v21 = vld [vmem:[%s9486_s7 + $0x194] ss:$8 sps:$4 sm:$0xff]   ;;  %v5784_v27 = vld [vmem:[%s9486_s7 + $0x190] ss:$8 sps:$4 sm:$0xff]  }
 0xafa   :  { %4795 = vmatpush1.bf16.msra.mxu0 %v5698_v35  ;;  %4826 = vmatprep.mubr.bf16.mxu0 %v3968_v47  ;;  %v5781_v35 = vld [vmem:[%s9486_s7 + $0x90] ss:$8 sps:$4 sm:$0xff]   ;;  %v5787_v47 = vld [vmem:[%s9486_s7 + $0x80] ss:$8 sps:$4 sm:$0xff]  }
 0xafb   :  { %4755 = vmatprep.subr.bf16.mxu1 %v5705_v54  ;;  %4796 = vmatprep.subr.bf16.mxu0 %v5708_v29  ;;  %v5789_v54 = vld [vmem:[%s9486_s7 + $0x84] ss:$8 sps:$4 sm:$0xff]  }
 0xafc   :  { %v5792_v29 = vld [vmem:[%s9486_s7 + $0x184] ss:$8 sps:$4 sm:$0xff]  }
 0xafd   :  { %4756 = vmatpush1.bf16.msra.mxu1 %v5703_v55  ;;  %v9210_v55 = vld [vmem:[#allocation3 + $0x10] sm:$0xff] }
 0xafe   :  { %4797 = vmatpush1.bf16.msra.mxu0 %v5706_v4  ;;  %4757 = vmatprep.subr.bf16.mxu1 %v5711_v6  ;;  %v5790_v4 = vld [vmem:[%s9486_s7 + $0x180] ss:$8 sps:$4 sm:$0xff]   ;;  %v5795_v6 = vld [vmem:[%s9486_s7 + $0x274] ss:$8 sps:$4 sm:$0xff]  }
 0xaff   :  { %4798 = vmatprep.subr.bf16.mxu0 %v5714_v13  ;;  %v3959_v13 = vcombine.high %v9210_v55, %v9210_v55 }
 0xb01   :  { %4758 = vmatpush1.bf16.msra.mxu1 %v5709_v40  ;;  %v5793_v40 = vld [vmem:[%s9486_s7 + $0x270] ss:$8 sps:$4 sm:$0xff]  }
 0xb02   :  { %4799 = vmatpush1.bf16.msra.mxu0 %v5712_v57  ;;  %4759 = vmatprep.subr.bf16.mxu1 %v5717_v51  ;;  %v3965_v57 = vpack.c.bf16 %v9007_v26, %v9007_v26  ;;  %v5799_v51 = vld [vmem:[%s9486_s7 + $0x264] ss:$8 sps:$4 sm:$0xff]   ;;  %v5802_v26 = vld [vmem:[%s9486_s7 + $0x254] ss:$8 sps:$4 sm:$0xff]  }
 0xb03   :  { %4800 = vmatprep.subr.bf16.mxu0 %v5720_v44  ;;  %v3967_v44 = vpack.c.bf16 %v9011_v16, %v9011_v16  ;;  %v5805_v16 = vld [vmem:[%s9486_s7 + $0x244] ss:$8 sps:$4 sm:$0xff]  }
 0xb05   :  { %4760 = vmatpush1.bf16.msra.mxu1 %v5715_v39  ;;  %v3970_v39 = vpack.c.bf16 %v3959_v13, %v3959_v13  ;;  %v5839_v13 = vld [vmem:[%s9486_s7 + $0x280] ss:$8 sps:$4 sm:$0xff]  }
 0xb06   :  { %4801 = vmatpush1.bf16.msra.mxu0 %v5718_v32  ;;  %4761 = vmatprep.subr.bf16.mxu1 %v5723_v53  ;;  %v5797_v32 = vld [vmem:[%s9486_s7 + $0x260] ss:$8 sps:$4 sm:$0xff]   ;;  %v5800_v53 = vld [vmem:[%s9486_s7 + $0x250] ss:$8 sps:$4 sm:$0xff]  }
 0xb07   :  { %4802 = vmatprep.subr.bf16.mxu0 %v5726_v33  ;;  %v5803_v33 = vld [vmem:[%s9486_s7 + $0x240] ss:$8 sps:$4 sm:$0xff]  }
 0xb09   :  { %4762 = vmatpush1.bf16.msra.mxu1 %v5721_v20  ;;  %v5808_v20 = vld [vmem:[%s9486_s7 + $0x234] ss:$8 sps:$4 sm:$0xff]  }
 0xb0a   :  { %4803 = vmatpush1.bf16.msra.mxu0 %v5724_v48  ;;  %4763 = vmatprep.subr.bf16.mxu1 %v5729_v5  ;;  %v5844_v48 = vld [vmem:[%s9486_s7 + $0x374] ss:$8 sps:$4 sm:$0xff]   ;;  %v5842_v5 = vld [vmem:[%s9486_s7 + $0x370] ss:$8 sps:$4 sm:$0xff]  }
 0xb0b   :  { %4804 = vmatprep.subr.bf16.mxu0 %v5732_v12  ;;  %v5806_v12 = vld [vmem:[%s9486_s7 + $0x230] ss:$8 sps:$4 sm:$0xff]  }
 0xb0d   :  { %4764 = vmatpush1.bf16.msra.mxu1 %v5727_v36  ;;  %v5811_v36 = vld [vmem:[%s9486_s7 + $0x224] ss:$8 sps:$4 sm:$0xff]  }
 0xb0e   :  { %4805 = vmatpush1.bf16.msra.mxu0 %v5730_v9  ;;  %4765 = vmatprep.subr.bf16.mxu1 %v5735_v52  ;;  %v5847_v9 = vld [vmem:[%s9486_s7 + $0x364] ss:$8 sps:$4 sm:$0xff]   ;;  %v5845_v52 = vld [vmem:[%s9486_s7 + $0x360] ss:$8 sps:$4 sm:$0xff]  }
 0xb0f   :  { %4806 = vmatprep.subr.bf16.mxu0 %v5738_v59  ;;  %v5809_v59 = vld [vmem:[%s9486_s7 + $0x220] ss:$8 sps:$4 sm:$0xff]  }
 0xb11   :  { %4766 = vmatpush1.bf16.msra.mxu1 %v5733_v1  ;;  %v5814_v1 = vld [vmem:[%s9486_s7 + $0x214] ss:$8 sps:$4 sm:$0xff]  }
 0xb12   :  { %4807 = vmatpush1.bf16.msra.mxu0 %v5736_v24  ;;  %4767 = vmatprep.subr.bf16.mxu1 %v5741_v49  ;;  %v5850_v24 = vld [vmem:[%s9486_s7 + $0x354] ss:$8 sps:$4 sm:$0xff]   ;;  %v5848_v49 = vld [vmem:[%s9486_s7 + $0x350] ss:$8 sps:$4 sm:$0xff]  }
 0xb13   :  { %4808 = vmatprep.subr.bf16.mxu0 %v5744_v0  ;;  %v5812_v0 = vld [vmem:[%s9486_s7 + $0x210] ss:$8 sps:$4 sm:$0xff]  }
 0xb15   :  { %4768 = vmatpush1.bf16.msra.mxu1 %v5739_v14  ;;  %v5817_v14 = vld [vmem:[%s9486_s7 + $0x204] ss:$8 sps:$4 sm:$0xff]  }
 0xb16   :  { %4809 = vmatpush1.bf16.msra.mxu0 %v5742_v18  ;;  %4769 = vmatprep.subr.bf16.mxu1 %v5747_v28  ;;  %v5853_v18 = vld [vmem:[%s9486_s7 + $0x344] ss:$8 sps:$4 sm:$0xff]   ;;  %v5851_v28 = vld [vmem:[%s9486_s7 + $0x340] ss:$8 sps:$4 sm:$0xff]  }
 0xb17   :  { %4810 = vmatprep.subr.bf16.mxu0 %v5750_v31  ;;  %v5815_v31 = vld [vmem:[%s9486_s7 + $0x200] ss:$8 sps:$4 sm:$0xff]  }
 0xb19   :  { %4770 = vmatpush2.bf16.msra.mxu1 %v5745_v45  ;;  %v5820_v45 = vld [vmem:[%s9486_s7 + $0x2f4] ss:$8 sps:$4 sm:$0xff]  }
 0xb1a   :  { %4811 = vmatpush2.bf16.msra.mxu0 %v5748_v17  ;;  %4771 = vmatprep.subr.bf16.mxu1 %v5753_v62  ;;  %v5856_v17 = vld [vmem:[%s9486_s7 + $0x334] ss:$8 sps:$4 sm:$0xff]   ;;  %v5854_v62 = vld [vmem:[%s9486_s7 + $0x330] ss:$8 sps:$4 sm:$0xff]  }
 0xb1b   :  { %4812 = vmatprep.subr.bf16.mxu0 %v5756_v25  ;;  %v5818_v25 = vld [vmem:[%s9486_s7 + $0x2f0] ss:$8 sps:$4 sm:$0xff]  }
 0xb1d   :  { %4772 = vmatpush2.bf16.msra.mxu1 %v5751_v11  ;;  %v5823_v11 = vld [vmem:[%s9486_s7 + $0x2e4] ss:$8 sps:$4 sm:$0xff]  }
 0xb1e   :  { %4813 = vmatpush2.bf16.msra.mxu0 %v5754_v41  ;;  %4773 = vmatprep.subr.bf16.mxu1 %v5759_v30  ;;  %v5859_v41 = vld [vmem:[%s9486_s7 + $0x324] ss:$8 sps:$4 sm:$0xff]   ;;  %v5857_v30 = vld [vmem:[%s9486_s7 + $0x320] ss:$8 sps:$4 sm:$0xff]  }
 0xb1f   :  { %4814 = vmatprep.subr.bf16.mxu0 %v5762_v42  ;;  %v5821_v42 = vld [vmem:[%s9486_s7 + $0x2e0] ss:$8 sps:$4 sm:$0xff]  }
 0xb21   :  { %4774 = vmatpush2.bf16.msra.mxu1 %v5757_v22  ;;  %v5826_v22 = vld [vmem:[%s9486_s7 + $0x2d4] ss:$8 sps:$4 sm:$0xff]  }
 0xb22   :  { %4815 = vmatpush2.bf16.msra.mxu0 %v5760_v38  ;;  %4775 = vmatprep.subr.bf16.mxu1 %v5765_v7  ;;  %v5862_v38 = vld [vmem:[%s9486_s7 + $0x314] ss:$8 sps:$4 sm:$0xff]   ;;  %v5860_v7 = vld [vmem:[%s9486_s7 + $0x310] ss:$8 sps:$4 sm:$0xff]  }
 0xb23   :  { %4816 = vmatprep.subr.bf16.mxu0 %v5768_v43  ;;  %v5824_v43 = vld [vmem:[%s9486_s7 + $0x2d0] ss:$8 sps:$4 sm:$0xff]  }
 0xb25   :  { %4776 = vmatpush2.bf16.msra.mxu1 %v5763_v46  ;;  %v5829_v46 = vld [vmem:[%s9486_s7 + $0x2c4] ss:$8 sps:$4 sm:$0xff]  }
 0xb26   :  { %4817 = vmatpush2.bf16.msra.mxu0 %v5766_v10  ;;  %4777 = vmatprep.subr.bf16.mxu1 %v5771_v63  ;;  %v5865_v10 = vld [vmem:[%s9486_s7 + $0x304] ss:$8 sps:$4 sm:$0xff]   ;;  %v5863_v63 = vld [vmem:[%s9486_s7 + $0x300] ss:$8 sps:$4 sm:$0xff]  }
 0xb27   :  { %4818 = vmatprep.subr.bf16.mxu0 %v5774_v8  ;;  %v5827_v8 = vld [vmem:[%s9486_s7 + $0x2c0] ss:$8 sps:$4 sm:$0xff]  }
 0xb29   :  { %4778 = vmatpush2.bf16.msra.mxu1 %v5769_v50  ;;  %v5832_v50 = vld [vmem:[%s9486_s7 + $0x2b4] ss:$8 sps:$4 sm:$0xff]  }
 0xb2a   :  { %4819 = vmatpush2.bf16.msra.mxu0 %v5772_v3  ;;  %4779 = vmatprep.subr.bf16.mxu1 %v5777_v2  ;;  %v5868_v3 = vld [vmem:[%s9486_s7 + $0x3f4] ss:$8 sps:$4 sm:$0xff]   ;;  %v5866_v2 = vld [vmem:[%s9486_s7 + $0x3f0] ss:$8 sps:$4 sm:$0xff]  }
 0xb2b   :  { %4820 = vmatprep.subr.bf16.mxu0 %v5780_v61  ;;  %v5830_v61 = vld [vmem:[%s9486_s7 + $0x2b0] ss:$8 sps:$4 sm:$0xff]  }
 0xb2d   :  { %4780 = vmatpush2.bf16.msra.mxu1 %v5775_v56  ;;  %v5835_v56 = vld [vmem:[%s9486_s7 + $0x2a4] ss:$8 sps:$4 sm:$0xff]  }
 0xb2e   :  { %4821 = vmatpush2.bf16.msra.mxu0 %v5778_v37  ;;  %4781 = vmatprep.subr.bf16.mxu1 %v5783_v60  ;;  %v5871_v37 = vld [vmem:[%s9486_s7 + $0x3e4] ss:$8 sps:$4 sm:$0xff]   ;;  %v5869_v60 = vld [vmem:[%s9486_s7 + $0x3e0] ss:$8 sps:$4 sm:$0xff]  }
 0xb2f   :  { %4822 = vmatprep.subr.bf16.mxu0 %v5786_v21  ;;  %v5833_v21 = vld [vmem:[%s9486_s7 + $0x2a0] ss:$8 sps:$4 sm:$0xff]  }
 0xb31   :  { %4782 = vmatpush2.bf16.msra.mxu1 %v5781_v35  ;;  %v5838_v35 = vld [vmem:[%s9486_s7 + $0x294] ss:$8 sps:$4 sm:$0xff]  }
 0xb32   :  { %4823 = vmatpush2.bf16.msra.mxu0 %v5784_v27  ;;  %4783 = vmatprep.subr.bf16.mxu1 %v5789_v54  ;;  %v5874_v27 = vld [vmem:[%s9486_s7 + $0x3d4] ss:$8 sps:$4 sm:$0xff]   ;;  %v5872_v54 = vld [vmem:[%s9486_s7 + $0x3d0] ss:$8 sps:$4 sm:$0xff]  }
 0xb33   :  { %4824 = vmatprep.subr.bf16.mxu0 %v5792_v29  ;;  %v5836_v29 = vld [vmem:[%s9486_s7 + $0x290] ss:$8 sps:$4 sm:$0xff]  }
 0xb35   :  { %4784 = vmatpush2.bf16.msra.mxu1 %v5787_v47  ;;  %v5841_v47 = vld [vmem:[%s9486_s7 + $0x284] ss:$8 sps:$4 sm:$0xff]  }
 0xb36   :  { %4825 = vmatpush2.bf16.msra.mxu0 %v5790_v4  ;;  %4835 = vmatprep.subr.bf16.mxu1 %v5795_v6  ;;  %v5877_v4 = vld [vmem:[%s9486_s7 + $0x3c4] ss:$8 sps:$4 sm:$0xff]   ;;  %v5875_v6 = vld [vmem:[%s9486_s7 + $0x3c0] ss:$8 sps:$4 sm:$0xff]  }
 0xb37   :  { %4876 = vmatprep.subr.bf16.mxu0 %v5844_v48 }
 0xb38   :  { %4786 = vmatmul.mubr.bf16.vlgmr.msra.gmra.mxu1 %v3965_v57  ;;  %v5878_v57 = vld [vmem:[%s9486_s7 + $0x3b0] ss:$8 sps:$4 sm:$0xff]  }
 0xb39   :  { %4827 = vmatmul.mubr.bf16.vlgmr.msra.gmra.mxu0 %v3967_v44  ;;  %4836 = vmatpush1.bf16.msra.mxu1 %v5793_v40  ;;  %v5880_v40 = vld [vmem:[%s9486_s7 + $0x3b4] ss:$8 sps:$4 sm:$0xff]   ;;  %v3969_v44 = vpack.c.bf16 %v9210_v55, %v9210_v55  ;;  %v5887_v55 = vld [vmem:[%s9486_s7 + $0x380] ss:$8 sps:$4 sm:$0xff]  }
 0xb3a   :  { %4867 = vmatprep.mubr.bf16.mxu1 %v3970_v39  ;;  %4837 = vmatprep.subr.bf16.mxu1 %v5799_v51  ;;  %v5883_v51 = vld [vmem:[%s9486_s7 + $0x3a4] ss:$8 sps:$4 sm:$0xff]   ;;  %v5881_v39 = vld [vmem:[%s9486_s7 + $0x3a0] ss:$8 sps:$4 sm:$0xff]  }
 0xb3b   :  { %4877 = vmatpush1.bf16.msra.mxu0 %v5842_v5 }
 0xb3c   :  { %4878 = vmatprep.subr.bf16.mxu0 %v5847_v9 }
 0xb3d   :  { %4838 = vmatpush1.bf16.msra.mxu1 %v5797_v32  ;;  %v5886_v32 = vld [vmem:[%s9486_s7 + $0x394] ss:$8 sps:$4 sm:$0xff]  }
 0xb3e   :  { %4839 = vmatprep.subr.bf16.mxu1 %v5802_v26  ;;  %v5884_v26 = vld [vmem:[%s9486_s7 + $0x390] ss:$8 sps:$4 sm:$0xff]  }
 0xb3f   :  { %4879 = vmatpush1.bf16.msra.mxu0 %v5845_v52 }
 0xb40   :  { %4880 = vmatprep.subr.bf16.mxu0 %v5850_v24 }
 0xb41   :  { %4840 = vmatpush1.bf16.msra.mxu1 %v5800_v53  ;;  %v5889_v53 = vld [vmem:[%s9486_s7 + $0x384] ss:$8 sps:$4 sm:$0xff]  }
 0xb42   :  { %4841 = vmatprep.subr.bf16.mxu1 %v5805_v16 }
 0xb43   :  { %4881 = vmatpush1.bf16.msra.mxu0 %v5848_v49 }
 0xb44   :  { %4882 = vmatprep.subr.bf16.mxu0 %v5853_v18 }
 0xb45   :  { %4842 = vmatpush1.bf16.msra.mxu1 %v5803_v33 }
 0xb46   :  { %4843 = vmatprep.subr.bf16.mxu1 %v5808_v20 }
 0xb47   :  { %4883 = vmatpush1.bf16.msra.mxu0 %v5851_v28 }
 0xb48   :  { %4884 = vmatprep.subr.bf16.mxu0 %v5856_v17 }
 0xb49   :  { %4844 = vmatpush1.bf16.msra.mxu1 %v5806_v12 }
 0xb4a   :  { %4845 = vmatprep.subr.bf16.mxu1 %v5811_v36 }
 0xb4b   :  { %4885 = vmatpush1.bf16.msra.mxu0 %v5854_v62 }
 0xb4c   :  { %4886 = vmatprep.subr.bf16.mxu0 %v5859_v41  ;;  %v5893_v41 = vld [vmem:[%s9488_s9 + $0x70] sm:$0xff]  }
 0xb4d   :  { %4846 = vmatpush1.bf16.msra.mxu1 %v5809_v59 }
 0xb4e   :  { %4847 = vmatprep.subr.bf16.mxu1 %v5814_v1 }
 0xb4f   :  { %4887 = vmatpush1.bf16.msra.mxu0 %v5857_v30 }
 0xb50   :  { %4888 = vmatprep.subr.bf16.mxu0 %v5862_v38  ;;  %v5894_v38 = vld [vmem:[%s9488_s9 + $0x30] sm:$0xff]  }
 0xb51   :  { %4848 = vmatpush1.bf16.msra.mxu1 %v5812_v0 }
 0xb52   :  { %4849 = vmatprep.subr.bf16.mxu1 %v5817_v14 }
 0xb53   :  { %4889 = vmatpush1.bf16.msra.mxu0 %v5860_v7  ;;  %v5895_v7 = vld [vmem:[%s9488_s9 + $0x68] sm:$0xff]  }
 0xb54   :  { %4890 = vmatprep.subr.bf16.mxu0 %v5865_v10  ;;  %v5897_v10 = vld [vmem:[%s9488_s9 + $0x60] sm:$0xff]  }
 0xb55   :  { %4850 = vmatpush1.bf16.msra.mxu1 %v5815_v31 }
 0xb56   :  { %4851 = vmatprep.subr.bf16.mxu1 %v5820_v45 }
 0xb57   :  { %4891 = vmatpush1.bf16.msra.mxu0 %v5863_v63 }
 0xb58   :  { %4892 = vmatprep.subr.bf16.mxu0 %v5868_v3  ;;  %v5899_v3 = vld [vmem:[%s9488_s9 + $0x58] sm:$0xff]  }
 0xb59   :  { %4852 = vmatpush2.bf16.msra.mxu1 %v5818_v25  ;;  %v5891_v25 = vld [vmem:[%s9488_s9 + $0x78] sm:$0xff]  }
 0xb5a   :  { %4853 = vmatprep.subr.bf16.mxu1 %v5823_v11  ;;  %v5892_v11 = vld [vmem:[%s9488_s9 + $0x38] sm:$0xff]  }
 0xb5b   :  { %4893 = vmatpush2.bf16.msra.mxu0 %v5866_v2 }
 0xb5c   :  { %4894 = vmatprep.subr.bf16.mxu0 %v5871_v37  ;;  %v5901_v37 = vld [vmem:[%s9488_s9 + $0x50] sm:$0xff]  }
 0xb5d   :  { %4854 = vmatpush2.bf16.msra.mxu1 %v5821_v42 }
 0xb5e   :  { %4855 = vmatprep.subr.bf16.mxu1 %v5826_v22 }
 0xb5f   :  { %4895 = vmatpush2.bf16.msra.mxu0 %v5869_v60 }
 0xb60   :  { %4896 = vmatprep.subr.bf16.mxu0 %v5874_v27  ;;  %v5902_v27 = vld [vmem:[%s9488_s9 + $0x10] sm:$0xff]  }
 0xb61   :  { %4856 = vmatpush2.bf16.msra.mxu1 %v5824_v43 }
 0xb62   :  { %4857 = vmatprep.subr.bf16.mxu1 %v5829_v46 }
 0xb63   :  { %4897 = vmatpush2.bf16.msra.mxu0 %v5872_v54 }
 0xb64   :  { %4898 = vmatprep.subr.bf16.mxu0 %v5877_v4 }
 0xb65   :  { %4858 = vmatpush2.bf16.msra.mxu1 %v5827_v8  ;;  %v5898_v8 = vld [vmem:[%s9488_s9 + $0x20] sm:$0xff]  }
 0xb66   :  { %4859 = vmatprep.subr.bf16.mxu1 %v5832_v50 }
 0xb67   :  { %4899 = vmatpush2.bf16.msra.mxu0 %v5875_v6 }
 0xb68   :  { %4900 = vmatprep.subr.bf16.mxu0 %v5880_v40 }
 0xb69   :  { %4860 = vmatpush2.bf16.msra.mxu1 %v5830_v61  ;;  %v5900_v61 = vld [vmem:[%s9488_s9 + $0x18] sm:$0xff]  }
 0xb6a   :  { %4861 = vmatprep.subr.bf16.mxu1 %v5835_v56 }
 0xb6b   :  { %4901 = vmatpush2.bf16.msra.mxu0 %v5878_v57 }
 0xb6c   :  { %4902 = vmatprep.subr.bf16.mxu0 %v5883_v51 }
 0xb6d   :  { %4862 = vmatpush2.bf16.msra.mxu1 %v5833_v21 }
 0xb6e   :  { %4863 = vmatprep.subr.bf16.mxu1 %v5838_v35 }
 0xb6f   :  { %4903 = vmatpush2.bf16.msra.mxu0 %v5881_v39 }
 0xb70   :  { %4904 = vmatprep.subr.bf16.mxu0 %v5886_v32  ;;  %v10149_v32 = vld [vmem:[#allocation7_spill] sm:$0xff] }
 0xb71   :  { %4864 = vmatpush2.bf16.msra.mxu1 %v5836_v29 }
 0xb72   :  { %4865 = vmatprep.subr.bf16.mxu1 %v5841_v47 }
 0xb73   :  { %4905 = vmatpush2.bf16.msra.mxu0 %v5884_v26 }
 0xb74   :  { %4906 = vmatprep.subr.bf16.mxu0 %v5889_v53 }
 0xb75   :  { %4866 = vmatpush2.bf16.msra.mxu1 %v5839_v13 }
 0xb76   :  { %5469 = vmatprep.subr.bf16.mxu1 %v5891_v25  ;;  %v5903_v25 = vld [vmem:[%s9488_s9 + $0x48] sm:$0xff]  }
 0xb77   :  { %4907 = vmatpush2.bf16.msra.mxu0 %v5887_v55  ;;  %v10150_v55 = vld [vmem:[#allocation8_spill] sm:$0xff] }
 0xb78   :  { %4868 = vmatmul.mubr.bf16.vlgmr.msra.gmra.mxu1 %v3969_v44  ;;  %v4101_v44 = vld [vmem:[%s9487_s8] sm:$0x3] }
 0xb79   :  { %5470 = vmatpush3.bf16.msra.mxu1 %v5892_v11  ;;  %v4106_v26 = vrot.slane %v4101_v44, %v10149_v32  ;;  %v4110_v53 = vrot.slane %v4101_v44, %v10150_v55  ;;  %v5904_v11 = vld [vmem:[%s9488_s9 + $0x8] sm:$0xff]  }
 0xb7a   :  { %5471 = vmatprep.subr.bf16.mxu1 %v5893_v41  ;;  %v5905_v41 = vld [vmem:[%s9488_s9 + $0x40] sm:$0xff]  }
 0xb7d   :  { %5472 = vmatpush3.bf16.msra.mxu1 %v5894_v38 }
 0xb7e   :  { %5473 = vmatprep.subr.bf16.mxu1 %v5895_v7 }
 0xb98   :  { %v3774_v16 = vpop.f32.mrf.mxu1  ;;  %v3815_v33 = vpop.f32.mrf.mxu0 }
 0xb9a   :  { %v3776_v20 = vpop.f32.mrf.mxu1  ;;  %v3817_v48 = vpop.f32.mrf.mxu0 }
 0xb9c   :  { %v3778_v5 = vpop.f32.mrf.mxu1  ;;  %v3819_v12 = vpop.f32.mrf.mxu0 }
 0xb9e   :  { %v3779_v36 = vpop.f32.mrf.mxu1  ;;  %v3820_v9 = vpop.f32.mrf.mxu0 }
 0xbb8   :  { %v3856_v52 = vpop.f32.mrf.mxu1  ;;  %v3897_v59 = vpop.f32.mrf.mxu0 }
 0xbb9   :  { %v3908_v1 = vrot.slane %v3856_v52, 4  ;;  %v3910_v22 = vrot.slane %v3897_v59, 4 }
 0xbba   :  { %v3858_v24 = vpop.f32.mrf.mxu1  ;;  %v3899_v49 = vpop.f32.mrf.mxu0 }
 0xbbb   :  { %v3916_v0 = vadd.f32 %v3908_v1, %v3774_v16  ;;  %v3909_v14 = vrot.slane %v3858_v24, 4  ;;  %v3918_v43 = vadd.f32 %v3910_v22, %v3815_v33  ;;  %v3911_v46 = vrot.slane %v3899_v49, 4 }
 0xbbc   :  { %v3860_v18 = vpop.f32.mrf.mxu1  ;;  %v3901_v28 = vpop.f32.mrf.mxu0 }
 0xbbd   :  { %v3920_v31 = vadd.f32 %v3916_v0, %v7265_v19  ;;  %v3917_v45 = vadd.f32 %v3909_v14, %v3776_v20  ;;  %v3922_v63 = vadd.f32 %v3918_v43, %v7274_v58  ;;  %v3919_v50 = vadd.f32 %v3911_v46, %v3817_v48 }
 0xbbe   :  { %v3861_v17 = vpop.f32.mrf.mxu1  ;;  %v3902_v62 = vpop.f32.mrf.mxu0 }
 0xbbf   :  { %v5306_v30 = vmul.f32 -1.442695, %v3920_v31  ;;  %v3921_v42 = vadd.f32 %v3917_v45, %v7268_v23  ;;  %v5896_v23 = vld [vmem:[%s9488_s9 + $0x28] sm:$0xff]   ;;  %v5308_v2 = vmul.f32 -1.442695, %v3922_v63  ;;  %v3923_v58 = vadd.f32 %v3919_v50, %v7279_v34 }
 0xbc0   :  { %5474 = vmatpush3.bf16.msra.mxu1 %v5896_v23  ;;  %v5437_v50 = vld [vmem:[%s9489_s10] ss:$0 sm:$0xff] }
 0xbc1   :  { %6147 = vpow2.f32 %v5306_v30  ;;  %v5307_v19 = vmul.f32 -1.442695, %v3921_v42  ;;  %5475 = vmatprep.subr.bf16.mxu1 %v5897_v10  ;;  %v5906_v30 = vld [vmem:[%s9488_s9] sm:$0xff]   ;;  %s6379_s9 = smov [#allocation4]  }
 0xbc2   :  { %s5104_s26 = sshll.u32 %s6379_s9, 4  ;;  %s5105_s26 = int_to_ptr.vmem [resolvable:$true] %s5104_s26 }
 0xbc3   :  { %6149 = vpow2.f32 %v5307_v19  ;;  %s6355_s27 = scalar_lea.vmem %s5105_s26, 64  ;;  %p6360_p1 = scmp.lt.s32.totalorder %s5105_s26, %s5105_s26 }
 0xbc4   :  { %5476 = vmatpush3.bf16.msra.mxu1 %v5898_v8  ;;  %6151 = vpow2.f32 %v5308_v2  ;;  %p6356_p0 = scmp.ne.s32.totalorder %s5105_s26, %s6355_s27  ;;  %p6361_p2 = scmp.lt.s32.totalorder %s6355_s27, %s6355_s27 }
 0xbc5   :  { %5477 = vmatprep.subr.bf16.mxu1 %v5899_v3 }
 0xbc6   :  { %p6362_p3 = por %p6361_p2, %p6360_p1 }
 0xbc8   :  { %5478 = vmatpush3.bf16.msra.mxu1 %v5900_v61  ;;  %p6363_p4 = pnand %p6362_p3, %p6356_p0 }
 0xbc9   :  { %5479 = vmatprep.subr.bf16.mxu1 %v5901_v37 }
 0xbcc   :  { %5480 = vmatpush3.bf16.msra.mxu1 %v5902_v27 }
 0xbcd   :  { %5481 = vmatprep.subr.bf16.mxu1 %v5903_v25 }
 0xbce   :  { %v6148_v56 = vpop.eup %6147 }
 0xbcf   :  { %v3933_v60 = vadd.f32 1.0, %v6148_v56 }
 0xbd0   :  { %v6150_v21 = vpop.eup %6149  ;;  %5482 = vmatpush3.bf16.msra.mxu1 %v5904_v11 }
 0xbd1   :  { %6153 = vrcp.f32 %v3933_v60  ;;  %v3934_v35 = vadd.f32 1.0, %v6150_v21  ;;  %v6152_v34 = vpop.eup %6151  ;;  %5483 = vmatprep.subr.bf16.mxu1 %v5905_v41 }
 0xbd2   :  { %6155 = vtanh.f32 %v3923_v58  ;;  %v3935_v4 = vadd.f32 1.0, %v6152_v34 }
 0xbd3   :  { %6157 = vrcp.f32 %v3934_v35 }
 0xbd4   :  { %6159 = vrcp.f32 %v3935_v4  ;;  %5484 = vmatpush3.bf16.msra.mxu1 %v5906_v30 }
 0xbde   :  { %v6154_v54 = vpop.eup %6153 }
 0xbdf   :  { %v6156_v29 = vpop.eup %6155 }
 0xbe0   :  { %v6158_v47 = vpop.eup %6157  ;;  %v3944_v13 = vmul.f32 %v6156_v29, %v6154_v54 }
 0xbe1   :  { %v3943_v6 = vmul.f32 %v6158_v47, %v8977_v15  ;;  %v6160_v57 = vpop.eup %6159 }
 0xbe3   :  { %v3945_v40 = vadd.f32 %v3944_v13, %v3943_v6 }
 0xbe5   :  { %6161 = vtanh.f32 %v3945_v40 }
 0xbf2   :  { %v6162_v51 = vpop.eup %6161 }
 0xbf3   :  { %v3947_v39 = vmul.f32 %v6162_v51, %v6160_v57 }
 0xbf5   :  { %3948 = vst [vmem:[#allocation3 + $0x1c] sm:$0xf] %v3947_v39 }
 0xbf8   :  { %v4787_v16 = vpop.f32.mrf.mxu1 }
 0xbf9   :  { %v4788_v33 = vadd.f32 %v4787_v16, %v4106_v26  ;;  %v4828_v20 = vpop.f32.mrf.mxu0 }
 0xbfa   :  { %v4789_v15 = vpop.f32.mrf.mxu1 }
 0xbfb   :  { %v4829_v48 = vadd.f32 %v4828_v20, %v4788_v33  ;;  %v4790_v5 = vadd.f32 %v4789_v15, %v4110_v53  ;;  %v4830_v12 = vpop.f32.mrf.mxu0 }
 0xbfc   :  { %v4791_v36 = vpop.f32.mrf.mxu1  ;;  %v3952_v9 = vld [vmem:[#allocation3 + $0x18] sm:$0xff] }
 0xbfd   :  { %v4831_v52 = vadd.f32 %v4830_v12, %v4790_v5  ;;  %v4832_v59 = vpop.f32.mrf.mxu0  ;;  %v3960_v1 = vcombine.high %v3952_v9, %v3952_v9  ;;  %v3971_v14 = vpack.c.bf16 %v3952_v9, %v3952_v9 }
 0xbfe   :  { %v4792_v24 = vpop.f32.mrf.mxu1 }
 0xbff   :  { %v4833_v49 = vpop.f32.mrf.mxu0  ;;  %v3972_v0 = vpack.c.bf16 %v3960_v1, %v3960_v1 }
 0xc01   :  { %4908 = vmatprep.mubr.bf16.mxu0 %v3972_v0 }
 0xc02   :  { %4909 = vmatmul.mubr.bf16.vlgmr.msra.gmra.mxu0 %v3971_v14 }
 0xc38   :  { %v4869_v18 = vpop.f32.mrf.mxu1 }
 0xc39   :  { %v4870_v28 = vadd.f32 %v4869_v18, %v4829_v48 }
 0xc3a   :  { %v4871_v31 = vpop.f32.mrf.mxu1 }
 0xc3b   :  { %v4872_v45 = vadd.f32 %v4871_v31, %v4831_v52 }
 0xc3c   :  { %v4873_v17 = vpop.f32.mrf.mxu1 }
 0xc3e   :  { %v4874_v62 = vpop.f32.mrf.mxu1 }
 0xcc2   :  { %v4910_v42 = vpop.f32.mrf.mxu0 }
 0xcc3   :  { %v4911_v22 = vadd.f32 %v4910_v42, %v4870_v28 }
 0xcc4   :  { %v4912_v19 = vpop.f32.mrf.mxu0 }
 0xcc5   :  { %v4913_v38 = vadd.f32 %v4912_v19, %v4872_v45  ;;  %v4917_v7 = vmax.f32 %v4911_v22, 0.0 }
 0xcc6   :  { %v4914_v43 = vpop.f32.mrf.mxu0 }
 0xcc7   :  { %v4918_v23 = vmax.f32 %v4913_v38, 0.0  ;;  %v4919_v63 = vpack.c.bf16 %v4917_v7, %v4917_v7 }
 0xcc8   :  { %v4915_v46 = vpop.f32.mrf.mxu0 }
 0xcc9   :  { %v4920_v10 = vpack.c.bf16 %v4918_v23, %v4918_v23 }
 0xccb   :  { %5088 = vmatprep.mubr.bf16.mxu1 %v4920_v10 }
 0xccc   :  { %5089 = vmatmul.mubr.bf16.vlgmr.msra.gmra.mxu1 %v4919_v63 }
 0xd8c   :  { %v5485_v8 = vpop.f32.mrf.mxu1 }
 0xd8e   :  { %v5486_v3 = vpop.f32.mrf.mxu1 }
 0xd8f   :  { %v5487_v2 = vadd.f32 %v5486_v3, %v5485_v8 }
 0xd90   :  { %v5488_v61 = vpop.f32.mrf.mxu1 }
 0xd91   :  { %v5091_v56 = vadd.f32 %v5487_v2, %v5437_v50 }
 0xd92   :  { %v5489_v58 = vpop.f32.mrf.mxu1 }
 0xd93   :  { %5097 = vst.msk [vmem:[#allocation4] sm:$0xf] %vm5096_vm5, %v5091_v56 }
 0xd94   :  { %6366 = shalt.err (!%p6363_p4)
}
 0xd95   :  { %5107 = dma.vmem_to_hbm [thread:$0]  %s5105_s26, 64, %s9490_s11, [#allocation5]  }
 0xd96   :  { %6375 = dma.done.wait [#allocation5], 64  }
 0xd97   :  { %6376 = vsyncadd [#allocation5], 4294967232 }
 0xd98   :  { %5111 = vsyncpa [#allocation5], 1 }

</bundles_post_ra>
